<compile_context>
chip_gen: v6e
topology: v6e:2x2x1
jax: 0.10.0
libtpu: 0.0.40
codegen_flags: <defaults>
</compile_context>

<pallas_src>
import functools

import jax
import jax.numpy as jnp
from jax.experimental import pallas as pl
from jax.experimental.pallas import tpu as pltpu

_CP = 128     # padded input/hidden channel lanes (57 -> 128)
_PSEG = 128   # padded logit lanes inside the kernel (19 -> 128)


def _round8(n):
    return (n + 7) // 8 * 8


# ----------------------------------------------------------------------------
# Fused kernel (one grid step per batch element)
# ----------------------------------------------------------------------------
def _make_net1_kernel(H, W, Cp, Pseg, P, Pout):
    HW = H * W

    def conv3x3(xp_ref, w_ref, b_ref):
        # 9 direct (HW,Cp)x(Cp,Cp) MXU dots; f32 value accumulation (no scratch RMW).
        acc = None
        for kh in range(3):
            for kw in range(3):
                slab = xp_ref[pl.ds(kh, H), pl.ds(kw, W), :]      # (H, W, Cp) f32
                slab = slab.reshape(HW, Cp).astype(jnp.bfloat16)
                part = jnp.dot(slab, w_ref[3 * kh + kw],
                               preferred_element_type=jnp.float32)
                acc = part if acc is None else acc + part
        return acc + b_ref[...]                                   # + BN shift

    def kernel(x_ref, w1_ref, b1_ref, w2_ref, b2_ref, ws_ref, bs_ref,
               o_ref, xp_ref):
        # x_ref  : [1, H, W, Cp]   bf16  channel-padded NHWC input (one batch elem)
        # w1_ref : [9, Cp, Cp]     bf16  conv1 weights (tap-major), BN1 scale folded
        # b1_ref : [1, Cp]         f32   BN1 shift
        # w2_ref : [9, Cp, Cp]     bf16  conv2 weights, BN2 scale folded
        # b2_ref : [1, Cp]         f32   BN2 shift
        # ws_ref : [Cp, Pseg]      bf16  1x1 seg conv weight (zero padded)
        # bs_ref : [1, Pseg]       f32   seg bias (zero padded)
        # o_ref  : [1, Pout, H*W]  f32   log-softmax, channel-major (padded rows junk)
        # xp_ref : scratch [H+2, W+2, Cp] f32  zero-halo activation frame

        # ---- zero only the 1-wide halo border; the interior is overwritten below ----
        zrow = jnp.zeros((1, W + 2, Cp), jnp.float32)
        zcol = jnp.zeros((H, 1, Cp), jnp.float32)
        xp_ref[pl.ds(0, 1), :, :] = zrow
        xp_ref[pl.ds(H + 1, 1), :, :] = zrow
        xp_ref[pl.ds(1, H), pl.ds(0, 1), :] = zcol
        xp_ref[pl.ds(1, H), pl.ds(W + 1, 1), :] = zcol

        # ---- conv1 -> bn1 -> relu ---------------------------------------------------
        xp_ref[pl.ds(1, H), pl.ds(1, W), :] = x_ref[0].astype(jnp.float32)
        t1 = jnp.maximum(conv3x3(xp_ref, w1_ref, b1_ref), 0.0)    # (HW, Cp) f32

        # ---- conv2 -> bn2 -> (+x residual) -> relu ------------------------------------
        xp_ref[pl.ds(1, H), pl.ds(1, W), :] = t1.reshape(H, W, Cp)
        resid = x_ref[0].reshape(HW, Cp).astype(jnp.float32)      # pad lanes are zero
        t2 = jnp.maximum(conv3x3(xp_ref, w2_ref, b2_ref) + resid, 0.0)

        # ---- seg1 (1x1 conv + bias) -> LogSoftmax over channels -----------------------
        y = jnp.dot(t2.astype(jnp.bfloat16), ws_ref[...],
                    preferred_element_type=jnp.float32) + bs_ref[...]
        lane = jax.lax.broadcasted_iota(jnp.int32, (HW, Pseg), 1)
        y = jnp.where(lane < P, y, -1e30)                         # mask padded logits
        m = jnp.max(y, axis=-1, keepdims=True)
        z = y - m
        lse = jnp.log(jnp.sum(jnp.exp(z), axis=-1, keepdims=True))
        logp = z - lse                                            # (HW, Pseg) f32

        # ---- channel-major, lane-dense store; wrapper only slices + reshapes ----------
        o_ref[0] = jnp.transpose(logp)[0:Pout, :]                 # (Pout, HW)

    return kernel


# ----------------------------------------------------------------------------
# Parameter construction (deterministic; BN folded + channel-padded once here)
# ----------------------------------------------------------------------------
def _fold_pad_conv(w, gamma, beta, mean, var, eps=1e-5):
    # Inference-mode BN folded into the conv weight (per-Cout scale) + shift.
    scale = gamma / jnp.sqrt(var + eps)
    shift = beta - mean * scale
    wf = w * scale[None, None, None, :]                           # (3,3,Cin,Cout)
    cin, cout = w.shape[2], w.shape[3]
    wp = jnp.zeros((3, 3, _CP, _CP), jnp.float32).at[:, :, :cin, :cout].set(wf)
    wp = wp.reshape(9, _CP, _CP).astype(jnp.bfloat16)             # tap-major (kh*3+kw)
    bp = jnp.zeros((1, _CP), jnp.float32).at[0, :cout].set(shift)
    return wp, bp


def make_params(key, inplanes=57, planes=19):
    ks = jax.random.split(key, 12)
    eps = 1e-5

    def conv3x3_w(k, cin, cout):
        std = (2.0 / (9.0 * cin)) ** 0.5
        return std * jax.random.normal(k, (3, 3, cin, cout), jnp.float32)

    def bn(k0, k1, k2, k3, c):
        gamma = 0.5 + jax.random.uniform(k0, (c,), jnp.float32)
        beta = 0.1 * jax.random.normal(k1, (c,), jnp.float32)
        mean = 0.1 * jax.random.normal(k2, (c,), jnp.float32)
        var = 0.5 + jax.random.uniform(k3, (c,), jnp.float32)
        return gamma, beta, mean, var

    w1 = conv3x3_w(ks[0], inplanes, inplanes)
    w2 = conv3x3_w(ks[5], inplanes, inplanes)
    w1p, b1p = _fold_pad_conv(w1, *bn(ks[1], ks[2], ks[3], ks[4], inplanes), eps=eps)
    w2p, b2p = _fold_pad_conv(w2, *bn(ks[6], ks[7], ks[8], ks[9], inplanes), eps=eps)

    wseg = (1.0 / inplanes ** 0.5) * jax.random.normal(
        ks[10], (inplanes, planes), jnp.float32)
    bseg = 0.1 * jax.random.normal(ks[11], (planes,), jnp.float32)
    wsp = (jnp.zeros((_CP, _PSEG), jnp.float32)
           .at[:inplanes, :planes].set(wseg).astype(jnp.bfloat16))
    bsp = jnp.zeros((1, _PSEG), jnp.float32).at[0, :planes].set(bseg)

    return dict(w1=w1p, b1=b1p, w2=w2p, b2=b2p, wseg=wsp, bseg=bsp)


# ----------------------------------------------------------------------------
# Full forward (input/output in PyTorch NCHW)
# ----------------------------------------------------------------------------
@functools.partial(jax.jit, static_argnames=("planes",))
def net1_forward(x_nchw, params, *, planes=19):
    N, C, H, W = x_nchw.shape
    pout = _round8(planes)

    # NCHW -> NHWC, bf16, lane-pad channels (fuses into one cheap XLA copy).
    x = jnp.transpose(x_nchw, (0, 2, 3, 1)).astype(jnp.bfloat16)
    x = jnp.pad(x, ((0, 0), (0, 0), (0, 0), (0, _CP - C)))

    out = pl.pallas_call(
        _make_net1_kernel(H, W, _CP, _PSEG, planes, pout),
        out_shape=jax.ShapeDtypeStruct((N, pout, H * W), jnp.float32),
        grid=(N,),
        in_specs=[
            pl.BlockSpec((1, H, W, _CP), lambda n: (n, 0, 0, 0)),
            pl.BlockSpec((9, _CP, _CP), lambda n: (0, 0, 0)),
            pl.BlockSpec((1, _CP), lambda n: (0, 0)),
            pl.BlockSpec((9, _CP, _CP), lambda n: (0, 0, 0)),
            pl.BlockSpec((1, _CP), lambda n: (0, 0)),
            pl.BlockSpec((_CP, _PSEG), lambda n: (0, 0)),
            pl.BlockSpec((1, _PSEG), lambda n: (0, 0)),
        ],
        out_specs=pl.BlockSpec((1, pout, H * W), lambda n: (n, 0, 0)),
        scratch_shapes=[
            pltpu.VMEM((H + 2, W + 2, _CP), jnp.float32),   # zero-halo frame
        ],
        compiler_params=pltpu.CompilerParams(
            dimension_semantics=("parallel",)),
    )(x, params["w1"], params["b1"], params["w2"], params["b2"],
      params["wseg"], params["bseg"])

    # Drop padded class rows; fold HW back to (H, W).  No transpose needed.
    return out[:, :planes, :].reshape(N, planes, H, W)


# ----------------------------------------------------------------------------
# Plain-JAX f32 reference (same folded params; bf16-rounded input like the kernel)
# ----------------------------------------------------------------------------
def net1_reference(x_nchw, params, planes):
    N, C, H, W = x_nchw.shape
    x = jnp.transpose(x_nchw, (0, 2, 3, 1))
    x = x.astype(jnp.bfloat16).astype(jnp.float32)

    def unpack(wp, bp):
        w = wp.astype(jnp.float32).reshape(3, 3, _CP, _CP)[:, :, :C, :C]
        return w, bp[0, :C]

    w1, b1 = unpack(params["w1"], params["b1"])
    w2, b2 = unpack(params["w2"], params["b2"])
    ws = params["wseg"].astype(jnp.float32)[:C, :planes]
    bs = params["bseg"][0, :planes]

    dn = jax.lax.conv_dimension_numbers(x.shape, w1.shape, ("NHWC", "HWIO", "NHWC"))
    conv = lambda a, w: jax.lax.conv_general_dilated(
        a, w, window_strides=(1, 1), padding="SAME", dimension_numbers=dn)

    t1 = jax.nn.relu(conv(x, w1) + b1)
    t2 = jax.nn.relu(conv(t1, w2) + b2 + x)
    y = jnp.einsum("nhwc,cp->nhwp", t2, ws) + bs
    logp = jax.nn.log_softmax(y, axis=-1)
    return jnp.transpose(logp, (0, 3, 1, 2))


if __name__ == "__main__":
    key = jax.random.PRNGKey(0)
    kx, kp = jax.random.split(key)

    N, C, H, W = 2, 57, 16, 16        # module defaults: inplanes=57, planes=19
    planes = 19
    x = jax.random.normal(kx, (N, C, H, W), jnp.float32)
    params = make_params(kp, inplanes=C, planes=planes)

    out = jax.block_until_ready(net1_forward(x, params, planes=planes))
    assert out.shape == (N, planes, H, W), out.shape

    # LogSoftmax sanity: logsumexp over the class dim must be ~0.
    norm = jax.scipy.special.logsumexp(out, axis=1)
    assert float(jnp.max(jnp.abs(norm))) < 1e-3, float(jnp.max(jnp.abs(norm)))

    # Numerical check vs. plain-JAX reference (bf16 MXU operands => loose tolerance).
    ref = net1_reference(x, params, planes)
    err = float(jnp.max(jnp.abs(out - ref)))
    assert err < 0.2, err

    print("KERNEL_OK")
</pallas_src>

<mosaic_0001>
module attributes {stable_mosaic.version = 11 : i64} {
  func.func @kernel(%arg0: i32, %arg1: memref<1x16x16x128xbf16, #tpu.memory_space<vmem>>, %arg2: memref<9x128x128xbf16, #tpu.memory_space<vmem>>, %arg3: memref<1x128xf32, #tpu.memory_space<vmem>>, %arg4: memref<9x128x128xbf16, #tpu.memory_space<vmem>>, %arg5: memref<1x128xf32, #tpu.memory_space<vmem>>, %arg6: memref<128x128xbf16, #tpu.memory_space<vmem>>, %arg7: memref<1x128xf32, #tpu.memory_space<vmem>>, %arg8: memref<1x24x256xf32, #tpu.memory_space<vmem>>, %arg9: memref<18x18x128xf32, #tpu.memory_space<vmem>>) attributes {dimension_semantics = [#tpu.dimension_semantics<parallel>], iteration_bounds = array<i64: 2>, scalar_prefetch = 0 : i64, scratch_operands = 1 : i64, tpu.core_type = #tpu.core_type<tc>, window_params = [{transform_indices = @transform_0, window_bounds = array<i64: 1, 16, 16, 128>}, {pipeline_mode = #tpu.pipeline_mode<synchronous>, transform_indices = @transform_1, window_bounds = array<i64: 9, 128, 128>}, {pipeline_mode = #tpu.pipeline_mode<synchronous>, transform_indices = @transform_2, window_bounds = array<i64: 1, 128>}, {pipeline_mode = #tpu.pipeline_mode<synchronous>, transform_indices = @transform_3, window_bounds = array<i64: 9, 128, 128>}, {pipeline_mode = #tpu.pipeline_mode<synchronous>, transform_indices = @transform_4, window_bounds = array<i64: 1, 128>}, {pipeline_mode = #tpu.pipeline_mode<synchronous>, transform_indices = @transform_5, window_bounds = array<i64: 128, 128>}, {pipeline_mode = #tpu.pipeline_mode<synchronous>, transform_indices = @transform_6, window_bounds = array<i64: 1, 128>}, {transform_indices = @transform_7, window_bounds = array<i64: 1, 24, 256>}]} {
    %cst = arith.constant 0.000000e+00 : f32
    %0 = vector.broadcast %cst : f32 to vector<1x18x128xf32>
    %cst_0 = arith.constant 0.000000e+00 : f32
    %1 = vector.broadcast %cst_0 : f32 to vector<16x1x128xf32>
    %c0 = arith.constant 0 : index
    %c0_1 = arith.constant 0 : index
    %c0_2 = arith.constant 0 : index
    %2 = vector.load %arg9[%c0, %c0_1, %c0_2] : memref<18x18x128xf32, #tpu.memory_space<vmem>>, vector<1x18x128xf32>
    tpu.vector_store %arg9[%c0, %c0_1, %c0_2], %0 {strides = array<i32>} : memref<18x18x128xf32, #tpu.memory_space<vmem>>, vector<1x18x128xf32>,
    %c17 = arith.constant 17 : index
    %c0_3 = arith.constant 0 : index
    %c0_4 = arith.constant 0 : index
    %3 = vector.load %arg9[%c17, %c0_3, %c0_4] : memref<18x18x128xf32, #tpu.memory_space<vmem>>, vector<1x18x128xf32>
    tpu.vector_store %arg9[%c17, %c0_3, %c0_4], %0 {strides = array<i32>} : memref<18x18x128xf32, #tpu.memory_space<vmem>>, vector<1x18x128xf32>,
    %c1 = arith.constant 1 : index
    %c0_5 = arith.constant 0 : index
    %c0_6 = arith.constant 0 : index
    %4 = vector.load %arg9[%c1, %c0_5, %c0_6] : memref<18x18x128xf32, #tpu.memory_space<vmem>>, vector<16x1x128xf32>
    tpu.vector_store %arg9[%c1, %c0_5, %c0_6], %1 {strides = array<i32>} : memref<18x18x128xf32, #tpu.memory_space<vmem>>, vector<16x1x128xf32>,
    %c1_7 = arith.constant 1 : index
    %c17_8 = arith.constant 17 : index
    %c0_9 = arith.constant 0 : index
    %5 = vector.load %arg9[%c1_7, %c17_8, %c0_9] : memref<18x18x128xf32, #tpu.memory_space<vmem>>, vector<16x1x128xf32>
    tpu.vector_store %arg9[%c1_7, %c17_8, %c0_9], %1 {strides = array<i32>} : memref<18x18x128xf32, #tpu.memory_space<vmem>>, vector<16x1x128xf32>,
    %c0_10 = arith.constant 0 : index
    %c0_11 = arith.constant 0 : index
    %c0_12 = arith.constant 0 : index
    %c0_13 = arith.constant 0 : index
    %6 = vector.load %arg1[%c0_10, %c0_11, %c0_12, %c0_13] : memref<1x16x16x128xbf16, #tpu.memory_space<vmem>>, vector<1x16x16x128xbf16>
    %7 = vector.shape_cast %6 : vector<1x16x16x128xbf16> to vector<16x16x128xbf16>
    %8 = arith.extf %7 : vector<16x16x128xbf16> to vector<16x16x128xf32>
    %c1_14 = arith.constant 1 : index
    %c1_15 = arith.constant 1 : index
    %c0_16 = arith.constant 0 : index
    %9 = vector.load %arg9[%c1_14, %c1_15, %c0_16] : memref<18x18x128xf32, #tpu.memory_space<vmem>>, vector<16x16x128xf32>
    tpu.vector_store %arg9[%c1_14, %c1_15, %c0_16], %8 {strides = array<i32>} : memref<18x18x128xf32, #tpu.memory_space<vmem>>, vector<16x16x128xf32>,
    %c0_17 = arith.constant 0 : index
    %c0_18 = arith.constant 0 : index
    %c0_19 = arith.constant 0 : index
    %10 = vector.load %arg9[%c0_17, %c0_18, %c0_19] : memref<18x18x128xf32, #tpu.memory_space<vmem>>, vector<16x16x128xf32>
    %11 = vector.shape_cast %10 : vector<16x16x128xf32> to vector<256x128xf32>
    %12 = arith.truncf %11 : vector<256x128xf32> to vector<256x128xbf16>
    %c0_20 = arith.constant 0 : index
    %c0_21 = arith.constant 0 : index
    %c0_22 = arith.constant 0 : index
    %13 = vector.load %arg2[%c0_20, %c0_21, %c0_22] : memref<9x128x128xbf16, #tpu.memory_space<vmem>>, vector<1x128x128xbf16>
    %14 = vector.shape_cast %13 : vector<1x128x128xbf16> to vector<128x128xbf16>
    %cst_23 = arith.constant dense<0.000000e+00> : vector<256x128xf32>
    %15 = tpu.matmul %12, %14, %cst_23 {dimension_numbers = #tpu.dot_dimension_numbers<[1], [0], [0], [1], [0, 0, 1, 1], [], []>} : vector<256x128xbf16>, vector<128x128xbf16>, vector<256x128xf32> -> vector<256x128xf32>
    %c0_24 = arith.constant 0 : index
    %c1_25 = arith.constant 1 : index
    %c0_26 = arith.constant 0 : index
    %16 = vector.load %arg9[%c0_24, %c1_25, %c0_26] : memref<18x18x128xf32, #tpu.memory_space<vmem>>, vector<16x16x128xf32>
    %17 = vector.shape_cast %16 : vector<16x16x128xf32> to vector<256x128xf32>
    %18 = arith.truncf %17 : vector<256x128xf32> to vector<256x128xbf16>
    %c1_27 = arith.constant 1 : index
    %c0_28 = arith.constant 0 : index
    %c0_29 = arith.constant 0 : index
    %19 = vector.load %arg2[%c1_27, %c0_28, %c0_29] : memref<9x128x128xbf16, #tpu.memory_space<vmem>>, vector<1x128x128xbf16>
    %20 = vector.shape_cast %19 : vector<1x128x128xbf16> to vector<128x128xbf16>
    %cst_30 = arith.constant dense<0.000000e+00> : vector<256x128xf32>
    %21 = tpu.matmul %18, %20, %cst_30 {dimension_numbers = #tpu.dot_dimension_numbers<[1], [0], [0], [1], [0, 0, 1, 1], [], []>} : vector<256x128xbf16>, vector<128x128xbf16>, vector<256x128xf32> -> vector<256x128xf32>
    %22 = arith.addf %15, %21 : vector<256x128xf32>
    %c0_31 = arith.constant 0 : index
    %c2 = arith.constant 2 : index
    %c0_32 = arith.constant 0 : index
    %23 = vector.load %arg9[%c0_31, %c2, %c0_32] : memref<18x18x128xf32, #tpu.memory_space<vmem>>, vector<16x16x128xf32>
    %24 = vector.shape_cast %23 : vector<16x16x128xf32> to vector<256x128xf32>
    %25 = arith.truncf %24 : vector<256x128xf32> to vector<256x128xbf16>
    %c2_33 = arith.constant 2 : index
    %c0_34 = arith.constant 0 : index
    %c0_35 = arith.constant 0 : index
    %26 = vector.load %arg2[%c2_33, %c0_34, %c0_35] : memref<9x128x128xbf16, #tpu.memory_space<vmem>>, vector<1x128x128xbf16>
    %27 = vector.shape_cast %26 : vector<1x128x128xbf16> to vector<128x128xbf16>
    %cst_36 = arith.constant dense<0.000000e+00> : vector<256x128xf32>
    %28 = tpu.matmul %25, %27, %cst_36 {dimension_numbers = #tpu.dot_dimension_numbers<[1], [0], [0], [1], [0, 0, 1, 1], [], []>} : vector<256x128xbf16>, vector<128x128xbf16>, vector<256x128xf32> -> vector<256x128xf32>
    %29 = arith.addf %22, %28 : vector<256x128xf32>
    %c1_37 = arith.constant 1 : index
    %c0_38 = arith.constant 0 : index
    %c0_39 = arith.constant 0 : index
    %30 = vector.load %arg9[%c1_37, %c0_38, %c0_39] : memref<18x18x128xf32, #tpu.memory_space<vmem>>, vector<16x16x128xf32>
    %31 = vector.shape_cast %30 : vector<16x16x128xf32> to vector<256x128xf32>
    %32 = arith.truncf %31 : vector<256x128xf32> to vector<256x128xbf16>
    %c3 = arith.constant 3 : index
    %c0_40 = arith.constant 0 : index
    %c0_41 = arith.constant 0 : index
    %33 = vector.load %arg2[%c3, %c0_40, %c0_41] : memref<9x128x128xbf16, #tpu.memory_space<vmem>>, vector<1x128x128xbf16>
    %34 = vector.shape_cast %33 : vector<1x128x128xbf16> to vector<128x128xbf16>
    %cst_42 = arith.constant dense<0.000000e+00> : vector<256x128xf32>
    %35 = tpu.matmul %32, %34, %cst_42 {dimension_numbers = #tpu.dot_dimension_numbers<[1], [0], [0], [1], [0, 0, 1, 1], [], []>} : vector<256x128xbf16>, vector<128x128xbf16>, vector<256x128xf32> -> vector<256x128xf32>
    %36 = arith.addf %29, %35 : vector<256x128xf32>
    %c1_43 = arith.constant 1 : index
    %c1_44 = arith.constant 1 : index
    %c0_45 = arith.constant 0 : index
    %37 = vector.load %arg9[%c1_43, %c1_44, %c0_45] : memref<18x18x128xf32, #tpu.memory_space<vmem>>, vector<16x16x128xf32>
    %38 = vector.shape_cast %37 : vector<16x16x128xf32> to vector<256x128xf32>
    %39 = arith.truncf %38 : vector<256x128xf32> to vector<256x128xbf16>
    %c4 = arith.constant 4 : index
    %c0_46 = arith.constant 0 : index
    %c0_47 = arith.constant 0 : index
    %40 = vector.load %arg2[%c4, %c0_46, %c0_47] : memref<9x128x128xbf16, #tpu.memory_space<vmem>>, vector<1x128x128xbf16>
    %41 = vector.shape_cast %40 : vector<1x128x128xbf16> to vector<128x128xbf16>
    %cst_48 = arith.constant dense<0.000000e+00> : vector<256x128xf32>
    %42 = tpu.matmul %39, %41, %cst_48 {dimension_numbers = #tpu.dot_dimension_numbers<[1], [0], [0], [1], [0, 0, 1, 1], [], []>} : vector<256x128xbf16>, vector<128x128xbf16>, vector<256x128xf32> -> vector<256x128xf32>
    %43 = arith.addf %36, %42 : vector<256x128xf32>
    %c1_49 = arith.constant 1 : index
    %c2_50 = arith.constant 2 : index
    %c0_51 = arith.constant 0 : index
    %44 = vector.load %arg9[%c1_49, %c2_50, %c0_51] : memref<18x18x128xf32, #tpu.memory_space<vmem>>, vector<16x16x128xf32>
    %45 = vector.shape_cast %44 : vector<16x16x128xf32> to vector<256x128xf32>
    %46 = arith.truncf %45 : vector<256x128xf32> to vector<256x128xbf16>
    %c5 = arith.constant 5 : index
    %c0_52 = arith.constant 0 : index
    %c0_53 = arith.constant 0 : index
    %47 = vector.load %arg2[%c5, %c0_52, %c0_53] : memref<9x128x128xbf16, #tpu.memory_space<vmem>>, vector<1x128x128xbf16>
    %48 = vector.shape_cast %47 : vector<1x128x128xbf16> to vector<128x128xbf16>
    %cst_54 = arith.constant dense<0.000000e+00> : vector<256x128xf32>
    %49 = tpu.matmul %46, %48, %cst_54 {dimension_numbers = #tpu.dot_dimension_numbers<[1], [0], [0], [1], [0, 0, 1, 1], [], []>} : vector<256x128xbf16>, vector<128x128xbf16>, vector<256x128xf32> -> vector<256x128xf32>
    %50 = arith.addf %43, %49 : vector<256x128xf32>
    %c2_55 = arith.constant 2 : index
    %c0_56 = arith.constant 0 : index
    %c0_57 = arith.constant 0 : index
    %51 = vector.load %arg9[%c2_55, %c0_56, %c0_57] : memref<18x18x128xf32, #tpu.memory_space<vmem>>, vector<16x16x128xf32>
    %52 = vector.shape_cast %51 : vector<16x16x128xf32> to vector<256x128xf32>
    %53 = arith.truncf %52 : vector<256x128xf32> to vector<256x128xbf16>
    %c6 = arith.constant 6 : index
    %c0_58 = arith.constant 0 : index
    %c0_59 = arith.constant 0 : index
    %54 = vector.load %arg2[%c6, %c0_58, %c0_59] : memref<9x128x128xbf16, #tpu.memory_space<vmem>>, vector<1x128x128xbf16>
    %55 = vector.shape_cast %54 : vector<1x128x128xbf16> to vector<128x128xbf16>
    %cst_60 = arith.constant dense<0.000000e+00> : vector<256x128xf32>
    %56 = tpu.matmul %53, %55, %cst_60 {dimension_numbers = #tpu.dot_dimension_numbers<[1], [0], [0], [1], [0, 0, 1, 1], [], []>} : vector<256x128xbf16>, vector<128x128xbf16>, vector<256x128xf32> -> vector<256x128xf32>
    %57 = arith.addf %50, %56 : vector<256x128xf32>
    %c2_61 = arith.constant 2 : index
    %c1_62 = arith.constant 1 : index
    %c0_63 = arith.constant 0 : index
    %58 = vector.load %arg9[%c2_61, %c1_62, %c0_63] : memref<18x18x128xf32, #tpu.memory_space<vmem>>, vector<16x16x128xf32>
    %59 = vector.shape_cast %58 : vector<16x16x128xf32> to vector<256x128xf32>
    %60 = arith.truncf %59 : vector<256x128xf32> to vector<256x128xbf16>
    %c7 = arith.constant 7 : index
    %c0_64 = arith.constant 0 : index
    %c0_65 = arith.constant 0 : index
    %61 = vector.load %arg2[%c7, %c0_64, %c0_65] : memref<9x128x128xbf16, #tpu.memory_space<vmem>>, vector<1x128x128xbf16>
    %62 = vector.shape_cast %61 : vector<1x128x128xbf16> to vector<128x128xbf16>
    %cst_66 = arith.constant dense<0.000000e+00> : vector<256x128xf32>
    %63 = tpu.matmul %60, %62, %cst_66 {dimension_numbers = #tpu.dot_dimension_numbers<[1], [0], [0], [1], [0, 0, 1, 1], [], []>} : vector<256x128xbf16>, vector<128x128xbf16>, vector<256x128xf32> -> vector<256x128xf32>
    %64 = arith.addf %57, %63 : vector<256x128xf32>
    %c2_67 = arith.constant 2 : index
    %c2_68 = arith.constant 2 : index
    %c0_69 = arith.constant 0 : index
    %65 = vector.load %arg9[%c2_67, %c2_68, %c0_69] : memref<18x18x128xf32, #tpu.memory_space<vmem>>, vector<16x16x128xf32>
    %66 = vector.shape_cast %65 : vector<16x16x128xf32> to vector<256x128xf32>
    %67 = arith.truncf %66 : vector<256x128xf32> to vector<256x128xbf16>
    %c8 = arith.constant 8 : index
    %c0_70 = arith.constant 0 : index
    %c0_71 = arith.constant 0 : index
    %68 = vector.load %arg2[%c8, %c0_70, %c0_71] : memref<9x128x128xbf16, #tpu.memory_space<vmem>>, vector<1x128x128xbf16>
    %69 = vector.shape_cast %68 : vector<1x128x128xbf16> to vector<128x128xbf16>
    %cst_72 = arith.constant dense<0.000000e+00> : vector<256x128xf32>
    %70 = tpu.matmul %67, %69, %cst_72 {dimension_numbers = #tpu.dot_dimension_numbers<[1], [0], [0], [1], [0, 0, 1, 1], [], []>} : vector<256x128xbf16>, vector<128x128xbf16>, vector<256x128xf32> -> vector<256x128xf32>
    %71 = arith.addf %64, %70 : vector<256x128xf32>
    %c0_73 = arith.constant 0 : index
    %c0_74 = arith.constant 0 : index
    %72 = vector.load %arg3[%c0_73, %c0_74] : memref<1x128xf32, #tpu.memory_space<vmem>>, vector<1x128xf32>
    %73 = vector.broadcast %72 : vector<1x128xf32> to vector<256x128xf32>
    %74 = arith.addf %71, %73 : vector<256x128xf32>
    %cst_75 = arith.constant 0.000000e+00 : f32
    %75 = vector.broadcast %cst_75 : f32 to vector<256x128xf32>
    %76 = arith.maximumf %74, %75 : vector<256x128xf32>
    %77 = vector.shape_cast %76 : vector<256x128xf32> to vector<16x16x128xf32>
    %c1_76 = arith.constant 1 : index
    %c1_77 = arith.constant 1 : index
    %c0_78 = arith.constant 0 : index
    %78 = vector.load %arg9[%c1_76, %c1_77, %c0_78] : memref<18x18x128xf32, #tpu.memory_space<vmem>>, vector<16x16x128xf32>
    tpu.vector_store %arg9[%c1_76, %c1_77, %c0_78], %77 {strides = array<i32>} : memref<18x18x128xf32, #tpu.memory_space<vmem>>, vector<16x16x128xf32>,
    %c0_79 = arith.constant 0 : index
    %c0_80 = arith.constant 0 : index
    %c0_81 = arith.constant 0 : index
    %c0_82 = arith.constant 0 : index
    %79 = vector.load %arg1[%c0_79, %c0_80, %c0_81, %c0_82] : memref<1x16x16x128xbf16, #tpu.memory_space<vmem>>, vector<1x16x16x128xbf16>
    %80 = vector.shape_cast %79 : vector<1x16x16x128xbf16> to vector<16x16x128xbf16>
    %81 = vector.shape_cast %80 : vector<16x16x128xbf16> to vector<256x128xbf16>
    %82 = arith.extf %81 : vector<256x128xbf16> to vector<256x128xf32>
    %c0_83 = arith.constant 0 : index
    %c0_84 = arith.constant 0 : index
    %c0_85 = arith.constant 0 : index
    %83 = vector.load %arg9[%c0_83, %c0_84, %c0_85] : memref<18x18x128xf32, #tpu.memory_space<vmem>>, vector<16x16x128xf32>
    %84 = vector.shape_cast %83 : vector<16x16x128xf32> to vector<256x128xf32>
    %85 = arith.truncf %84 : vector<256x128xf32> to vector<256x128xbf16>
    %c0_86 = arith.constant 0 : index
    %c0_87 = arith.constant 0 : index
    %c0_88 = arith.constant 0 : index
    %86 = vector.load %arg4[%c0_86, %c0_87, %c0_88] : memref<9x128x128xbf16, #tpu.memory_space<vmem>>, vector<1x128x128xbf16>
    %87 = vector.shape_cast %86 : vector<1x128x128xbf16> to vector<128x128xbf16>
    %cst_89 = arith.constant dense<0.000000e+00> : vector<256x128xf32>
    %88 = tpu.matmul %85, %87, %cst_89 {dimension_numbers = #tpu.dot_dimension_numbers<[1], [0], [0], [1], [0, 0, 1, 1], [], []>} : vector<256x128xbf16>, vector<128x128xbf16>, vector<256x128xf32> -> vector<256x128xf32>
    %c0_90 = arith.constant 0 : index
    %c1_91 = arith.constant 1 : index
    %c0_92 = arith.constant 0 : index
    %89 = vector.load %arg9[%c0_90, %c1_91, %c0_92] : memref<18x18x128xf32, #tpu.memory_space<vmem>>, vector<16x16x128xf32>
    %90 = vector.shape_cast %89 : vector<16x16x128xf32> to vector<256x128xf32>
    %91 = arith.truncf %90 : vector<256x128xf32> to vector<256x128xbf16>
    %c1_93 = arith.constant 1 : index
    %c0_94 = arith.constant 0 : index
    %c0_95 = arith.constant 0 : index
    %92 = vector.load %arg4[%c1_93, %c0_94, %c0_95] : memref<9x128x128xbf16, #tpu.memory_space<vmem>>, vector<1x128x128xbf16>
    %93 = vector.shape_cast %92 : vector<1x128x128xbf16> to vector<128x128xbf16>
    %cst_96 = arith.constant dense<0.000000e+00> : vector<256x128xf32>
    %94 = tpu.matmul %91, %93, %cst_96 {dimension_numbers = #tpu.dot_dimension_numbers<[1], [0], [0], [1], [0, 0, 1, 1], [], []>} : vector<256x128xbf16>, vector<128x128xbf16>, vector<256x128xf32> -> vector<256x128xf32>
    %95 = arith.addf %88, %94 : vector<256x128xf32>
    %c0_97 = arith.constant 0 : index
    %c2_98 = arith.constant 2 : index
    %c0_99 = arith.constant 0 : index
    %96 = vector.load %arg9[%c0_97, %c2_98, %c0_99] : memref<18x18x128xf32, #tpu.memory_space<vmem>>, vector<16x16x128xf32>
    %97 = vector.shape_cast %96 : vector<16x16x128xf32> to vector<256x128xf32>
    %98 = arith.truncf %97 : vector<256x128xf32> to vector<256x128xbf16>
    %c2_100 = arith.constant 2 : index
    %c0_101 = arith.constant 0 : index
    %c0_102 = arith.constant 0 : index
    %99 = vector.load %arg4[%c2_100, %c0_101, %c0_102] : memref<9x128x128xbf16, #tpu.memory_space<vmem>>, vector<1x128x128xbf16>
    %100 = vector.shape_cast %99 : vector<1x128x128xbf16> to vector<128x128xbf16>
    %cst_103 = arith.constant dense<0.000000e+00> : vector<256x128xf32>
    %101 = tpu.matmul %98, %100, %cst_103 {dimension_numbers = #tpu.dot_dimension_numbers<[1], [0], [0], [1], [0, 0, 1, 1], [], []>} : vector<256x128xbf16>, vector<128x128xbf16>, vector<256x128xf32> -> vector<256x128xf32>
    %102 = arith.addf %95, %101 : vector<256x128xf32>
    %c1_104 = arith.constant 1 : index
    %c0_105 = arith.constant 0 : index
    %c0_106 = arith.constant 0 : index
    %103 = vector.load %arg9[%c1_104, %c0_105, %c0_106] : memref<18x18x128xf32, #tpu.memory_space<vmem>>, vector<16x16x128xf32>
    %104 = vector.shape_cast %103 : vector<16x16x128xf32> to vector<256x128xf32>
    %105 = arith.truncf %104 : vector<256x128xf32> to vector<256x128xbf16>
    %c3_107 = arith.constant 3 : index
    %c0_108 = arith.constant 0 : index
    %c0_109 = arith.constant 0 : index
    %106 = vector.load %arg4[%c3_107, %c0_108, %c0_109] : memref<9x128x128xbf16, #tpu.memory_space<vmem>>, vector<1x128x128xbf16>
    %107 = vector.shape_cast %106 : vector<1x128x128xbf16> to vector<128x128xbf16>
    %cst_110 = arith.constant dense<0.000000e+00> : vector<256x128xf32>
    %108 = tpu.matmul %105, %107, %cst_110 {dimension_numbers = #tpu.dot_dimension_numbers<[1], [0], [0], [1], [0, 0, 1, 1], [], []>} : vector<256x128xbf16>, vector<128x128xbf16>, vector<256x128xf32> -> vector<256x128xf32>
    %109 = arith.addf %102, %108 : vector<256x128xf32>
    %c1_111 = arith.constant 1 : index
    %c1_112 = arith.constant 1 : index
    %c0_113 = arith.constant 0 : index
    %110 = vector.load %arg9[%c1_111, %c1_112, %c0_113] : memref<18x18x128xf32, #tpu.memory_space<vmem>>, vector<16x16x128xf32>
    %111 = vector.shape_cast %110 : vector<16x16x128xf32> to vector<256x128xf32>
    %112 = arith.truncf %111 : vector<256x128xf32> to vector<256x128xbf16>
    %c4_114 = arith.constant 4 : index
    %c0_115 = arith.constant 0 : index
    %c0_116 = arith.constant 0 : index
    %113 = vector.load %arg4[%c4_114, %c0_115, %c0_116] : memref<9x128x128xbf16, #tpu.memory_space<vmem>>, vector<1x128x128xbf16>
    %114 = vector.shape_cast %113 : vector<1x128x128xbf16> to vector<128x128xbf16>
    %cst_117 = arith.constant dense<0.000000e+00> : vector<256x128xf32>
    %115 = tpu.matmul %112, %114, %cst_117 {dimension_numbers = #tpu.dot_dimension_numbers<[1], [0], [0], [1], [0, 0, 1, 1], [], []>} : vector<256x128xbf16>, vector<128x128xbf16>, vector<256x128xf32> -> vector<256x128xf32>
    %116 = arith.addf %109, %115 : vector<256x128xf32>
    %c1_118 = arith.constant 1 : index
    %c2_119 = arith.constant 2 : index
    %c0_120 = arith.constant 0 : index
    %117 = vector.load %arg9[%c1_118, %c2_119, %c0_120] : memref<18x18x128xf32, #tpu.memory_space<vmem>>, vector<16x16x128xf32>
    %118 = vector.shape_cast %117 : vector<16x16x128xf32> to vector<256x128xf32>
    %119 = arith.truncf %118 : vector<256x128xf32> to vector<256x128xbf16>
    %c5_121 = arith.constant 5 : index
    %c0_122 = arith.constant 0 : index
    %c0_123 = arith.constant 0 : index
    %120 = vector.load %arg4[%c5_121, %c0_122, %c0_123] : memref<9x128x128xbf16, #tpu.memory_space<vmem>>, vector<1x128x128xbf16>
    %121 = vector.shape_cast %120 : vector<1x128x128xbf16> to vector<128x128xbf16>
    %cst_124 = arith.constant dense<0.000000e+00> : vector<256x128xf32>
    %122 = tpu.matmul %119, %121, %cst_124 {dimension_numbers = #tpu.dot_dimension_numbers<[1], [0], [0], [1], [0, 0, 1, 1], [], []>} : vector<256x128xbf16>, vector<128x128xbf16>, vector<256x128xf32> -> vector<256x128xf32>
    %123 = arith.addf %116, %122 : vector<256x128xf32>
    %c2_125 = arith.constant 2 : index
    %c0_126 = arith.constant 0 : index
    %c0_127 = arith.constant 0 : index
    %124 = vector.load %arg9[%c2_125, %c0_126, %c0_127] : memref<18x18x128xf32, #tpu.memory_space<vmem>>, vector<16x16x128xf32>
    %125 = vector.shape_cast %124 : vector<16x16x128xf32> to vector<256x128xf32>
    %126 = arith.truncf %125 : vector<256x128xf32> to vector<256x128xbf16>
    %c6_128 = arith.constant 6 : index
    %c0_129 = arith.constant 0 : index
    %c0_130 = arith.constant 0 : index
    %127 = vector.load %arg4[%c6_128, %c0_129, %c0_130] : memref<9x128x128xbf16, #tpu.memory_space<vmem>>, vector<1x128x128xbf16>
    %128 = vector.shape_cast %127 : vector<1x128x128xbf16> to vector<128x128xbf16>
    %cst_131 = arith.constant dense<0.000000e+00> : vector<256x128xf32>
    %129 = tpu.matmul %126, %128, %cst_131 {dimension_numbers = #tpu.dot_dimension_numbers<[1], [0], [0], [1], [0, 0, 1, 1], [], []>} : vector<256x128xbf16>, vector<128x128xbf16>, vector<256x128xf32> -> vector<256x128xf32>
    %130 = arith.addf %123, %129 : vector<256x128xf32>
    %c2_132 = arith.constant 2 : index
    %c1_133 = arith.constant 1 : index
    %c0_134 = arith.constant 0 : index
    %131 = vector.load %arg9[%c2_132, %c1_133, %c0_134] : memref<18x18x128xf32, #tpu.memory_space<vmem>>, vector<16x16x128xf32>
    %132 = vector.shape_cast %131 : vector<16x16x128xf32> to vector<256x128xf32>
    %133 = arith.truncf %132 : vector<256x128xf32> to vector<256x128xbf16>
    %c7_135 = arith.constant 7 : index
    %c0_136 = arith.constant 0 : index
    %c0_137 = arith.constant 0 : index
    %134 = vector.load %arg4[%c7_135, %c0_136, %c0_137] : memref<9x128x128xbf16, #tpu.memory_space<vmem>>, vector<1x128x128xbf16>
    %135 = vector.shape_cast %134 : vector<1x128x128xbf16> to vector<128x128xbf16>
    %cst_138 = arith.constant dense<0.000000e+00> : vector<256x128xf32>
    %136 = tpu.matmul %133, %135, %cst_138 {dimension_numbers = #tpu.dot_dimension_numbers<[1], [0], [0], [1], [0, 0, 1, 1], [], []>} : vector<256x128xbf16>, vector<128x128xbf16>, vector<256x128xf32> -> vector<256x128xf32>
    %137 = arith.addf %130, %136 : vector<256x128xf32>
    %c2_139 = arith.constant 2 : index
    %c2_140 = arith.constant 2 : index
    %c0_141 = arith.constant 0 : index
    %138 = vector.load %arg9[%c2_139, %c2_140, %c0_141] : memref<18x18x128xf32, #tpu.memory_space<vmem>>, vector<16x16x128xf32>
    %139 = vector.shape_cast %138 : vector<16x16x128xf32> to vector<256x128xf32>
    %140 = arith.truncf %139 : vector<256x128xf32> to vector<256x128xbf16>
    %c8_142 = arith.constant 8 : index
    %c0_143 = arith.constant 0 : index
    %c0_144 = arith.constant 0 : index
    %141 = vector.load %arg4[%c8_142, %c0_143, %c0_144] : memref<9x128x128xbf16, #tpu.memory_space<vmem>>, vector<1x128x128xbf16>
    %142 = vector.shape_cast %141 : vector<1x128x128xbf16> to vector<128x128xbf16>
    %cst_145 = arith.constant dense<0.000000e+00> : vector<256x128xf32>
    %143 = tpu.matmul %140, %142, %cst_145 {dimension_numbers = #tpu.dot_dimension_numbers<[1], [0], [0], [1], [0, 0, 1, 1], [], []>} : vector<256x128xbf16>, vector<128x128xbf16>, vector<256x128xf32> -> vector<256x128xf32>
    %144 = arith.addf %137, %143 : vector<256x128xf32>
    %c0_146 = arith.constant 0 : index
    %c0_147 = arith.constant 0 : index
    %145 = vector.load %arg5[%c0_146, %c0_147] : memref<1x128xf32, #tpu.memory_space<vmem>>, vector<1x128xf32>
    %146 = vector.broadcast %145 : vector<1x128xf32> to vector<256x128xf32>
    %147 = arith.addf %144, %146 : vector<256x128xf32>
    %148 = arith.addf %147, %82 : vector<256x128xf32>
    %cst_148 = arith.constant 0.000000e+00 : f32
    %149 = vector.broadcast %cst_148 : f32 to vector<256x128xf32>
    %150 = arith.maximumf %148, %149 : vector<256x128xf32>
    %151 = arith.truncf %150 : vector<256x128xf32> to vector<256x128xbf16>
    %c0_149 = arith.constant 0 : index
    %c0_150 = arith.constant 0 : index
    %152 = vector.load %arg6[%c0_149, %c0_150] : memref<128x128xbf16, #tpu.memory_space<vmem>>, vector<128x128xbf16>
    %cst_151 = arith.constant dense<0.000000e+00> : vector<256x128xf32>
    %153 = tpu.matmul %151, %152, %cst_151 {dimension_numbers = #tpu.dot_dimension_numbers<[1], [0], [0], [1], [0, 0, 1, 1], [], []>} : vector<256x128xbf16>, vector<128x128xbf16>, vector<256x128xf32> -> vector<256x128xf32>
    %c0_152 = arith.constant 0 : index
    %c0_153 = arith.constant 0 : index
    %154 = vector.load %arg7[%c0_152, %c0_153] : memref<1x128xf32, #tpu.memory_space<vmem>>, vector<1x128xf32>
    %155 = vector.broadcast %154 : vector<1x128xf32> to vector<256x128xf32>
    %156 = arith.addf %153, %155 : vector<256x128xf32>
    %157 = tpu.iota {dimensions = array<i32: 1>} : vector<256x128xi32>
    %c19_i32 = arith.constant 19 : i32
    %158 = vector.broadcast %c19_i32 : i32 to vector<256x128xi32>
    %159 = arith.cmpi slt, %157, %158 : vector<256x128xi32>
    %cst_154 = arith.constant -1.000000e+30 : f32
    %160 = vector.broadcast %cst_154 : f32 to vector<256x128xf32>
    %161 = arith.select %159, %156, %160 : vector<256x128xi1>, vector<256x128xf32>
    %cst_155 = arith.constant dense<0xFF800000> : vector<256xf32>
    %162 = vector.multi_reduction <maximumf>, %161, %cst_155 [1] : vector<256x128xf32> to vector<256xf32>
    %163 = vector.shape_cast %162 : vector<256xf32> to vector<256x1xf32>
    %164 = vector.broadcast %163 : vector<256x1xf32> to vector<256x128xf32>
    %165 = arith.subf %161, %164 : vector<256x128xf32>
    %166 = math.exp %165 : vector<256x128xf32>
    %cst_156 = arith.constant dense<0.000000e+00> : vector<256xf32>
    %167 = vector.multi_reduction <add>, %166, %cst_156 [1] : vector<256x128xf32> to vector<256xf32>
    %168 = vector.shape_cast %167 : vector<256xf32> to vector<256x1xf32>
    %169 = math.log %168 : vector<256x1xf32>
    %170 = vector.broadcast %169 : vector<256x1xf32> to vector<256x128xf32>
    %171 = arith.subf %165, %170 : vector<256x128xf32>
    %172 = tpu.transpose %171, [1, 0] : vector<256x128xf32> -> vector<128x256xf32>
    %173 = vector.extract_strided_slice %172 {offsets = [0, 0], sizes = [24, 256], strides = [1, 1]} : vector<128x256xf32> to vector<24x256xf32>
    %c0_157 = arith.constant 0 : index
    %c0_158 = arith.constant 0 : index
    %c0_159 = arith.constant 0 : index
    %174 = vector.load %arg8[%c0_157, %c0_158, %c0_159] : memref<1x24x256xf32, #tpu.memory_space<vmem>>, vector<1x24x256xf32>
    %175 = vector.shape_cast %174 : vector<1x24x256xf32> to vector<24x256xf32>
    %176 = vector.shape_cast %173 : vector<24x256xf32> to vector<1x24x256xf32>
    tpu.vector_store %arg8[%c0_157, %c0_158, %c0_159], %176 {strides = array<i32>} : memref<1x24x256xf32, #tpu.memory_space<vmem>>, vector<1x24x256xf32>,
    return
  }
  func.func @transform_0(%arg0: i32) -> (i32, i32, i32, i32) {
    %c0_i32 = arith.constant 0 : i32
    %c0_i32_0 = arith.constant 0 : i32
    %c0_i32_1 = arith.constant 0 : i32
    %c0_i32_2 = arith.constant 0 : i32
    return %arg0, %c0_i32, %c0_i32_0, %c0_i32_1 : i32, i32, i32, i32
  }
  func.func @transform_1(%arg0: i32) -> (i32, i32, i32) {
    %c0_i32 = arith.constant 0 : i32
    %c0_i32_0 = arith.constant 0 : i32
    %c0_i32_1 = arith.constant 0 : i32
    %c0_i32_2 = arith.constant 0 : i32
    return %c0_i32, %c0_i32_0, %c0_i32_1 : i32, i32, i32
  }
  func.func @transform_2(%arg0: i32) -> (i32, i32) {
    %c0_i32 = arith.constant 0 : i32
    %c0_i32_0 = arith.constant 0 : i32
    %c0_i32_1 = arith.constant 0 : i32
    return %c0_i32, %c0_i32_0 : i32, i32
  }
  func.func @transform_3(%arg0: i32) -> (i32, i32, i32) {
    %c0_i32 = arith.constant 0 : i32
    %c0_i32_0 = arith.constant 0 : i32
    %c0_i32_1 = arith.constant 0 : i32
    %c0_i32_2 = arith.constant 0 : i32
    return %c0_i32, %c0_i32_0, %c0_i32_1 : i32, i32, i32
  }
  func.func @transform_4(%arg0: i32) -> (i32, i32) {
    %c0_i32 = arith.constant 0 : i32
    %c0_i32_0 = arith.constant 0 : i32
    %c0_i32_1 = arith.constant 0 : i32
    return %c0_i32, %c0_i32_0 : i32, i32
  }
  func.func @transform_5(%arg0: i32) -> (i32, i32) {
    %c0_i32 = arith.constant 0 : i32
    %c0_i32_0 = arith.constant 0 : i32
    %c0_i32_1 = arith.constant 0 : i32
    return %c0_i32, %c0_i32_0 : i32, i32
  }
  func.func @transform_6(%arg0: i32) -> (i32, i32) {
    %c0_i32 = arith.constant 0 : i32
    %c0_i32_0 = arith.constant 0 : i32
    %c0_i32_1 = arith.constant 0 : i32
    return %c0_i32, %c0_i32_0 : i32, i32
  }
  func.func @transform_7(%arg0: i32) -> (i32, i32, i32) {
    %c0_i32 = arith.constant 0 : i32
    %c0_i32_0 = arith.constant 0 : i32
    %c0_i32_1 = arith.constant 0 : i32
    return %arg0, %c0_i32, %c0_i32_0 : i32, i32, i32
  }
}

</mosaic_0001>

<bundles_post_ra>
// kernel: net1_forward.1
= control target key start
LH: loop header
LB: loop body
LE: loop exit
PB: predicated region body
PF: predicated region fallthrough
CT: control target
= control target key end

     0   :  { %s9123_s24 = smov 0   ;;  %s11564_s0 = inlined_call_operand.vmem [shape: bf16[2,16,16,128], index: 0, kind: input, shape index: {}]   ;;  %s11565_s1 = inlined_call_operand.vmem [shape: bf16[9,128,128], index: 1, kind: input, shape index: {}]   ;;  %s11566_s2 = inlined_call_operand.vmem [shape: f32[1,128], index: 2, kind: input, shape index: {}]   ;;  %s11567_s3 = inlined_call_operand.vmem [shape: bf16[9,128,128], index: 3, kind: input, shape index: {}]   ;;  %s11568_s4 = inlined_call_operand.vmem [shape: f32[1,128], index: 4, kind: input, shape index: {}]   ;;  %s11569_s5 = inlined_call_operand.vmem [shape: bf16[128,128], index: 5, kind: input, shape index: {}]   ;;  %s11570_s6 = inlined_call_operand.vmem [shape: f32[1,128], index: 6, kind: input, shape index: {}]   ;;  %s11571_s7 = inlined_call_operand.vmem [shape: f32[2,24,256], index: 7, kind: output, shape index: {}]  }
   0x1 LB: > { %s6793_s25 = sadd.s32 4294967295, %s9079_s24   ;;  %p6797_p0 = scmp.ge.s32.totalorder %s9079_s24, 1  ;;  %s9079_s24 = sphi %s9123_s24, %s17_s24  }
   0x2   : > { %p237_p1 = scmp.lt.s32.totalorder %s9079_s24, 3 }
   0x4   : > { %p238_p2 = pnand %p6797_p0, %p237_p1 }
   0x6   : > { %241 = sbr.rel (%p238_p2) target bundleno = 1628 (0x65c), region = 48 }
   0xb   : > { %v8767_v0 = vld [vmem:[%s11565_s1 + $0x78] sm:$0xff]   ;;  %v8768_v1 = vld [vmem:[%s11565_s1 + $0x70] sm:$0xff]   ;;  %v9081_v2 = vmov 0.0   ;;  %p269_p3 = scmp.lt.s32.totalorder %s6793_s25, 1  ;;  %v8769_v3 = vld [vmem:[%s11565_s1 + $0x68] sm:$0xff]  }
   0xc   : > { %280 = vst [vmem:[#allocation2] sm:$0xff] %v9081_v2  ;;  %281 = vst [vmem:[#allocation2 + $0x8] sm:$0xff] %v9081_v2  ;;  %7829 = vmatprep.subr.bf16.mxu0 %v8767_v0  ;;  %8741 = vmatprep.subr.bf16.mxu1 %v8767_v0  ;;  %v8770_v4 = vld [vmem:[%s11565_s1 + $0x60] sm:$0xff]   ;;  %v8771_v18 = vld [vmem:[%s11565_s1 + $0x58] sm:$0xff]  }
   0xd   : > { %282 = vst [vmem:[#allocation2 + $0x10] sm:$0x3] %v9081_v2  ;;  %284 = vst [vmem:[#allocation2 + $0x198] sm:$0xff] %v9081_v2  ;;  %7830 = vmatpush3.bf16.msra.mxu0 %v8767_v0  ;;  %8749 = vmatpush3.bf16.msra.mxu1 %v8767_v0  ;;  %s11739_s25 = smov (!%p269_p3, %s6793_s25), 1  ;;  %v8772_v23 = vld [vmem:[%s11565_s1 + $0x50] sm:$0xff]   ;;  %v8773_v32 = vld [vmem:[%s11565_s1 + $0x48] sm:$0xff]  }
   0xe   : > { %285 = vst [vmem:[#allocation2 + $0x1a0] sm:$0xff] %v9081_v2  ;;  %286 = vst [vmem:[#allocation2 + $0x1a8] sm:$0x3] %v9081_v2  ;;  %7831 = vmatprep.subr.bf16.mxu0 %v8768_v1  ;;  %8742 = vmatprep.subr.bf16.mxu1 %v8768_v1  ;;  %s7214_s9 = sshll.u32 %s11739_s25, 7  ;;  %v8774_v43 = vld [vmem:[%s11565_s1 + $0x40] sm:$0xff]   ;;  %v8778_v46 = vld [vmem:[%s11565_s1 + $0x38] sm:$0xff]  }
   0xf   : > { %288 = vst [vmem:[#allocation2 + $0x18] sm:$0x1] %v9081_v2  ;;  %289 = vst [vmem:[#allocation2 + $0x30] sm:$0x1] %v9081_v2  ;;  %s9150_s12 = scalar_lea.vmem %s11564_s0, %s7214_s9  ;;  %v8779_v47 = vld [vmem:[%s11565_s1 + $0xb8] sm:$0xff]   ;;  %v8780_v57 = vld [vmem:[%s11565_s1 + $0x30] sm:$0xff]  }
  0x10   : > { %290 = vst [vmem:[#allocation2 + $0x48] sm:$0x1] %v9081_v2  ;;  %291 = vst [vmem:[#allocation2 + $0x60] sm:$0x1] %v9081_v2  ;;  %v7349_v7 = vld [vmem:[%s9150_s12 + $0x38] sm:$0xff]   ;;  %v7216_v12 = vld [vmem:[%s9150_s12] sm:$0xff]  }
  0x11   : > { %292 = vst [vmem:[#allocation2 + $0x78] sm:$0x1] %v9081_v2  ;;  %293 = vst [vmem:[#allocation2 + $0x90] sm:$0x1] %v9081_v2  ;;  %7832 = vmatpush3.bf16.msra.mxu0 %v8768_v1  ;;  %8750 = vmatpush3.bf16.msra.mxu1 %v8768_v1  ;;  %v7245_v9 = vunpack.c.l.bf16 %v7349_v7  ;;  %v7246_v10 = vunpack.c.h.bf16 %v7349_v7  ;;  %v8775_v11 = vld [vmem:[%s9150_s12 + $0x38] sm:$0xff]  ;;  %v7217_v13 = vunpack.c.l.bf16 %v7216_v12  ;;  %v7218_v14 = vunpack.c.h.bf16 %v7216_v12  ;;  %v7350_v15 = vld [vmem:[%s9150_s12 + $0x40] sm:$0xff]  }
  0x12   : > { %294 = vst [vmem:[#allocation2 + $0xa8] sm:$0x1] %v9081_v2  ;;  %295 = vst [vmem:[#allocation2 + $0xc0] sm:$0x1] %v9081_v2  ;;  %7833 = vmatprep.subr.bf16.mxu0 %v8769_v3  ;;  %8743 = vmatprep.subr.bf16.mxu1 %v8769_v3  ;;  %v7249_v16 = vunpack.c.l.bf16 %v7350_v15  ;;  %v7250_v17 = vunpack.c.h.bf16 %v7350_v15  ;;  %v7343_v19 = vld [vmem:[%s9150_s12 + $0x8] sm:$0xff]   ;;  %v7344_v26 = vld [vmem:[%s9150_s12 + $0x10] sm:$0xff]  }
  0x13   : > { %296 = vst [vmem:[#allocation2 + $0xd8] sm:$0x1] %v9081_v2  ;;  %297 = vst [vmem:[#allocation2 + $0xf0] sm:$0x1] %v9081_v2  ;;  %v480_v5 = vld [vmem:[#allocation2 + $0x1] sm:$0xff]  ;;  %7861 = vmatprep.mubr.bf16.mxu1 %v8775_v11  ;;  %v7221_v20 = vunpack.c.l.bf16 %v7343_v19  ;;  %v7222_v21 = vunpack.c.h.bf16 %v7343_v19  ;;  %v7352_v27 = vld [vmem:[%s9150_s12 + $0x50] sm:$0xff]   ;;  %v7225_v28 = vunpack.c.l.bf16 %v7344_v26  ;;  %v7226_v29 = vunpack.c.h.bf16 %v7344_v26 }
  0x14   : > { %298 = vst [vmem:[#allocation2 + $0x108] sm:$0x1] %v9081_v2  ;;  %299 = vst [vmem:[#allocation2 + $0x120] sm:$0x1] %v9081_v2  ;;  %v481_v6 = vld [vmem:[#allocation2 + $0x9] sm:$0xff]  ;;  %v7257_v30 = vunpack.c.l.bf16 %v7352_v27  ;;  %v7258_v31 = vunpack.c.h.bf16 %v7352_v27  ;;  %v7345_v33 = vld [vmem:[%s9150_s12 + $0x18] sm:$0xff]  }
  0x15   : > { %300 = vst [vmem:[#allocation2 + $0x138] sm:$0x1] %v9081_v2  ;;  %301 = vst [vmem:[#allocation2 + $0x150] sm:$0x1] %v9081_v2  ;;  %v512_v8 = vpack.c.bf16 %v481_v6, %v480_v5  ;;  %7834 = vmatpush3.bf16.msra.mxu0 %v8769_v3  ;;  %8751 = vmatpush3.bf16.msra.mxu1 %v8769_v3  ;;  %v7351_v22 = vld [vmem:[%s9150_s12 + $0x48] sm:$0xff]   ;;  %v7229_v34 = vunpack.c.l.bf16 %v7345_v33  ;;  %v7230_v35 = vunpack.c.h.bf16 %v7345_v33  ;;  %v7353_v36 = vld [vmem:[%s9150_s12 + $0x58] sm:$0xff]  }
  0x16   : > { %302 = vst [vmem:[#allocation2 + $0x168] sm:$0x1] %v9081_v2  ;;  %303 = vst [vmem:[#allocation2 + $0x180] sm:$0x1] %v9081_v2  ;;  %7835 = vmatprep.subr.bf16.mxu0 %v8770_v4  ;;  %8744 = vmatprep.subr.bf16.mxu1 %v8770_v4  ;;  %v7253_v24 = vunpack.c.l.bf16 %v7351_v22  ;;  %v7254_v25 = vunpack.c.h.bf16 %v7351_v22  ;;  %v7346_v37 = vld [vmem:[%s9150_s12 + $0x20] sm:$0xff]   ;;  %v7261_v38 = vunpack.c.l.bf16 %v7353_v36  ;;  %v7262_v39 = vunpack.c.h.bf16 %v7353_v36  ;;  %v7347_v48 = vld [vmem:[%s9150_s12 + $0x28] sm:$0xff]  }
  0x17   : > { %304 = vst [vmem:[#allocation2 + $0x29] sm:$0x1] %v9081_v2  ;;  %305 = vst [vmem:[#allocation2 + $0x41] sm:$0x1] %v9081_v2  ;;  %7845 = vmatprep.mubr.bf16.mxu0 %v512_v8  ;;  %v7233_v40 = vunpack.c.l.bf16 %v7346_v37  ;;  %v7234_v41 = vunpack.c.h.bf16 %v7346_v37  ;;  %v7354_v42 = vld [vmem:[%s9150_s12 + $0x60] sm:$0xff]   ;;  %v7355_v49 = vld [vmem:[%s9150_s12 + $0x68] sm:$0xff]   ;;  %v7237_v52 = vunpack.c.l.bf16 %v7347_v48  ;;  %v7238_v53 = vunpack.c.h.bf16 %v7347_v48 }
  0x18   : > { %306 = vst [vmem:[#allocation2 + $0x59] sm:$0x1] %v9081_v2  ;;  %307 = vst [vmem:[#allocation2 + $0x71] sm:$0x1] %v9081_v2  ;;  %v7265_v44 = vunpack.c.l.bf16 %v7354_v42  ;;  %v7266_v45 = vunpack.c.h.bf16 %v7354_v42  ;;  %v9188_v50 = vld [vmem:[%s9150_s12] sm:$0xff]  ;;  %v7269_v54 = vunpack.c.l.bf16 %v7355_v49  ;;  %v7270_v55 = vunpack.c.h.bf16 %v7355_v49  ;;  %v7348_v56 = vld [vmem:[%s9150_s12 + $0x30] sm:$0xff]  }
  0x19   : > { %308 = vst [vmem:[#allocation2 + $0x89] sm:$0x1] %v9081_v2  ;;  %309 = vst [vmem:[#allocation2 + $0xa1] sm:$0x1] %v9081_v2  ;;  %7836 = vmatpush3.bf16.msra.mxu0 %v8770_v4  ;;  %8752 = vmatpush3.bf16.msra.mxu1 %v8770_v4  ;;  %v8777_v51 = vld [vmem:[%s9150_s12 + $0x40] sm:$0xff]  ;;  %v7241_v58 = vunpack.c.l.bf16 %v7348_v56  ;;  %v7242_v59 = vunpack.c.h.bf16 %v7348_v56  ;;  %v7356_v60 = vld [vmem:[%s9150_s12 + $0x70] sm:$0xff]  }
  0x1a   : > { %310 = vst [vmem:[#allocation2 + $0xb9] sm:$0x1] %v9081_v2  ;;  %311 = vst [vmem:[#allocation2 + $0xd1] sm:$0x1] %v9081_v2  ;;  %7837 = vmatprep.subr.bf16.mxu0 %v8771_v18  ;;  %8745 = vmatprep.subr.bf16.mxu1 %v8771_v18  ;;  %v8781_v61 = vld [vmem:[%s11565_s1 + $0xb0] sm:$0xff]   ;;  %v7273_v62 = vunpack.c.l.bf16 %v7356_v60  ;;  %v7274_v63 = vunpack.c.h.bf16 %v7356_v60  ;;  %v9200_v0 = vld [vmem:[%s9150_s12 + $0x8] sm:$0xff] }
  0x1b   : > { %312 = vst [vmem:[#allocation2 + $0xe9] sm:$0x1] %v9081_v2  ;;  %313 = vst [vmem:[#allocation2 + $0x101] sm:$0x1] %v9081_v2  ;;  %v8783_v1 = vld [vmem:[%s9150_s12 + $0x48] sm:$0xff]  ;;  %v9212_v4 = vld [vmem:[%s9150_s12 + $0x10] sm:$0xff] }
  0x1c   : > { %314 = vst [vmem:[#allocation2 + $0x119] sm:$0x1] %v9081_v2  ;;  %315 = vst [vmem:[#allocation2 + $0x131] sm:$0x1] %v9081_v2  ;;  %v8787_v3 = vld [vmem:[%s11565_s1 + $0xa8] sm:$0xff]   ;;  %v8785_v5 = vld [vmem:[%s9150_s12 + $0x50] sm:$0xff] }
  0x1d   : > { %316 = vst [vmem:[#allocation2 + $0x149] sm:$0x1] %v9081_v2  ;;  %317 = vst [vmem:[#allocation2 + $0x161] sm:$0x1] %v9081_v2  ;;  %7838 = vmatpush3.bf16.msra.mxu0 %v8771_v18  ;;  %8753 = vmatpush3.bf16.msra.mxu1 %v8771_v18  ;;  %v8788_v6 = vld [vmem:[%s11565_s1 + $0x20] sm:$0xff]   ;;  %v9222_v8 = vld [vmem:[%s9150_s12 + $0x18] sm:$0xff] }
  0x1e   : > { %318 = vst [vmem:[#allocation2 + $0x179] sm:$0x1] %v9081_v2  ;;  %319 = vst [vmem:[#allocation2 + $0x191] sm:$0x1] %v9081_v2  ;;  %7839 = vmatprep.subr.bf16.mxu0 %v8772_v23  ;;  %8746 = vmatprep.subr.bf16.mxu1 %v8772_v23  ;;  %v8786_v2 = vld [vmem:[%s11565_s1 + $0x28] sm:$0xff]   ;;  %v8789_v7 = vld [vmem:[%s11565_s1 + $0xa0] sm:$0xff]  }
  0x1f   : > { %398 = vst [vmem:[#allocation2 + $0xc1] sm:$0xff] %v7245_v9  ;;  %399 = vst [vmem:[#allocation2 + $0xc9] sm:$0xff] %v7246_v10  ;;  %v8791_v9 = vld [vmem:[%s9150_s12 + $0x58] sm:$0xff]  ;;  %v9234_v12 = vld [vmem:[%s9150_s12 + $0x20] sm:$0xff]  ;;  %v9082_v36 = vmov 0.0|0.0   ;;  %s8757_s16 = smul.u32 48, %s11739_s25 }
  0x20   : > { %384 = vst [vmem:[#allocation2 + $0x19] sm:$0xff] %v7217_v13  ;;  %385 = vst [vmem:[#allocation2 + $0x21] sm:$0xff] %v7218_v14  ;;  %v8794_v10 = vld [vmem:[%s11565_s1 + $0x18] sm:$0xff]   ;;  %v8793_v13 = vld [vmem:[%s9150_s12 + $0x60] sm:$0xff] }
  0x21   : > { %400 = vst [vmem:[#allocation2 + $0xd9] sm:$0xff] %v7249_v16  ;;  %401 = vst [vmem:[#allocation2 + $0xe1] sm:$0xff] %v7250_v17  ;;  %7840 = vmatpush3.bf16.msra.mxu0 %v8772_v23  ;;  %8754 = vmatpush3.bf16.msra.mxu1 %v8772_v23  ;;  %v8795_v11 = vld [vmem:[%s11565_s1 + $0x98] sm:$0xff]   ;;  %v8796_v14 = vld [vmem:[%s11565_s1 + $0x10] sm:$0xff]   ;;  %s278_s19 = scalar_lea.vmem %s11571_s7, %s8757_s16 }
  0x22   : > { %386 = vst [vmem:[#allocation2 + $0x31] sm:$0xff] %v7221_v20  ;;  %387 = vst [vmem:[#allocation2 + $0x39] sm:$0xff] %v7222_v21  ;;  %7841 = vmatprep.subr.bf16.mxu0 %v8773_v32  ;;  %8747 = vmatprep.subr.bf16.mxu1 %v8773_v32  ;;  %v8797_v15 = vld [vmem:[%s11565_s1 + $0x90] sm:$0xff]   ;;  %v9244_v16 = vld [vmem:[%s9150_s12 + $0x28] sm:$0xff] }
  0x23   : > { %402 = vst [vmem:[#allocation2 + $0xf1] sm:$0xff] %v7253_v24  ;;  %403 = vst [vmem:[#allocation2 + $0xf9] sm:$0xff] %v7254_v25  ;;  %v8799_v17 = vld [vmem:[%s9150_s12 + $0x68] sm:$0xff]  ;;  %v9256_v20 = vld [vmem:[%s9150_s12 + $0x30] sm:$0xff] }
  0x24   : > { %388 = vst [vmem:[#allocation2 + $0x49] sm:$0xff] %v7225_v28  ;;  %389 = vst [vmem:[#allocation2 + $0x51] sm:$0xff] %v7226_v29  ;;  %v8802_v18 = vld [vmem:[%s11565_s1 + $0x8] sm:$0xff]   ;;  %v8801_v21 = vld [vmem:[%s9150_s12 + $0x70] sm:$0xff] }
  0x25   : > { %404 = vst [vmem:[#allocation2 + $0x109] sm:$0xff] %v7257_v30  ;;  %405 = vst [vmem:[#allocation2 + $0x111] sm:$0xff] %v7258_v31  ;;  %7842 = vmatpush3.bf16.msra.mxu0 %v8773_v32  ;;  %8755 = vmatpush3.bf16.msra.mxu1 %v8773_v32  ;;  %v8803_v19 = vld [vmem:[%s11565_s1 + $0x88] sm:$0xff]   ;;  %v8804_v24 = vld [vmem:[%s11565_s1] sm:$0xff]  }
  0x26   : > { %390 = vst [vmem:[#allocation2 + $0x61] sm:$0xff] %v7229_v34  ;;  %391 = vst [vmem:[#allocation2 + $0x69] sm:$0xff] %v7230_v35  ;;  %7843 = vmatprep.subr.bf16.mxu0 %v8774_v43  ;;  %8748 = vmatprep.subr.bf16.mxu1 %v8774_v43  ;;  %v963_v22 = vld [vmem:[#allocation2 + $0x2] sm:$0xff]  ;;  %v964_v23 = vld [vmem:[#allocation2 + $0xa] sm:$0xff] }
  0x27   : > { %406 = vst [vmem:[#allocation2 + $0x121] sm:$0xff] %v7261_v38  ;;  %407 = vst [vmem:[#allocation2 + $0x129] sm:$0xff] %v7262_v39  ;;  %v8805_v25 = vld [vmem:[%s11565_s1 + $0x80] sm:$0xff]   ;;  %v995_v26 = vpack.c.bf16 %v964_v23, %v963_v22  ;;  %v418_v27 = vld [vmem:[#allocation2 + $0x18] sm:$0xff] }
  0x28   : > { %392 = vst [vmem:[#allocation2 + $0x79] sm:$0xff] %v7233_v40  ;;  %393 = vst [vmem:[#allocation2 + $0x81] sm:$0xff] %v7234_v41  ;;  %v419_v28 = vld [vmem:[#allocation2 + $0x20] sm:$0xff]  ;;  %v8806_v31 = vld [vmem:[%s11565_s1 + $0xf8] sm:$0xff]  }
  0x29   : > { %408 = vst [vmem:[#allocation2 + $0x139] sm:$0xff] %v7265_v44  ;;  %409 = vst [vmem:[#allocation2 + $0x141] sm:$0xff] %v7266_v45  ;;  %7844 = vmatpush3.bf16.msra.mxu0 %v8774_v43  ;;  %8756 = vmatpush3.bf16.msra.mxu1 %v8774_v43  ;;  %v965_v29 = vld [vmem:[#allocation2 + $0x1a] sm:$0xff]  ;;  %v966_v30 = vld [vmem:[#allocation2 + $0x22] sm:$0xff]  ;;  %v9272_v38 = vpack.c.bf16 %v419_v28, %v418_v27 }
  0x2a   : > { %394 = vst [vmem:[#allocation2 + $0x91] sm:$0xff] %v7237_v52  ;;  %395 = vst [vmem:[#allocation2 + $0x99] sm:$0xff] %v7238_v53  ;;  %7877 = vmatprep.subr.bf16.mxu1 %v8778_v46  ;;  %7925 = vmatprep.subr.bf16.mxu0 %v8779_v47  ;;  %v8807_v32 = vld [vmem:[%s11565_s1 + $0x138] sm:$0xff]   ;;  %v420_v33 = vld [vmem:[#allocation2 + $0x30] sm:$0xff]  ;;  %v9274_v39 = vpack.c.bf16 %v966_v30, %v965_v29 }
  0x2b   : > { %410 = vst [vmem:[#allocation2 + $0x151] sm:$0xff] %v7269_v54  ;;  %411 = vst [vmem:[#allocation2 + $0x159] sm:$0xff] %v7270_v55  ;;  %v421_v34 = vld [vmem:[#allocation2 + $0x38] sm:$0xff]  ;;  %v8808_v42 = vld [vmem:[%s11565_s1 + $0xf0] sm:$0xff]  }
  0x2c   : > { %396 = vst [vmem:[#allocation2 + $0xa9] sm:$0xff] %v7241_v58  ;;  %397 = vst [vmem:[#allocation2 + $0xb1] sm:$0xff] %v7242_v59  ;;  %7846 = vmatmul.mubr.bf16.vlgmr.msra.gmra.mxu0 %v9188_v50  ;;  %7862 = vmatmul.mubr.bf16.vlgmr.msra.gmra.mxu1 %v8777_v51  ;;  %v967_v35 = vld [vmem:[#allocation2 + $0x32] sm:$0xff]  ;;  %v968_v37 = vld [vmem:[#allocation2 + $0x3a] sm:$0xff]  ;;  %v9276_v40 = vpack.c.bf16 %v421_v34, %v420_v33 }
  0x2d   : > { %412 = vst [vmem:[#allocation2 + $0x169] sm:$0xff] %v7273_v62  ;;  %413 = vst [vmem:[#allocation2 + $0x171] sm:$0xff] %v7274_v63  ;;  %7878 = vmatpush3.bf16.msra.mxu1 %v8778_v46  ;;  %7926 = vmatpush3.bf16.msra.mxu0 %v8779_v47  ;;  %v9278_v41 = vpack.c.bf16 %v968_v37, %v967_v35  ;;  %v422_v43 = vld [vmem:[#allocation2 + $0x48] sm:$0xff]  ;;  %v423_v44 = vld [vmem:[#allocation2 + $0x50] sm:$0xff] }
  0x2e   : > { %7879 = vmatprep.subr.bf16.mxu1 %v8780_v57  ;;  %7927 = vmatprep.subr.bf16.mxu0 %v8781_v61  ;;  %v8809_v45 = vld [vmem:[%s11565_s1 + $0x130] sm:$0xff]   ;;  %v424_v48 = vld [vmem:[#allocation2 + $0x60] sm:$0xff]  ;;  %v425_v49 = vld [vmem:[#allocation2 + $0x68] sm:$0xff]  ;;  %v9296_v55 = vpack.c.bf16 %v423_v44, %v422_v43 }
  0x2f   : > { %7849 = vmatprep.mubr.bf16.mxu0 %v9200_v0  ;;  %7865 = vmatprep.mubr.bf16.mxu1 %v8783_v1  ;;  %v969_v46 = vld [vmem:[#allocation2 + $0x4a] sm:$0xff]  ;;  %v970_v47 = vld [vmem:[#allocation2 + $0x52] sm:$0xff]  ;;  %v971_v51 = vld [vmem:[#allocation2 + $0x62] sm:$0xff] }
  0x30   : > { %v972_v52 = vld [vmem:[#allocation2 + $0x6a] sm:$0xff]  ;;  %v9298_v56 = vpack.c.bf16 %v970_v47, %v969_v46  ;;  %v8812_v59 = vld [vmem:[%s11565_s1 + $0xe0] sm:$0xff]   ;;  %v426_v60 = vld [vmem:[#allocation2 + $0x78] sm:$0xff] }
  0x31   : > { %7880 = vmatpush3.bf16.msra.mxu1 %v8780_v57  ;;  %7928 = vmatpush3.bf16.msra.mxu0 %v8781_v61  ;;  %v8810_v53 = vld [vmem:[%s11565_s1 + $0xe8] sm:$0xff]   ;;  %v9300_v57 = vpack.c.bf16 %v425_v49, %v424_v48  ;;  %v9302_v58 = vpack.c.bf16 %v972_v52, %v971_v51  ;;  %v427_v61 = vld [vmem:[#allocation2 + $0x80] sm:$0xff]  ;;  %v8817_v22 = vld [vmem:[%s11565_s1 + $0x110] sm:$0xff]  }
  0x32   : > { %7881 = vmatprep.subr.bf16.mxu1 %v8786_v2  ;;  %7929 = vmatprep.subr.bf16.mxu0 %v8787_v3  ;;  %v8811_v54 = vld [vmem:[%s11565_s1 + $0x128] sm:$0xff]   ;;  %v973_v62 = vld [vmem:[#allocation2 + $0x7a] sm:$0xff]  ;;  %v436_v46 = vld [vmem:[#allocation2 + $0xf0] sm:$0xff] }
  0x33   : > { %v974_v63 = vld [vmem:[#allocation2 + $0x82] sm:$0xff]  ;;  %v7357_v29 = vld [vmem:[%s9150_s12 + $0x78] sm:$0xff]  }
  0x34   : > { %7850 = vmatmul.mubr.bf16.gmra.mxu0 %v9212_v4  ;;  %7866 = vmatmul.mubr.bf16.gmra.mxu1 %v8785_v5  ;;  %v8813_v1 = vld [vmem:[%s11565_s1 + $0x120] sm:$0xff]   ;;  %v975_v5 = vld [vmem:[#allocation2 + $0x92] sm:$0xff]  ;;  %v8818_v27 = vld [vmem:[%s11565_s1 + $0xc8] sm:$0xff]   ;;  %v7278_v33 = vunpack.c.h.bf16 %v7357_v29 }
  0x35   : > { %7882 = vmatpush3.bf16.msra.mxu1 %v8786_v2  ;;  %7930 = vmatpush3.bf16.msra.mxu0 %v8787_v3  ;;  %v428_v2 = vld [vmem:[#allocation2 + $0x90] sm:$0xff]  ;;  %v429_v3 = vld [vmem:[#allocation2 + $0x98] sm:$0xff]  ;;  %v432_v23 = vld [vmem:[#allocation2 + $0xc0] sm:$0xff] }
  0x36   : > { %7883 = vmatprep.subr.bf16.mxu1 %v8788_v6  ;;  %7931 = vmatprep.subr.bf16.mxu0 %v8789_v7  ;;  %v8819_v28 = vld [vmem:[%s11565_s1 + $0x108] sm:$0xff]   ;;  %415 = vst [vmem:[#allocation2 + $0x189] sm:$0xff] %v7278_v33  ;;  %v434_v37 = vld [vmem:[#allocation2 + $0xd8] sm:$0xff] }
  0x37   : > { %7853 = vmatprep.mubr.bf16.mxu0 %v9222_v8  ;;  %7869 = vmatprep.mubr.bf16.mxu1 %v8791_v9  ;;  %v8815_v9 = vld [vmem:[%s11565_s1 + $0x118] sm:$0xff]   ;;  %v982_v44 = vld [vmem:[#allocation2 + $0xe2] sm:$0xff] }
  0x38   : > { %v981_v43 = vld [vmem:[#allocation2 + $0xda] sm:$0xff]  ;;  %v983_v48 = vld [vmem:[#allocation2 + $0xf2] sm:$0xff]  ;;  %v446_v33 = vld [vmem:[#allocation2 + $0x168] sm:$0xff] }
  0x39   : > { %7884 = vmatpush3.bf16.msra.mxu1 %v8788_v6  ;;  %7932 = vmatpush3.bf16.msra.mxu0 %v8789_v7  ;;  %v976_v6 = vld [vmem:[#allocation2 + $0x9a] sm:$0xff] }
  0x3a   : > { %7885 = vmatprep.subr.bf16.mxu1 %v8794_v10  ;;  %7933 = vmatprep.subr.bf16.mxu0 %v8795_v11  ;;  %v8814_v7 = vld [vmem:[%s11565_s1 + $0xd8] sm:$0xff]  }
  0x3b   : > { %v437_v47 = vld [vmem:[#allocation2 + $0xf8] sm:$0xff] }
  0x3c   : > { %7854 = vmatmul.mubr.bf16.gmra.mxu0 %v9234_v12  ;;  %7870 = vmatmul.mubr.bf16.gmra.mxu1 %v8793_v13  ;;  %v9324_v13 = vpack.c.bf16 %v429_v3, %v428_v2  ;;  %v984_v49 = vld [vmem:[#allocation2 + $0xfa] sm:$0xff]  ;;  %v441_v3 = vld [vmem:[#allocation2 + $0x128] sm:$0xff] }
  0x3d   : > { %7886 = vmatpush3.bf16.msra.mxu1 %v8794_v10  ;;  %7934 = vmatpush3.bf16.msra.mxu0 %v8795_v11  ;;  %v9320_v10 = vpack.c.bf16 %v427_v61, %v426_v60  ;;  %v9322_v11 = vpack.c.bf16 %v974_v63, %v973_v62  ;;  %v9366_v51 = vld [vmem:[%s11565_s1 + $0x178] sm:$0xff]   ;;  %v9377_v60 = vpack.c.bf16 %v984_v49, %v983_v48  ;;  %v438_v61 = vld [vmem:[#allocation2 + $0x108] sm:$0xff]  ;;  %v439_v62 = vld [vmem:[#allocation2 + $0x110] sm:$0xff] }
  0x3e   : > { %7887 = vmatprep.subr.bf16.mxu1 %v8796_v14  ;;  %7935 = vmatprep.subr.bf16.mxu0 %v8797_v15  ;;  %v8823_v52 = vld [vmem:[%s11565_s1 + $0x1b8] sm:$0xff]   ;;  %v985_v63 = vld [vmem:[#allocation2 + $0x10a] sm:$0xff]  ;;  %v440_v2 = vld [vmem:[#allocation2 + $0x120] sm:$0xff] }
  0x3f   : > { %7857 = vmatprep.mubr.bf16.mxu0 %v9244_v16  ;;  %7873 = vmatprep.mubr.bf16.mxu1 %v8799_v17  ;;  %v430_v17 = vld [vmem:[#allocation2 + $0xa8] sm:$0xff]  ;;  %v8831_v48 = vld [vmem:[%s11565_s1 + $0x198] sm:$0xff]  }
  0x40   : > { %v8834_v49 = vld [vmem:[%s11565_s1 + $0x148] sm:$0xff]  }
  0x41   : > { %7888 = vmatpush3.bf16.msra.mxu1 %v8796_v14  ;;  %7936 = vmatpush3.bf16.msra.mxu0 %v8797_v15  ;;  %v9326_v14 = vpack.c.bf16 %v976_v6, %v975_v5  ;;  %v8816_v15 = vld [vmem:[%s11565_s1 + $0xd0] sm:$0xff]   ;;  %v987_v5 = vld [vmem:[#allocation2 + $0x122] sm:$0xff] }
  0x42   : > { %7889 = vmatprep.subr.bf16.mxu1 %v8802_v18  ;;  %7937 = vmatprep.subr.bf16.mxu0 %v8803_v19  ;;  %v988_v6 = vld [vmem:[#allocation2 + $0x12a] sm:$0xff] }
  0x44   : > { %7858 = vmatmul.mubr.bf16.gmra.mxu0 %v9256_v20  ;;  %7874 = vmatmul.mubr.bf16.gmra.mxu1 %v8801_v21  ;;  %v978_v21 = vld [vmem:[#allocation2 + $0xb2] sm:$0xff] }
  0x45   : > { %7890 = vmatpush3.bf16.msra.mxu1 %v8802_v18  ;;  %7938 = vmatpush3.bf16.msra.mxu0 %v8803_v19  ;;  %v431_v18 = vld [vmem:[#allocation2 + $0xb0] sm:$0xff] }
  0x46   : > { %7891 = vmatprep.subr.bf16.mxu1 %v8804_v24  ;;  %7939 = vmatprep.subr.bf16.mxu0 %v8805_v25  ;;  %v977_v19 = vld [vmem:[#allocation2 + $0xaa] sm:$0xff]  ;;  %v9345_v30 = vpack.c.bf16 %v431_v18, %v430_v17  ;;  %v9390_v17 = vpack.c.bf16 %v988_v6, %v987_v5  ;;  %v442_v18 = vld [vmem:[#allocation2 + $0x138] sm:$0xff]  ;;  %v9068_v5 = vld [vmem:[%s9150_s12 + $0x60] sm:$0xff] }
  0x47   : > { %7893 = vmatprep.mubr.bf16.mxu1 %v9082_v36  ;;  %7941 = vmatprep.mubr.bf16.mxu0 %v995_v26  ;;  %v980_v26 = vld [vmem:[#allocation2 + $0xca] sm:$0xff]  ;;  %v8820_v36 = vld [vmem:[%s11565_s1 + $0xc0] sm:$0xff]  }
  0x48   : > { %v9069_v6 = vld [vmem:[%s9150_s12 + $0x68] sm:$0xff] }
  0x49   : > { %7892 = vmatpush3.bf16.msra.mxu1 %v8804_v24  ;;  %7940 = vmatpush3.bf16.msra.mxu0 %v8805_v25  ;;  %v433_v24 = vld [vmem:[#allocation2 + $0xc8] sm:$0xff] }
  0x4a   : > { %7973 = vmatprep.subr.bf16.mxu1 %v8806_v31  ;;  %8021 = vmatprep.subr.bf16.mxu0 %v8807_v32  ;;  %v979_v25 = vld [vmem:[#allocation2 + $0xc2] sm:$0xff]  ;;  %v9349_v34 = vpack.c.bf16 %v433_v24, %v432_v23  ;;  %v444_v23 = vld [vmem:[#allocation2 + $0x150] sm:$0xff]  ;;  %v445_v24 = vld [vmem:[#allocation2 + $0x158] sm:$0xff] }
  0x4b   : > { %v9351_v35 = vpack.c.bf16 %v980_v26, %v979_v25  ;;  %v991_v25 = vld [vmem:[#allocation2 + $0x152] sm:$0xff]  ;;  %v992_v26 = vld [vmem:[#allocation2 + $0x15a] sm:$0xff] }
  0x4c   : > { %7894 = vmatmul.mubr.bf16.vlgmr.msra.gmra.mxu1 %v9272_v38  ;;  %7942 = vmatmul.mubr.bf16.vlgmr.msra.gmra.mxu0 %v9274_v39 }
  0x4d   : > { %7974 = vmatpush3.bf16.msra.mxu1 %v8806_v31  ;;  %8022 = vmatpush3.bf16.msra.mxu0 %v8807_v32  ;;  %v9347_v31 = vpack.c.bf16 %v978_v21, %v977_v19  ;;  %v7277_v32 = vunpack.c.l.bf16 %v7357_v29  ;;  %v443_v19 = vld [vmem:[#allocation2 + $0x140] sm:$0xff]  ;;  %v9400_v29 = vpack.c.bf16 %v445_v24, %v444_v23  ;;  %v9496_v23 = vld [vmem:[%s9150_s12 + $0x78] sm:$0xff]  ;;  %v8841_v24 = vld [vmem:[%s11565_s1 + $0x1f0] sm:$0xff]  }
  0x4e   : > { %7897 = vmatprep.mubr.bf16.mxu1 %v9276_v40  ;;  %7945 = vmatprep.mubr.bf16.mxu0 %v9278_v41  ;;  %v989_v21 = vld [vmem:[#allocation2 + $0x13a] sm:$0xff] }
  0x4f   : > { %7975 = vmatprep.subr.bf16.mxu1 %v8808_v42  ;;  %8023 = vmatprep.subr.bf16.mxu0 %v8809_v45  ;;  %414 = vst [vmem:[#allocation2 + $0x181] sm:$0xff] %v7277_v32  ;;  %v9402_v32 = vpack.c.bf16 %v992_v26, %v991_v25  ;;  %v8842_v25 = vld [vmem:[%s11565_s1 + $0x230] sm:$0xff]  }
  0x51   : > { %7976 = vmatpush3.bf16.msra.mxu1 %v8808_v42  ;;  %8024 = vmatpush3.bf16.msra.mxu0 %v8809_v45  ;;  %v435_v42 = vld [vmem:[#allocation2 + $0xe0] sm:$0xff] }
  0x52   : > { %7977 = vmatprep.subr.bf16.mxu1 %v8810_v53  ;;  %8025 = vmatprep.subr.bf16.mxu0 %v8811_v54  ;;  %v8821_v45 = vld [vmem:[%s11565_s1 + $0x100] sm:$0xff]  }
  0x54   : > { %7898 = vmatmul.mubr.bf16.gmra.mxu1 %v9296_v55  ;;  %7946 = vmatmul.mubr.bf16.gmra.mxu0 %v9298_v56 }
  0x55   : > { %7901 = vmatprep.mubr.bf16.mxu1 %v9300_v57  ;;  %7949 = vmatprep.mubr.bf16.mxu0 %v9302_v58 }
  0x56   : > { %7978 = vmatpush3.bf16.msra.mxu1 %v8810_v53  ;;  %8026 = vmatpush3.bf16.msra.mxu0 %v8811_v54  ;;  %v9371_v53 = vpack.c.bf16 %v435_v42, %v434_v37  ;;  %v9373_v54 = vpack.c.bf16 %v982_v44, %v981_v43  ;;  %v993_v37 = vld [vmem:[#allocation2 + $0x16a] sm:$0xff]  ;;  %v994_v42 = vld [vmem:[#allocation2 + $0x172] sm:$0xff] }
  0x57   : > { %7979 = vmatprep.subr.bf16.mxu1 %v8812_v59  ;;  %8027 = vmatprep.subr.bf16.mxu0 %v8813_v1  ;;  %v9410_v44 = vpack.c.bf16 %v994_v42, %v993_v37 }
  0x5a   : > { %7980 = vmatpush3.bf16.msra.mxu1 %v8812_v59  ;;  %8028 = vmatpush3.bf16.msra.mxu0 %v8813_v1  ;;  %v9375_v59 = vpack.c.bf16 %v437_v47, %v436_v46  ;;  %v986_v1 = vld [vmem:[#allocation2 + $0x112] sm:$0xff]  ;;  %v8826_v47 = vld [vmem:[%s11565_s1 + $0x168] sm:$0xff]  }
  0x5b   : > { %7981 = vmatprep.subr.bf16.mxu1 %v8814_v7  ;;  %8029 = vmatprep.subr.bf16.mxu0 %v8815_v9  ;;  %v8825_v46 = vld [vmem:[%s11565_s1 + $0x1b0] sm:$0xff]  }
  0x5c   : > { %7902 = vmatmul.mubr.bf16.gmra.mxu1 %v9320_v10  ;;  %7950 = vmatmul.mubr.bf16.gmra.mxu0 %v9322_v11 }
  0x5d   : > { %7905 = vmatprep.mubr.bf16.mxu1 %v9324_v13  ;;  %7953 = vmatprep.mubr.bf16.mxu0 %v9326_v14 }
  0x5e   : > { %7982 = vmatpush3.bf16.msra.mxu1 %v8814_v7  ;;  %8030 = vmatpush3.bf16.msra.mxu0 %v8815_v9  ;;  %v9384_v7 = vpack.c.bf16 %v439_v62, %v438_v61  ;;  %v9386_v9 = vpack.c.bf16 %v986_v1, %v985_v63  ;;  %v9064_v61 = vld [vmem:[%s9150_s12 + $0x40] sm:$0xff]  ;;  %v8839_v62 = vld [vmem:[%s11565_s1 + $0x1f8] sm:$0xff]   ;;  %v9065_v1 = vld [vmem:[%s9150_s12 + $0x48] sm:$0xff] }
  0x5f   : > { %7983 = vmatprep.subr.bf16.mxu1 %v8816_v15  ;;  %8031 = vmatprep.subr.bf16.mxu0 %v8817_v22  ;;  %v8840_v63 = vld [vmem:[%s11565_s1 + $0x238] sm:$0xff]  }
  0x62   : > { %7984 = vmatpush3.bf16.msra.mxu1 %v8816_v15  ;;  %8032 = vmatpush3.bf16.msra.mxu0 %v8817_v22  ;;  %v9388_v15 = vpack.c.bf16 %v441_v3, %v440_v2  ;;  %v990_v22 = vld [vmem:[#allocation2 + $0x142] sm:$0xff]  ;;  %v9066_v2 = vld [vmem:[%s9150_s12 + $0x50] sm:$0xff]  ;;  %v9067_v3 = vld [vmem:[%s9150_s12 + $0x58] sm:$0xff] }
  0x63   : > { %7985 = vmatprep.subr.bf16.mxu1 %v8818_v27  ;;  %8033 = vmatprep.subr.bf16.mxu0 %v8819_v28 }
  0x64   : > { %7906 = vmatmul.mubr.bf16.gmra.mxu1 %v9345_v30  ;;  %7954 = vmatmul.mubr.bf16.gmra.mxu0 %v9347_v31 }
  0x65   : > { %7909 = vmatprep.mubr.bf16.mxu1 %v9349_v34  ;;  %7957 = vmatprep.mubr.bf16.mxu0 %v9351_v35 }
  0x66   : > { %7986 = vmatpush3.bf16.msra.mxu1 %v8818_v27  ;;  %8034 = vmatpush3.bf16.msra.mxu0 %v8819_v28  ;;  %v9396_v27 = vpack.c.bf16 %v443_v19, %v442_v18  ;;  %v9398_v28 = vpack.c.bf16 %v990_v22, %v989_v21  ;;  %v9070_v18 = vld [vmem:[%s9150_s12 + $0x70] sm:$0xff]  ;;  %v1299_v19 = vld [vmem:[#allocation2 + $0x180] sm:$0xff]  ;;  %v1300_v21 = vld [vmem:[#allocation2 + $0x188] sm:$0xff] }
  0x67   : > { %7987 = vmatprep.subr.bf16.mxu1 %v8820_v36  ;;  %8035 = vmatprep.subr.bf16.mxu0 %v8821_v45  ;;  %v9493_v22 = vpack.c.bf16 %v1300_v21, %v1299_v19  ;;  %v2805_v19 = vld [vmem:[#allocation2 + $0x6a] sm:$0xff] }
  0x6a   : > { %7988 = vmatpush3.bf16.msra.mxu1 %v8820_v36  ;;  %8036 = vmatpush3.bf16.msra.mxu0 %v8821_v45  ;;  %v447_v36 = vld [vmem:[#allocation2 + $0x170] sm:$0xff] }
  0x6b   : > { %8069 = vmatprep.subr.bf16.mxu1 %v9366_v51  ;;  %8117 = vmatprep.subr.bf16.mxu0 %v8823_v52  ;;  %v9408_v43 = vpack.c.bf16 %v447_v36, %v446_v33  ;;  %v8824_v45 = vld [vmem:[%s11565_s1 + $0x170] sm:$0xff]  }
  0x6c   : > { %7910 = vmatmul.mubr.bf16.gmra.mxu1 %v9371_v53  ;;  %7958 = vmatmul.mubr.bf16.gmra.mxu0 %v9373_v54 }
  0x6d   : > { %7913 = vmatprep.mubr.bf16.mxu1 %v9375_v59  ;;  %7961 = vmatprep.mubr.bf16.mxu0 %v9377_v60 }
  0x74   : > { %7914 = vmatmul.mubr.bf16.gmra.mxu1 %v9384_v7  ;;  %7962 = vmatmul.mubr.bf16.gmra.mxu0 %v9386_v9 }
  0x75   : > { %7917 = vmatprep.mubr.bf16.mxu1 %v9388_v15  ;;  %7965 = vmatprep.mubr.bf16.mxu0 %v9390_v17 }
  0x7c   : > { %7918 = vmatmul.mubr.bf16.gmra.mxu1 %v9396_v27  ;;  %7966 = vmatmul.mubr.bf16.gmra.mxu0 %v9398_v28 }
  0x7d   : > { %7921 = vmatprep.mubr.bf16.mxu1 %v9400_v29  ;;  %7969 = vmatprep.mubr.bf16.mxu0 %v9402_v32 }
  0x84   : > { %7922 = vmatmul.mubr.bf16.gmra.mxu1 %v9408_v43  ;;  %7970 = vmatmul.mubr.bf16.gmra.mxu0 %v9410_v44 }
  0x85   : > { %7989 = vmatprep.mubr.bf16.mxu1 %v9272_v38  ;;  %8037 = vmatprep.mubr.bf16.mxu0 %v9188_v50  ;;  %v8827_v50 = vld [vmem:[%s11565_s1 + $0x1a8] sm:$0xff]   ;;  %v8829_v38 = vld [vmem:[%s11565_s1 + $0x1a0] sm:$0xff]  }
  0x8c   : > { %7990 = vmatmul.mubr.bf16.vlgmr.msra.gmra.mxu1 %v9276_v40  ;;  %8038 = vmatmul.mubr.bf16.vlgmr.msra.gmra.mxu0 %v9200_v0  ;;  %v8828_v0 = vld [vmem:[%s11565_s1 + $0x160] sm:$0xff]  }
  0x8d   : > { %8070 = vmatpush3.bf16.msra.mxu1 %v9366_v51  ;;  %8118 = vmatpush3.bf16.msra.mxu0 %v8823_v52  ;;  %v8835_v51 = vld [vmem:[%s11565_s1 + $0x188] sm:$0xff]   ;;  %v9063_v52 = vld [vmem:[%s9150_s12 + $0x38] sm:$0xff] }
  0x8e   : > { %7993 = vmatprep.mubr.bf16.mxu1 %v9296_v55  ;;  %8041 = vmatprep.mubr.bf16.mxu0 %v9212_v4  ;;  %v8830_v4 = vld [vmem:[%s11565_s1 + $0x158] sm:$0xff]  }
  0x8f   : > { %8071 = vmatprep.subr.bf16.mxu1 %v8824_v45  ;;  %8119 = vmatprep.subr.bf16.mxu0 %v8825_v46 }
  0x91   : > { %8072 = vmatpush3.bf16.msra.mxu1 %v8824_v45  ;;  %8120 = vmatpush3.bf16.msra.mxu0 %v8825_v46 }
  0x92   : > { %8073 = vmatprep.subr.bf16.mxu1 %v8826_v47  ;;  %8121 = vmatprep.subr.bf16.mxu0 %v8827_v50 }
  0x94   : > { %7994 = vmatmul.mubr.bf16.gmra.mxu1 %v9300_v57  ;;  %8042 = vmatmul.mubr.bf16.gmra.mxu0 %v9222_v8  ;;  %v8832_v8 = vld [vmem:[%s11565_s1 + $0x150] sm:$0xff]  }
  0x95   : > { %7997 = vmatprep.mubr.bf16.mxu1 %v9320_v10  ;;  %8045 = vmatprep.mubr.bf16.mxu0 %v9234_v12  ;;  %v8833_v12 = vld [vmem:[%s11565_s1 + $0x190] sm:$0xff]  }
  0x96   : > { %8074 = vmatpush3.bf16.msra.mxu1 %v8826_v47  ;;  %8122 = vmatpush3.bf16.msra.mxu0 %v8827_v50 }
  0x97   : > { %8075 = vmatprep.subr.bf16.mxu1 %v8828_v0  ;;  %8123 = vmatprep.subr.bf16.mxu0 %v8829_v38 }
  0x9a   : > { %8076 = vmatpush3.bf16.msra.mxu1 %v8828_v0  ;;  %8124 = vmatpush3.bf16.msra.mxu0 %v8829_v38  ;;  %v2495_v0 = vld [vmem:[#allocation2 + $0x39] sm:$0xff] }
  0x9b   : > { %8077 = vmatprep.subr.bf16.mxu1 %v8830_v4  ;;  %8125 = vmatprep.subr.bf16.mxu0 %v8831_v48  ;;  %v2800_v38 = vld [vmem:[#allocation2 + $0x32] sm:$0xff] }
  0x9c   : > { %7998 = vmatmul.mubr.bf16.gmra.mxu1 %v9324_v13  ;;  %8046 = vmatmul.mubr.bf16.gmra.mxu0 %v9244_v16  ;;  %v8837_v16 = vld [vmem:[%s11565_s1 + $0x140] sm:$0xff]  }
  0x9d   : > { %8001 = vmatprep.mubr.bf16.mxu1 %v9345_v30  ;;  %8049 = vmatprep.mubr.bf16.mxu0 %v9256_v20  ;;  %v8838_v20 = vld [vmem:[%s11565_s1 + $0x180] sm:$0xff]  }
  0x9e   : > { %8078 = vmatpush3.bf16.msra.mxu1 %v8830_v4  ;;  %8126 = vmatpush3.bf16.msra.mxu0 %v8831_v48  ;;  %v2801_v4 = vld [vmem:[#allocation2 + $0x3a] sm:$0xff] }
  0x9f   : > { %8079 = vmatprep.subr.bf16.mxu1 %v8832_v8  ;;  %8127 = vmatprep.subr.bf16.mxu0 %v8833_v12 }
  0xa2   : > { %8080 = vmatpush3.bf16.msra.mxu1 %v8832_v8  ;;  %8128 = vmatpush3.bf16.msra.mxu0 %v8833_v12 }
  0xa3   : > { %8081 = vmatprep.subr.bf16.mxu1 %v8834_v49  ;;  %8129 = vmatprep.subr.bf16.mxu0 %v8835_v51 }
  0xa4   : > { %8002 = vmatmul.mubr.bf16.gmra.mxu1 %v9349_v34  ;;  %8050 = vmatmul.mubr.bf16.gmra.mxu0 %v9063_v52 }
  0xa5   : > { %8005 = vmatprep.mubr.bf16.mxu1 %v9371_v53  ;;  %8053 = vmatprep.mubr.bf16.mxu0 %v9064_v61  ;;  %v2496_v61 = vld [vmem:[#allocation2 + $0x49] sm:$0xff] }
  0xa6   : > { %8082 = vmatpush3.bf16.msra.mxu1 %v8834_v49  ;;  %8130 = vmatpush3.bf16.msra.mxu0 %v8835_v51  ;;  %v2832_v49 = vpack.c.bf16 %v2801_v4, %v2800_v38  ;;  %v2809_v38 = vld [vmem:[#allocation2 + $0x9a] sm:$0xff] }
  0xa7   : > { %8083 = vmatprep.subr.bf16.mxu1 %v8837_v16  ;;  %8131 = vmatprep.subr.bf16.mxu0 %v8838_v20 }
  0xaa   : > { %8084 = vmatpush3.bf16.msra.mxu1 %v8837_v16  ;;  %8132 = vmatpush3.bf16.msra.mxu0 %v8838_v20 }
  0xab   : > { %8165 = vmatprep.subr.bf16.mxu1 %v8839_v62  ;;  %8213 = vmatprep.subr.bf16.mxu0 %v8840_v63 }
  0xac   : > { %8006 = vmatmul.mubr.bf16.gmra.mxu1 %v9375_v59  ;;  %8054 = vmatmul.mubr.bf16.gmra.mxu0 %v9065_v1  ;;  %v2803_v1 = vld [vmem:[#allocation2 + $0x52] sm:$0xff] }
  0xad   : > { %8009 = vmatprep.mubr.bf16.mxu1 %v9384_v7  ;;  %8057 = vmatprep.mubr.bf16.mxu0 %v9066_v2  ;;  %v2498_v2 = vld [vmem:[#allocation2 + $0x61] sm:$0xff] }
  0xb4   : > { %8010 = vmatmul.mubr.bf16.gmra.mxu1 %v9388_v15  ;;  %8058 = vmatmul.mubr.bf16.gmra.mxu0 %v9067_v3 }
  0xb5   : > { %8013 = vmatprep.mubr.bf16.mxu1 %v9396_v27  ;;  %8061 = vmatprep.mubr.bf16.mxu0 %v9068_v5 }
  0xbc   : > { %8014 = vmatmul.mubr.bf16.gmra.mxu1 %v9400_v29  ;;  %8062 = vmatmul.mubr.bf16.gmra.mxu0 %v9069_v6  ;;  %v2499_v6 = vld [vmem:[#allocation2 + $0x69] sm:$0xff] }
  0xbd   : > { %8017 = vmatprep.mubr.bf16.mxu1 %v9408_v43  ;;  %8065 = vmatprep.mubr.bf16.mxu0 %v9070_v18  ;;  %v2804_v18 = vld [vmem:[#allocation2 + $0x62] sm:$0xff] }
  0xc4   : > { %8018 = vmatmul.mubr.bf16.gmra.mxu1 %v9493_v22  ;;  %8066 = vmatmul.mubr.bf16.gmra.mxu0 %v9496_v23 }
  0xc5   : > { %8085 = vmatprep.mubr.bf16.mxu1 %v9274_v39  ;;  %8133 = vmatprep.mubr.bf16.mxu0 %v9276_v40  ;;  %v8843_v39 = vld [vmem:[%s11565_s1 + $0x1e8] sm:$0xff]  }
  0xc6   : > { %v8844_v40 = vld [vmem:[%s11565_s1 + $0x228] sm:$0xff]  }
  0xcc   : > { %8086 = vmatmul.mubr.bf16.vlgmr.msra.gmra.mxu1 %v9278_v41  ;;  %8134 = vmatmul.mubr.bf16.vlgmr.msra.gmra.mxu0 %v9296_v55  ;;  %v8845_v41 = vld [vmem:[%s11565_s1 + $0x1e0] sm:$0xff]  }
  0xcd   : > { %8166 = vmatpush3.bf16.msra.mxu1 %v8839_v62  ;;  %8214 = vmatpush3.bf16.msra.mxu0 %v8840_v63  ;;  %v8846_v55 = vld [vmem:[%s11565_s1 + $0x220] sm:$0xff]   ;;  %v2497_v62 = vld [vmem:[#allocation2 + $0x51] sm:$0xff] }
  0xce   : > { %8089 = vmatprep.mubr.bf16.mxu1 %v9298_v56  ;;  %8137 = vmatprep.mubr.bf16.mxu0 %v9300_v57  ;;  %v8847_v56 = vld [vmem:[%s11565_s1 + $0x1d8] sm:$0xff]   ;;  %v2802_v63 = vld [vmem:[#allocation2 + $0x4a] sm:$0xff] }
  0xcf   : > { %8167 = vmatprep.subr.bf16.mxu1 %v8841_v24  ;;  %8215 = vmatprep.subr.bf16.mxu0 %v8842_v25  ;;  %v8848_v57 = vld [vmem:[%s11565_s1 + $0x218] sm:$0xff]  }
  0xd1   : > { %8168 = vmatpush3.bf16.msra.mxu1 %v8841_v24  ;;  %8216 = vmatpush3.bf16.msra.mxu0 %v8842_v25  ;;  %v2527_v24 = vpack.c.bf16 %v2497_v62, %v2496_v61  ;;  %v2833_v25 = vpack.c.bf16 %v2803_v1, %v2802_v63 }
  0xd2   : > { %8169 = vmatprep.subr.bf16.mxu1 %v8843_v39  ;;  %8217 = vmatprep.subr.bf16.mxu0 %v8844_v40 }
  0xd4   : > { %8090 = vmatmul.mubr.bf16.gmra.mxu1 %v9302_v58  ;;  %8138 = vmatmul.mubr.bf16.gmra.mxu0 %v9320_v10  ;;  %v8849_v58 = vld [vmem:[%s11565_s1 + $0x1d0] sm:$0xff]  }
  0xd5   : > { %8093 = vmatprep.mubr.bf16.mxu1 %v9322_v11  ;;  %8141 = vmatprep.mubr.bf16.mxu0 %v9324_v13  ;;  %v8850_v10 = vld [vmem:[%s11565_s1 + $0x210] sm:$0xff]   ;;  %v8851_v11 = vld [vmem:[%s11565_s1 + $0x1c8] sm:$0xff]  }
  0xd6   : > { %8170 = vmatpush3.bf16.msra.mxu1 %v8843_v39  ;;  %8218 = vmatpush3.bf16.msra.mxu0 %v8844_v40  ;;  %v8852_v13 = vld [vmem:[%s11565_s1 + $0x208] sm:$0xff]   ;;  %v2528_v39 = vpack.c.bf16 %v2499_v6, %v2498_v2  ;;  %v2834_v40 = vpack.c.bf16 %v2805_v19, %v2804_v18 }
  0xd7   : > { %8171 = vmatprep.subr.bf16.mxu1 %v8845_v41  ;;  %8219 = vmatprep.subr.bf16.mxu0 %v8846_v55 }
  0xda   : > { %8172 = vmatpush3.bf16.msra.mxu1 %v8845_v41  ;;  %8220 = vmatpush3.bf16.msra.mxu0 %v8846_v55 }
  0xdb   : > { %8173 = vmatprep.subr.bf16.mxu1 %v8847_v56  ;;  %8221 = vmatprep.subr.bf16.mxu0 %v8848_v57 }
  0xdc   : > { %8094 = vmatmul.mubr.bf16.gmra.mxu1 %v9326_v14  ;;  %8142 = vmatmul.mubr.bf16.gmra.mxu0 %v9345_v30  ;;  %v8853_v14 = vld [vmem:[%s11565_s1 + $0x1c0] sm:$0xff]  }
  0xdd   : > { %8097 = vmatprep.mubr.bf16.mxu1 %v9347_v31  ;;  %8145 = vmatprep.mubr.bf16.mxu0 %v9349_v34  ;;  %v8854_v30 = vld [vmem:[%s11565_s1 + $0x200] sm:$0xff]  }
  0xde   : > { %8174 = vmatpush3.bf16.msra.mxu1 %v8847_v56  ;;  %8222 = vmatpush3.bf16.msra.mxu0 %v8848_v57 }
  0xdf   : > { %8175 = vmatprep.subr.bf16.mxu1 %v8849_v58  ;;  %8223 = vmatprep.subr.bf16.mxu0 %v8850_v10 }
  0xe2   : > { %8176 = vmatpush3.bf16.msra.mxu1 %v8849_v58  ;;  %8224 = vmatpush3.bf16.msra.mxu0 %v8850_v10  ;;  %v2500_v58 = vld [vmem:[#allocation2 + $0x79] sm:$0xff]  ;;  %v2501_v10 = vld [vmem:[#allocation2 + $0x81] sm:$0xff] }
  0xe3   : > { %8177 = vmatprep.subr.bf16.mxu1 %v8851_v11  ;;  %8225 = vmatprep.subr.bf16.mxu0 %v8852_v13  ;;  %v2529_v61 = vpack.c.bf16 %v2501_v10, %v2500_v58  ;;  %v2811_v58 = vld [vmem:[#allocation2 + $0xb2] sm:$0xff]  ;;  %v2506_v10 = vld [vmem:[#allocation2 + $0xc1] sm:$0xff] }
  0xe4   : > { %8098 = vmatmul.mubr.bf16.gmra.mxu1 %v9351_v35  ;;  %8146 = vmatmul.mubr.bf16.gmra.mxu0 %v9371_v53 }
  0xe5   : > { %8101 = vmatprep.mubr.bf16.mxu1 %v9373_v54  ;;  %8149 = vmatprep.mubr.bf16.mxu0 %v9375_v59 }
  0xe6   : > { %8178 = vmatpush3.bf16.msra.mxu1 %v8851_v11  ;;  %8226 = vmatpush3.bf16.msra.mxu0 %v8852_v13  ;;  %v2806_v13 = vld [vmem:[#allocation2 + $0x7a] sm:$0xff] }
  0xe7   : > { %8179 = vmatprep.subr.bf16.mxu1 %v8853_v14  ;;  %8227 = vmatprep.subr.bf16.mxu0 %v8854_v30 }
  0xea   : > { %8180 = vmatpush3.bf16.msra.mxu1 %v8853_v14  ;;  %8228 = vmatpush3.bf16.msra.mxu0 %v8854_v30  ;;  %v2807_v14 = vld [vmem:[#allocation2 + $0x82] sm:$0xff]  ;;  %v2502_v30 = vld [vmem:[#allocation2 + $0x91] sm:$0xff] }
  0xeb   : > { %v2835_v62 = vpack.c.bf16 %v2807_v14, %v2806_v13  ;;  %v2507_v14 = vld [vmem:[#allocation2 + $0xc9] sm:$0xff] }
  0xec   : > { %v9560_v31 = vpop.f32.mrf.mxu0  ;;  %v9562_v34 = vpop.f32.mrf.mxu1  ;;  %8102 = vmatmul.mubr.bf16.gmra.mxu1 %v9377_v60  ;;  %8150 = vmatmul.mubr.bf16.gmra.mxu0 %v9384_v7 }
  0xed   : > { %8105 = vmatprep.mubr.bf16.mxu1 %v9386_v9  ;;  %8153 = vmatprep.mubr.bf16.mxu0 %v9388_v15 }
  0xee   : > { %v9568_v35 = vpop.f32.mrf.mxu0  ;;  %v9570_v53 = vpop.f32.mrf.mxu1 }
  0xf0   : > { %v9572_v54 = vpop.f32.mrf.mxu0  ;;  %v9574_v59 = vpop.f32.mrf.mxu1 }
  0xf2   : > { %v9576_v26 = vpop.f32.mrf.mxu0  ;;  %v9578_v33 = vpop.f32.mrf.mxu1 }
  0xf4   : > { %v9580_v36 = vpop.f32.mrf.mxu0  ;;  %v9582_v60 = vpop.f32.mrf.mxu1  ;;  %8106 = vmatmul.mubr.bf16.gmra.mxu1 %v9390_v17  ;;  %8154 = vmatmul.mubr.bf16.gmra.mxu0 %v9396_v27  ;;  %v1911_v27 = vld [vmem:[#allocation2 + $0x182] sm:$0xff] }
  0xf5   : > { %8109 = vmatprep.mubr.bf16.mxu1 %v9398_v28  ;;  %8157 = vmatprep.mubr.bf16.mxu0 %v9400_v29  ;;  %v1912_v28 = vld [vmem:[#allocation2 + $0x18a] sm:$0xff] }
  0xf6   : > { %v9588_v7 = vpop.f32.mrf.mxu0  ;;  %v9590_v9 = vpop.f32.mrf.mxu1  ;;  %v2494_v29 = vld [vmem:[#allocation2 + $0x31] sm:$0xff] }
  0xf7   : > { %v2526_v12 = vpack.c.bf16 %v2495_v0, %v2494_v29  ;;  %v2503_v29 = vld [vmem:[#allocation2 + $0x99] sm:$0xff] }
  0xf8   : > { %v9592_v15 = vpop.f32.mrf.mxu0  ;;  %v9594_v37 = vpop.f32.mrf.mxu1  ;;  %v2808_v0 = vld [vmem:[#allocation2 + $0x92] sm:$0xff]  ;;  %v2530_v1 = vpack.c.bf16 %v2503_v29, %v2502_v30  ;;  %v2812_v30 = vld [vmem:[#allocation2 + $0xc2] sm:$0xff] }
  0xf9   : > { %v2836_v2 = vpack.c.bf16 %v2809_v38, %v2808_v0 }
  0xfa   : > { %v9596_v42 = vpop.f32.mrf.mxu0  ;;  %v9598_v45 = vpop.f32.mrf.mxu1 }
  0xfc   : > { %v9600_v46 = vpop.f32.mrf.mxu0  ;;  %v9602_v17 = vpop.f32.mrf.mxu1  ;;  %8110 = vmatmul.mubr.bf16.gmra.mxu1 %v9402_v32  ;;  %8158 = vmatmul.mubr.bf16.gmra.mxu0 %v9408_v43  ;;  %v9616_v32 = vpack.c.bf16 %v1912_v28, %v1911_v27  ;;  %v9071_v43 = vld [vmem:[#allocation2] sm:$0xff] }
  0xfd   : > { %8113 = vmatprep.mubr.bf16.mxu1 %v9410_v44  ;;  %8161 = vmatprep.mubr.bf16.mxu0 %v9493_v22  ;;  %v9618_v44 = vpack.c.bf16 %v9071_v43, %v9071_v43 }
  0xfe   : > { %v9608_v47 = vpop.f32.mrf.mxu0  ;;  %v9610_v50 = vpop.f32.mrf.mxu1 }
 0x100   : > { %v9612_v48 = vpop.f32.mrf.mxu0  ;;  %v9614_v8 = vpop.f32.mrf.mxu1 }
 0x102   : > { %v9620_v51 = vpop.f32.mrf.mxu0  ;;  %v9622_v16 = vpop.f32.mrf.mxu1 }
 0x104   : > { %v9624_v20 = vpop.f32.mrf.mxu0  ;;  %v9626_v52 = vpop.f32.mrf.mxu1  ;;  %8114 = vmatmul.mubr.bf16.gmra.mxu1 %v9616_v32  ;;  %8162 = vmatmul.mubr.bf16.gmra.mxu0 %v9618_v44 }
 0x105   : > { %8181 = vmatprep.mubr.bf16.mxu1 %v2526_v12  ;;  %8229 = vmatprep.mubr.bf16.mxu0 %v2832_v49 }
 0x106   : > { %v9630_v3 = vpop.f32.mrf.mxu0  ;;  %v9632_v5 = vpop.f32.mrf.mxu1 }
 0x108   : > { %v9634_v21 = vpop.f32.mrf.mxu0  ;;  %v9636_v22 = vpop.f32.mrf.mxu1 }
 0x10a   : > { %v9638_v41 = vpop.f32.mrf.mxu0  ;;  %v9640_v55 = vpop.f32.mrf.mxu1 }
 0x10c   : > { %v7895_v56 = vpop.f32.mrf.mxu1  ;;  %v7943_v57 = vpop.f32.mrf.mxu0  ;;  %8182 = vmatmul.mubr.bf16.vlgmr.msra.gmra.mxu1 %v2527_v24  ;;  %8230 = vmatmul.mubr.bf16.vlgmr.msra.gmra.mxu0 %v2833_v25 }
 0x10d   : > { %v845_v11 = vadd.f32 %v7895_v56, %v9560_v31  ;;  %8185 = vmatprep.mubr.bf16.mxu1 %v2528_v39  ;;  %8233 = vmatprep.mubr.bf16.mxu0 %v2834_v40  ;;  %v2505_v40 = vld [vmem:[#allocation2 + $0xb1] sm:$0xff] }
 0x10e   : > { %v836_v27 = vpop.f32.mrf.mxu1  ;;  %v1110_v28 = vpop.f32.mrf.mxu0 }
 0x10f   : > { %v9643_v4 = vadd.f32 %v7943_v57, %v845_v11  ;;  %v837_v43 = vadd.f32 %v836_v27, %v9568_v35  ;;  %v2504_v35 = vld [vmem:[#allocation2 + $0xa9] sm:$0xff] }
 0x110   : > { %v7896_v12 = vpop.f32.mrf.mxu1  ;;  %v7944_v49 = vpop.f32.mrf.mxu0  ;;  %v2531_v38 = vpack.c.bf16 %v2505_v40, %v2504_v35  ;;  %v2815_v35 = vld [vmem:[#allocation2 + $0xe2] sm:$0xff]  ;;  %v2510_v40 = vld [vmem:[#allocation2 + $0xf1] sm:$0xff] }
 0x111   : > { %v9646_v63 = vadd.f32 %v1110_v28, %v837_v43  ;;  %v848_v31 = vadd.f32 %v7896_v12, %v9572_v54  ;;  %v2810_v54 = vld [vmem:[#allocation2 + $0xaa] sm:$0xff] }
 0x112   : > { %v839_v6 = vpop.f32.mrf.mxu1  ;;  %v1113_v18 = vpop.f32.mrf.mxu0  ;;  %v2837_v43 = vpack.c.bf16 %v2811_v58, %v2810_v54  ;;  %v2511_v58 = vld [vmem:[#allocation2 + $0xf9] sm:$0xff] }
 0x113   : > { %v9649_v19 = vadd.f32 %v7944_v49, %v848_v31  ;;  %v840_v24 = vadd.f32 %v839_v6, %v9576_v26  ;;  %v2813_v26 = vld [vmem:[#allocation2 + $0xca] sm:$0xff]  ;;  %v2532_v49 = vpack.c.bf16 %v2507_v14, %v2506_v10  ;;  %v2816_v10 = vld [vmem:[#allocation2 + $0xf2] sm:$0xff] }
 0x114   : > { %v7899_v25 = vpop.f32.mrf.mxu1  ;;  %v7947_v39 = vpop.f32.mrf.mxu0  ;;  %8186 = vmatmul.mubr.bf16.gmra.mxu1 %v2529_v61  ;;  %8234 = vmatmul.mubr.bf16.gmra.mxu0 %v2835_v62  ;;  %v2838_v61 = vpack.c.bf16 %v2813_v26, %v2812_v30 }
 0x115   : > { %v9652_v56 = vadd.f32 %v1113_v18, %v840_v24  ;;  %v861_v57 = vadd.f32 %v7899_v25, %v9580_v36  ;;  %8189 = vmatprep.mubr.bf16.mxu1 %v2530_v1  ;;  %8237 = vmatprep.mubr.bf16.mxu0 %v2836_v2  ;;  %v2509_v24 = vld [vmem:[#allocation2 + $0xe1] sm:$0xff] }
 0x116   : > { %v852_v11 = vpop.f32.mrf.mxu1  ;;  %v1126_v13 = vpop.f32.mrf.mxu0 }
 0x117   : > { %v9655_v27 = vadd.f32 %v7947_v39, %v861_v57  ;;  %v853_v28 = vadd.f32 %v852_v11, %v9588_v7  ;;  %v2508_v7 = vld [vmem:[#allocation2 + $0xd9] sm:$0xff] }
 0x118   : > { %v7900_v29 = vpop.f32.mrf.mxu1  ;;  %v7948_v0 = vpop.f32.mrf.mxu0  ;;  %v2533_v26 = vpack.c.bf16 %v2509_v24, %v2508_v7  ;;  %v2819_v7 = vld [vmem:[#allocation2 + $0x112] sm:$0xff]  ;;  %v2514_v24 = vld [vmem:[#allocation2 + $0x121] sm:$0xff] }
 0x119   : > { %v9658_v12 = vadd.f32 %v1126_v13, %v853_v28  ;;  %v864_v36 = vadd.f32 %v7900_v29, %v9592_v15  ;;  %v2814_v15 = vld [vmem:[#allocation2 + $0xda] sm:$0xff] }
 0x11a   : > { %v855_v62 = vpop.f32.mrf.mxu1  ;;  %v1129_v31 = vpop.f32.mrf.mxu0  ;;  %v2839_v28 = vpack.c.bf16 %v2815_v35, %v2814_v15  ;;  %v2515_v35 = vld [vmem:[#allocation2 + $0x129] sm:$0xff] }
 0x11b   : > { %v9661_v1 = vadd.f32 %v7948_v0, %v864_v36  ;;  %v856_v2 = vadd.f32 %v855_v62, %v9596_v42  ;;  %v2817_v42 = vld [vmem:[#allocation2 + $0xfa] sm:$0xff]  ;;  %v2534_v0 = vpack.c.bf16 %v2511_v58, %v2510_v40  ;;  %v2820_v40 = vld [vmem:[#allocation2 + $0x122] sm:$0xff] }
 0x11c   : > { %v7903_v6 = vpop.f32.mrf.mxu1  ;;  %v7951_v18 = vpop.f32.mrf.mxu0  ;;  %8190 = vmatmul.mubr.bf16.gmra.mxu1 %v2531_v38  ;;  %8238 = vmatmul.mubr.bf16.gmra.mxu0 %v2837_v43  ;;  %v2840_v38 = vpack.c.bf16 %v2817_v42, %v2816_v10  ;;  %v8855_v58 = vld [vmem:[%s11567_s3 + $0x78] sm:$0xff]  }
 0x11d   : > { %v9664_v25 = vadd.f32 %v1129_v31, %v856_v2  ;;  %v877_v39 = vadd.f32 %v7903_v6, %v9600_v46  ;;  %8193 = vmatprep.mubr.bf16.mxu1 %v2532_v49  ;;  %8241 = vmatprep.mubr.bf16.mxu0 %v2838_v61  ;;  %v2513_v2 = vld [vmem:[#allocation2 + $0x111] sm:$0xff] }
 0x11e   : > { %v868_v57 = vpop.f32.mrf.mxu1  ;;  %v1142_v54 = vpop.f32.mrf.mxu0  ;;  %8261 = vmatprep.subr.bf16.mxu1 %v8855_v58 }
 0x11f   : > { %v9667_v11 = vadd.f32 %v7951_v18, %v877_v39  ;;  %v869_v13 = vadd.f32 %v868_v57, %v9608_v47  ;;  %v2512_v47 = vld [vmem:[#allocation2 + $0x109] sm:$0xff]  ;;  %8262 = vmatpush3.bf16.msra.mxu1 %v8855_v58 }
 0x120   : > { %v7904_v14 = vpop.f32.mrf.mxu1  ;;  %v7952_v30 = vpop.f32.mrf.mxu0  ;;  %v2535_v42 = vpack.c.bf16 %v2513_v2, %v2512_v47  ;;  %v2822_v47 = vld [vmem:[#allocation2 + $0x13a] sm:$0xff]  ;;  %v2823_v2 = vld [vmem:[#allocation2 + $0x142] sm:$0xff] }
 0x121   : > { %v9670_v29 = vadd.f32 %v1142_v54, %v869_v13  ;;  %v880_v46 = vadd.f32 %v7904_v14, %v9612_v48  ;;  %v2818_v48 = vld [vmem:[#allocation2 + $0x10a] sm:$0xff]  ;;  %v2843_v58 = vpack.c.bf16 %v2823_v2, %v2822_v47 }
 0x122   : > { %v871_v43 = vpop.f32.mrf.mxu1  ;;  %v1145_v36 = vpop.f32.mrf.mxu0  ;;  %v2841_v13 = vpack.c.bf16 %v2819_v7, %v2818_v48  ;;  %v8857_v2 = vld [vmem:[%s11567_s3 + $0x68] sm:$0xff]  }
 0x123   : > { %v9673_v49 = vadd.f32 %v7952_v30, %v880_v46  ;;  %v872_v61 = vadd.f32 %v871_v43, %v9620_v51  ;;  %v2821_v51 = vld [vmem:[#allocation2 + $0x12a] sm:$0xff] }
 0x124   : > { %v7907_v62 = vpop.f32.mrf.mxu1  ;;  %v7955_v31 = vpop.f32.mrf.mxu0  ;;  %8194 = vmatmul.mubr.bf16.gmra.mxu1 %v2533_v26  ;;  %8242 = vmatmul.mubr.bf16.gmra.mxu0 %v2839_v28  ;;  %v2536_v26 = vpack.c.bf16 %v2515_v35, %v2514_v24  ;;  %v2842_v28 = vpack.c.bf16 %v2821_v51, %v2820_v40  ;;  %v2519_v24 = vld [vmem:[#allocation2 + $0x159] sm:$0xff]  ;;  %v8856_v40 = vld [vmem:[%s11567_s3 + $0x70] sm:$0xff]  }
 0x125   : > { %v9676_v6 = vadd.f32 %v1145_v36, %v872_v61  ;;  %v893_v18 = vadd.f32 %v7907_v62, %v9624_v20  ;;  %8197 = vmatprep.mubr.bf16.mxu1 %v2534_v0  ;;  %8245 = vmatprep.mubr.bf16.mxu0 %v2840_v38  ;;  %v2516_v61 = vld [vmem:[#allocation2 + $0x139] sm:$0xff]  ;;  %v2517_v62 = vld [vmem:[#allocation2 + $0x141] sm:$0xff] }
 0x126   : > { %v884_v39 = vpop.f32.mrf.mxu1  ;;  %v1158_v15 = vpop.f32.mrf.mxu0  ;;  %8263 = vmatprep.subr.bf16.mxu1 %v8856_v40 }
 0x127   : > { %v9679_v57 = vadd.f32 %v7955_v31, %v893_v18  ;;  %v885_v54 = vadd.f32 %v884_v39, %v9630_v3  ;;  %v2518_v18 = vld [vmem:[#allocation2 + $0x151] sm:$0xff]  ;;  %8264 = vmatpush3.bf16.msra.mxu1 %v8856_v40 }
 0x128   : > { %v7908_v10 = vpop.f32.mrf.mxu1  ;;  %v7956_v20 = vpop.f32.mrf.mxu0  ;;  %v2824_v39 = vld [vmem:[#allocation2 + $0x152] sm:$0xff]  ;;  %8265 = vmatprep.subr.bf16.mxu1 %v8857_v2 }
 0x129   : > { %v9685_v14 = vadd.f32 %v1158_v15, %v885_v54  ;;  %v896_v30 = vadd.f32 %v7908_v10, %v9634_v21  ;;  %v2537_v54 = vpack.c.bf16 %v2517_v62, %v2516_v61 }
 0x12a   : > { %v887_v46 = vpop.f32.mrf.mxu1  ;;  %v1161_v0 = vpop.f32.mrf.mxu0 }
 0x12b   : > { %v9688_v38 = vadd.f32 %v7956_v20, %v896_v30  ;;  %v888_v3 = vadd.f32 %v887_v46, %v9638_v41  ;;  %v2825_v41 = vld [vmem:[#allocation2 + $0x15a] sm:$0xff]  ;;  %8266 = vmatpush3.bf16.msra.mxu1 %v8857_v2 }
 0x12c   : > { %v7911_v43 = vpop.f32.mrf.mxu1  ;;  %v7959_v36 = vpop.f32.mrf.mxu0  ;;  %8198 = vmatmul.mubr.bf16.gmra.mxu1 %v2535_v42  ;;  %8246 = vmatmul.mubr.bf16.gmra.mxu0 %v2841_v13  ;;  %v2538_v42 = vpack.c.bf16 %v2519_v24, %v2518_v18  ;;  %v2844_v13 = vpack.c.bf16 %v2825_v41, %v2824_v39 }
 0x12d   : > { %v9691_v31 = vadd.f32 %v1161_v0, %v888_v3  ;;  %v909_v21 = vadd.f32 %v7911_v43, %v9562_v34  ;;  %8201 = vmatprep.mubr.bf16.mxu1 %v2536_v26  ;;  %8249 = vmatprep.mubr.bf16.mxu0 %v2842_v28  ;;  %v2520_v0 = vld [vmem:[#allocation2 + $0x169] sm:$0xff] }
 0x12e   : > { %v900_v48 = vpop.f32.mrf.mxu1  ;;  %v1174_v7 = vpop.f32.mrf.mxu0  ;;  %v2826_v43 = vld [vmem:[#allocation2 + $0x16a] sm:$0xff] }
 0x12f   : > { %v9694_v15 = vadd.f32 %v7959_v36, %v909_v21  ;;  %v901_v35 = vadd.f32 %v900_v48, %v9570_v53  ;;  %v2827_v36 = vld [vmem:[#allocation2 + $0x172] sm:$0xff] }
 0x130   : > { %v7912_v51 = vpop.f32.mrf.mxu1  ;;  %v7960_v34 = vpop.f32.mrf.mxu0  ;;  %v2845_v24 = vpack.c.bf16 %v2827_v36, %v2826_v43 }
 0x131   : > { %v9700_v10 = vadd.f32 %v1174_v7, %v901_v35  ;;  %v912_v20 = vadd.f32 %v7912_v51, %v9574_v59  ;;  %v2521_v59 = vld [vmem:[#allocation2 + $0x171] sm:$0xff] }
 0x132   : > { %v9703_v30 = vpop.f32.mrf.mxu1  ;;  %v9705_v26 = vpop.f32.mrf.mxu0  ;;  %v2539_v7 = vpack.c.bf16 %v2521_v59, %v2520_v0  ;;  %v8858_v0 = vld [vmem:[%s11567_s3 + $0x60] sm:$0xff]  }
 0x133   : > { %v9707_v53 = vadd.f32 %v7960_v34, %v912_v20  ;;  %v2524_v34 = vld [vmem:[#allocation2 + $0x199] sm:$0xff]  ;;  %v2831_v20 = vld [vmem:[#allocation2 + $0x1a2] sm:$0xff]  ;;  %8267 = vmatprep.subr.bf16.mxu1 %v8858_v0 }
 0x134   : > { %v7915_v28 = vpop.f32.mrf.mxu1  ;;  %v7963_v46 = vpop.f32.mrf.mxu0  ;;  %8202 = vmatmul.mubr.bf16.gmra.mxu1 %v2537_v54  ;;  %8250 = vmatmul.mubr.bf16.gmra.mxu0 %v2843_v58  ;;  %v2830_v58 = vld [vmem:[#allocation2 + $0x19a] sm:$0xff] }
 0x135   : > { %v925_v3 = vadd.f32 %v7915_v28, %v9582_v60  ;;  %8205 = vmatprep.mubr.bf16.mxu1 %v2538_v42  ;;  %8253 = vmatprep.mubr.bf16.mxu0 %v2844_v13  ;;  %v2847_v43 = vpack.c.bf16 %v2831_v20, %v2830_v58  ;;  %v8863_v20 = vld [vmem:[%s11567_s3 + $0x28] sm:$0xff]  }
 0x136   : > { %v916_v61 = vpop.f32.mrf.mxu1  ;;  %v1190_v62 = vpop.f32.mrf.mxu0  ;;  %8268 = vmatpush3.bf16.msra.mxu1 %v8858_v0 }
 0x137   : > { %v9710_v21 = vadd.f32 %v7963_v46, %v925_v3  ;;  %v917_v47 = vadd.f32 %v916_v61, %v9590_v9 }
 0x138   : > { %v7916_v18 = vpop.f32.mrf.mxu1  ;;  %v7964_v48 = vpop.f32.mrf.mxu0 }
 0x139   : > { %v9716_v60 = vadd.f32 %v1190_v62, %v917_v47  ;;  %v928_v39 = vadd.f32 %v7916_v18, %v9594_v37  ;;  %v2525_v37 = vld [vmem:[#allocation2 + $0x1a1] sm:$0xff] }
 0x13a   : > { %v9719_v41 = vpop.f32.mrf.mxu1  ;;  %v9721_v35 = vpop.f32.mrf.mxu0 }
 0x13b   : > { %v9723_v40 = vadd.f32 %v7964_v48, %v928_v39  ;;  %v8859_v39 = vld [vmem:[%s11567_s3 + $0x58] sm:$0xff]  }
 0x13c   : > { %v7919_v9 = vpop.f32.mrf.mxu1  ;;  %v7967_v51 = vpop.f32.mrf.mxu0  ;;  %8206 = vmatmul.mubr.bf16.gmra.mxu1 %v2539_v7  ;;  %8254 = vmatmul.mubr.bf16.gmra.mxu0 %v2845_v24 }
 0x13d   : > { %v941_v54 = vadd.f32 %v7919_v9, %v9602_v17  ;;  %8209 = vmatprep.mubr.bf16.mxu1 %v9496_v23  ;;  %8257 = vmatprep.mubr.bf16.mxu0 %v9616_v32  ;;  %v2541_v17 = vpack.c.bf16 %v2525_v37, %v2524_v34  ;;  %v8861_v9 = vld [vmem:[%s11567_s3 + $0x30] sm:$0xff]  }
 0x13e   : > { %v932_v42 = vpop.f32.mrf.mxu1  ;;  %v1206_v13 = vpop.f32.mrf.mxu0  ;;  %8269 = vmatprep.subr.bf16.mxu1 %v8859_v39 }
 0x13f   : > { %v9728_v28 = vadd.f32 %v7967_v51, %v941_v54  ;;  %v933_v46 = vadd.f32 %v932_v42, %v9610_v50  ;;  %v8860_v50 = vld [vmem:[%s11567_s3 + $0x38] sm:$0xff]   ;;  %8270 = vmatpush3.bf16.msra.mxu1 %v8859_v39 }
 0x140   : > { %v7920_v3 = vpop.f32.mrf.mxu1  ;;  %v7968_v59 = vpop.f32.mrf.mxu0  ;;  %8309 = vmatprep.subr.bf16.mxu0 %v8860_v50 }
 0x141   : > { %v9734_v23 = vadd.f32 %v1206_v13, %v933_v46  ;;  %v944_v32 = vadd.f32 %v7920_v3, %v9614_v8  ;;  %8310 = vmatpush3.bf16.msra.mxu0 %v8860_v50 }
 0x142   : > { %v9737_v36 = vpop.f32.mrf.mxu1  ;;  %v9739_v61 = vpop.f32.mrf.mxu0  ;;  %8311 = vmatprep.subr.bf16.mxu0 %v8861_v9 }
 0x143   : > { %11574 = vst [vmem:[#allocation3_spill] sm:$0xff] %v9739_v61  ;;  %v9741_v62 = vadd.f32 %v7968_v59, %v944_v32 }
 0x144   : > { %v7923_v47 = vpop.f32.mrf.mxu1  ;;  %v7971_v2 = vpop.f32.mrf.mxu0  ;;  %8210 = vmatmul.mubr.bf16.gmra.mxu1 %v2541_v17  ;;  %8258 = vmatmul.mubr.bf16.gmra.mxu0 %v2847_v43  ;;  %v8862_v17 = vld [vmem:[%s11567_s3 + $0x50] sm:$0xff]   ;;  %v8864_v43 = vld [vmem:[%s11567_s3 + $0x20] sm:$0xff]  }
 0x145   : > { %v957_v18 = vadd.f32 %v7923_v47, %v9626_v52  ;;  %8312 = vmatpush3.bf16.msra.mxu0 %v8861_v9  ;;  %8271 = vmatprep.subr.bf16.mxu1 %v8862_v17 }
 0x146   : > { %v948_v8 = vpop.f32.mrf.mxu1  ;;  %v1222_v48 = vpop.f32.mrf.mxu0  ;;  %8313 = vmatprep.subr.bf16.mxu0 %v8863_v20  ;;  %8272 = vmatpush3.bf16.msra.mxu1 %v8862_v17 }
 0x147   : > { %v9747_v7 = vadd.f32 %v7971_v2, %v957_v18  ;;  %v949_v24 = vadd.f32 %v948_v8, %v9632_v5  ;;  %v8865_v8 = vld [vmem:[%s11567_s3 + $0x48] sm:$0xff]   ;;  %8325 = vmatprep.mubr.bf16.mxu0 %v9618_v44 }
 0x148   : > { %v7924_v51 = vpop.f32.mrf.mxu1  ;;  %v7972_v34 = vpop.f32.mrf.mxu0  ;;  %8273 = vmatprep.subr.bf16.mxu1 %v8865_v8 }
 0x149   : > { %v9756_v54 = vadd.f32 %v1222_v48, %v949_v24  ;;  %v960_v52 = vadd.f32 %v7924_v51, %v9636_v22  ;;  %8314 = vmatpush3.bf16.msra.mxu0 %v8863_v20  ;;  %v8866_v48 = vld [vmem:[%s11567_s3 + $0x18] sm:$0xff]   ;;  %v8867_v20 = vld [vmem:[%s11567_s3 + $0x10] sm:$0xff]  }
 0x14a   : > { %v9759_v37 = vpop.f32.mrf.mxu1  ;;  %v9761_v58 = vpop.f32.mrf.mxu0  ;;  %8315 = vmatprep.subr.bf16.mxu0 %v8864_v43  ;;  %8274 = vmatpush3.bf16.msra.mxu1 %v8865_v8 }
 0x14b   : > { %11575 = vst [vmem:[#allocation4_spill] sm:$0xff] %v9761_v58  ;;  %v9763_v5 = vadd.f32 %v7972_v34, %v960_v52 }
 0x14c   : > { %v7991_v42 = vpop.f32.mrf.mxu1  ;;  %v8039_v13 = vpop.f32.mrf.mxu0 }
 0x14d   : > { %v1545_v46 = vadd.f32 %v7991_v42, %v9643_v4  ;;  %8316 = vmatpush3.bf16.msra.mxu0 %v8864_v43  ;;  %v8868_v42 = vld [vmem:[%s11567_s3 + $0x40] sm:$0xff]  }
 0x14e   : > { %v1416_v22 = vpop.f32.mrf.mxu1  ;;  %v1722_v0 = vpop.f32.mrf.mxu0  ;;  %8317 = vmatprep.subr.bf16.mxu0 %v8866_v48  ;;  %8275 = vmatprep.subr.bf16.mxu1 %v8868_v42 }
 0x14f   : > { %v9769_v3 = vadd.f32 %v8039_v13, %v1545_v46  ;;  %v1543_v59 = vadd.f32 %v1416_v22, %v9646_v63  ;;  %8276 = vmatpush3.bf16.msra.mxu1 %v8868_v42 }
 0x150   : > { %v7992_v32 = vpop.f32.mrf.mxu1  ;;  %v8040_v50 = vpop.f32.mrf.mxu0 }
 0x151   : > { %v9778_v47 = vadd.f32 %v1722_v0, %v1543_v59  ;;  %v1546_v4 = vadd.f32 %v7992_v32, %v9649_v19  ;;  %8318 = vmatpush3.bf16.msra.mxu0 %v8866_v48  ;;  %v3337_v0 = vld [vmem:[#allocation2 + $0x1] sm:$0xff]  ;;  %v3338_v59 = vld [vmem:[#allocation2 + $0x9] sm:$0xff] }
 0x152   : > { %v9781_v2 = vpop.f32.mrf.mxu1  ;;  %v9783_v18 = vpop.f32.mrf.mxu0  ;;  %8319 = vmatprep.subr.bf16.mxu0 %v8867_v20  ;;  %v3369_v43 = vpack.c.bf16 %v3338_v59, %v3337_v0 }
 0x153   : > { %v9785_v63 = vadd.f32 %v8040_v50, %v1546_v4  ;;  %v8869_v50 = vld [vmem:[%s11567_s3 + $0x8] sm:$0xff]  }
 0x154   : > { %v7995_v24 = vpop.f32.mrf.mxu1  ;;  %v8043_v19 = vpop.f32.mrf.mxu0  ;;  %8277 = vmatprep.mubr.bf16.mxu1 %v3369_v43 }
 0x155   : > { %v1549_v39 = vadd.f32 %v7995_v24, %v9655_v27  ;;  %8320 = vmatpush3.bf16.msra.mxu0 %v8867_v20 }
 0x156   : > { %v1432_v9 = vpop.f32.mrf.mxu1  ;;  %v1738_v51 = vpop.f32.mrf.mxu0  ;;  %8321 = vmatprep.subr.bf16.mxu0 %v8869_v50 }
 0x157   : > { %v9794_v34 = vadd.f32 %v8043_v19, %v1549_v39  ;;  %v1547_v52 = vadd.f32 %v1432_v9, %v9658_v12  ;;  %v8870_v9 = vld [vmem:[%s11567_s3] sm:$0xff]  }
 0x158   : > { %v7996_v13 = vpop.f32.mrf.mxu1  ;;  %v8044_v27 = vpop.f32.mrf.mxu0 }
 0x159   : > { %v9803_v46 = vadd.f32 %v1738_v51, %v1547_v52  ;;  %v1550_v22 = vadd.f32 %v7996_v13, %v9661_v1  ;;  %8322 = vmatpush3.bf16.msra.mxu0 %v8869_v50 }
 0x15a   : > { %v9806_v17 = vpop.f32.mrf.mxu1  ;;  %v9808_v12 = vpop.f32.mrf.mxu0  ;;  %8323 = vmatprep.subr.bf16.mxu0 %v8870_v9 }
 0x15b   : > { %v9810_v32 = vadd.f32 %v8044_v27, %v1550_v22 }
 0x15c   : > { %v7999_v4 = vpop.f32.mrf.mxu1  ;;  %v8047_v8 = vpop.f32.mrf.mxu0 }
 0x15d   : > { %v1553_v1 = vadd.f32 %v7999_v4, %v9667_v11  ;;  %8324 = vmatpush3.bf16.msra.mxu0 %v8870_v9 }
 0x15e   : > { %v1448_v48 = vpop.f32.mrf.mxu1  ;;  %v1754_v24 = vpop.f32.mrf.mxu0 }
 0x15f   : > { %v9816_v19 = vadd.f32 %v8047_v8, %v1553_v1  ;;  %v1551_v39 = vadd.f32 %v1448_v48, %v9670_v29 }
 0x160   : > { %v8000_v51 = vpop.f32.mrf.mxu1  ;;  %v8048_v52 = vpop.f32.mrf.mxu0 }
 0x161   : > { %v9822_v20 = vadd.f32 %v1754_v24, %v1551_v39  ;;  %v1554_v42 = vadd.f32 %v8000_v51, %v9673_v49 }
 0x162   : > { %v9825_v11 = vpop.f32.mrf.mxu1  ;;  %v9827_v13 = vpop.f32.mrf.mxu0 }
 0x163   : > { %v9829_v27 = vadd.f32 %v8048_v52, %v1554_v42 }
 0x164   : > { %v8003_v22 = vpop.f32.mrf.mxu1  ;;  %v8051_v29 = vpop.f32.mrf.mxu0 }
 0x165   : > { %v1557_v0 = vadd.f32 %v8003_v22, %v9679_v57 }
 0x166   : > { %v1464_v59 = vpop.f32.mrf.mxu1  ;;  %v1770_v43 = vpop.f32.mrf.mxu0 }
 0x167   : > { %v9833_v50 = vadd.f32 %v8051_v29, %v1557_v0  ;;  %v1555_v49 = vadd.f32 %v1464_v59, %v9685_v14  ;;  %v9849_v14 = vld [vmem:[%s11567_s3 + $0xb8] sm:$0xff]  }
 0x168   : > { %v8004_v4 = vpop.f32.mrf.mxu1  ;;  %v8052_v8 = vpop.f32.mrf.mxu0  ;;  %11580 = vst [vmem:[#allocation9_spill] sm:$0xff] %v9849_v14  ;;  %8357 = vmatprep.subr.bf16.mxu1 %v9849_v14 }
 0x169   : > { %11576 = vst [vmem:[#allocation5_spill] sm:$0xff] %v9833_v50  ;;  %v9836_v1 = vadd.f32 %v1770_v43, %v1555_v49  ;;  %v1558_v48 = vadd.f32 %v8004_v4, %v9688_v38 }
 0x16a   : > { %v9839_v24 = vpop.f32.mrf.mxu1  ;;  %v9841_v39 = vpop.f32.mrf.mxu0 }
 0x16b   : > { %11577 = vst [vmem:[#allocation6_spill] sm:$0xff] %v9836_v1  ;;  %11578 = vst [vmem:[#allocation7_spill] sm:$0xff] %v9841_v39  ;;  %v9843_v9 = vadd.f32 %v8052_v8, %v1558_v48 }
 0x16c   : > { %v8007_v44 = vpop.f32.mrf.mxu1  ;;  %v8055_v57 = vpop.f32.mrf.mxu0 }
 0x16d   : > { %11579 = vst [vmem:[#allocation8_spill] sm:$0xff] %v9843_v9  ;;  %v1561_v51 = vadd.f32 %v8007_v44, %v9694_v15 }
 0x16e   : > { %v1480_v52 = vpop.f32.mrf.mxu1  ;;  %v1786_v42 = vpop.f32.mrf.mxu0 }
 0x16f   : > { %v9851_v22 = vadd.f32 %v8055_v57, %v1561_v51  ;;  %v1559_v38 = vadd.f32 %v1480_v52, %v9700_v10 }
 0x170   : > { %v8008_v29 = vpop.f32.mrf.mxu1  ;;  %v8056_v0 = vpop.f32.mrf.mxu0 }
 0x171   : > { %11581 = vst [vmem:[#allocation10_spill] sm:$0xff] %v9851_v22  ;;  %v9855_v59 = vadd.f32 %v1786_v42, %v1559_v38  ;;  %v1562_v43 = vadd.f32 %v8008_v29, %v9707_v53 }
 0x172   : > { %v9858_v15 = vpop.f32.mrf.mxu1  ;;  %v9860_v49 = vpop.f32.mrf.mxu0 }
 0x173   : > { %11582 = vst [vmem:[#allocation11_spill] sm:$0xff] %v9855_v59  ;;  %11583 = vst [vmem:[#allocation12_spill] sm:$0xff] %v9860_v49  ;;  %v9862_v4 = vadd.f32 %v8056_v0, %v1562_v43 }
 0x174   : > { %v8011_v8 = vpop.f32.mrf.mxu1  ;;  %v8059_v48 = vpop.f32.mrf.mxu0 }
 0x175   : > { %11584 = vst [vmem:[#allocation13_spill] sm:$0xff] %v9862_v4  ;;  %v1565_v44 = vadd.f32 %v8011_v8, %v9710_v21 }
 0x176   : > { %v1496_v57 = vpop.f32.mrf.mxu1  ;;  %v1802_v10 = vpop.f32.mrf.mxu0 }
 0x177   : > { %v9865_v51 = vadd.f32 %v8059_v48, %v1565_v44  ;;  %v1563_v52 = vadd.f32 %v1496_v57, %v9716_v60 }
 0x178   : > { %v8012_v42 = vpop.f32.mrf.mxu1  ;;  %v8060_v38 = vpop.f32.mrf.mxu0 }
 0x179   : > { %11585 = vst [vmem:[#allocation14_spill] sm:$0xff] %v9865_v51  ;;  %v9868_v59 = vadd.f32 %v1802_v10, %v1563_v52  ;;  %v1566_v53 = vadd.f32 %v8012_v42, %v9723_v40 }
 0x17a   : > { %v9871_v29 = vpop.f32.mrf.mxu1  ;;  %v9873_v0 = vpop.f32.mrf.mxu0 }
 0x17b   : > { %11586 = vst [vmem:[#allocation15_spill] sm:$0xff] %v9868_v59  ;;  %11587 = vst [vmem:[#allocation16_spill] sm:$0xff] %v9871_v29  ;;  %v9875_v43 = vadd.f32 %v8060_v38, %v1566_v53 }
 0x17c   : > { %11588 = vst [vmem:[#allocation17_spill] sm:$0xff] %v9873_v0  ;;  %v8015_v4 = vpop.f32.mrf.mxu1  ;;  %v8063_v21 = vpop.f32.mrf.mxu0 }
 0x17d   : > { %11589 = vst [vmem:[#allocation18_spill] sm:$0xff] %v9875_v43  ;;  %v1569_v8 = vadd.f32 %v8015_v4, %v9728_v28  ;;  %v9893_v4 = vld [vmem:[%s11567_s3 + $0xf8] sm:$0xff]  }
 0x17e   : > { %v1512_v48 = vpop.f32.mrf.mxu1  ;;  %v1818_v44 = vpop.f32.mrf.mxu0  ;;  %11595 = vst [vmem:[#allocation24_spill] sm:$0xff] %v9893_v4  ;;  %8405 = vmatprep.subr.bf16.mxu0 %v9893_v4 }
 0x17f   : > { %v9878_v51 = vadd.f32 %v8063_v21, %v1569_v8  ;;  %v1567_v60 = vadd.f32 %v1512_v48, %v9734_v23 }
 0x180   : > { %v8016_v57 = vpop.f32.mrf.mxu1  ;;  %v8064_v10 = vpop.f32.mrf.mxu0 }
 0x181   : > { %11590 = vst [vmem:[#allocation19_spill] sm:$0xff] %v9878_v51  ;;  %v9881_v52 = vadd.f32 %v1818_v44, %v1567_v60  ;;  %v1570_v40 = vadd.f32 %v8016_v57, %v9741_v62 }
 0x182   : > { %v9884_v42 = vpop.f32.mrf.mxu1  ;;  %v9886_v38 = vpop.f32.mrf.mxu0 }
 0x183   : > { %11591 = vst [vmem:[#allocation20_spill] sm:$0xff] %v9881_v52  ;;  %11592 = vst [vmem:[#allocation21_spill] sm:$0xff] %v9884_v42  ;;  %v9888_v53 = vadd.f32 %v8064_v10, %v1570_v40 }
 0x184   : > { %11593 = vst [vmem:[#allocation22_spill] sm:$0xff] %v9886_v38  ;;  %v8019_v43 = vpop.f32.mrf.mxu1  ;;  %v8067_v28 = vpop.f32.mrf.mxu0 }
 0x185   : > { %11594 = vst [vmem:[#allocation23_spill] sm:$0xff] %v9888_v53  ;;  %v1573_v23 = vadd.f32 %v8019_v43, %v9747_v7 }
 0x186   : > { %v1528_v21 = vpop.f32.mrf.mxu1  ;;  %v1834_v8 = vpop.f32.mrf.mxu0 }
 0x187   : > { %v9897_v62 = vadd.f32 %v8067_v28, %v1573_v23  ;;  %v1571_v48 = vadd.f32 %v1528_v21, %v9756_v54 }
 0x188   : > { %v8020_v44 = vpop.f32.mrf.mxu1  ;;  %v8068_v60 = vpop.f32.mrf.mxu0 }
 0x189   : > { %11596 = vst [vmem:[#allocation25_spill] sm:$0xff] %v9897_v62  ;;  %v9900_v57 = vadd.f32 %v1834_v8, %v1571_v48  ;;  %v1574_v10 = vadd.f32 %v8020_v44, %v9763_v5 }
 0x18a   : > { %v9903_v40 = vpop.f32.mrf.mxu1  ;;  %v9905_v53 = vpop.f32.mrf.mxu0 }
 0x18b   : > { %11597 = vst [vmem:[#allocation26_spill] sm:$0xff] %v9900_v57  ;;  %11598 = vst [vmem:[#allocation27_spill] sm:$0xff] %v9903_v40  ;;  %v9907_v52 = vadd.f32 %v8068_v60, %v1574_v10 }
 0x18c   : > { %11599 = vst [vmem:[#allocation28_spill] sm:$0xff] %v9905_v53  ;;  %v8087_v7 = vpop.f32.mrf.mxu1  ;;  %v9909_v43 = vpop.f32.mrf.mxu0 }
 0x18d   : > { %11600 = vst [vmem:[#allocation29_spill] sm:$0xff] %v9907_v52 }
 0x18e   : > { %v2028_v38 = vpop.f32.mrf.mxu1  ;;  %v9911_v28 = vpop.f32.mrf.mxu0 }
 0x190   : > { %v9913_v23 = vpop.f32.mrf.mxu1  ;;  %v9915_v54 = vpop.f32.mrf.mxu0 }
 0x192   : > { %v9917_v21 = vpop.f32.mrf.mxu1  ;;  %v9919_v8 = vpop.f32.mrf.mxu0 }
 0x194   : > { %v9921_v5 = vpop.f32.mrf.mxu1  ;;  %v9923_v48 = vpop.f32.mrf.mxu0 }
 0x196   : > { %v9925_v44 = vpop.f32.mrf.mxu1  ;;  %v9927_v60 = vpop.f32.mrf.mxu0 }
 0x198   : > { %v9929_v10 = vpop.f32.mrf.mxu1  ;;  %v9931_v52 = vpop.f32.mrf.mxu0 }
 0x19a   : > { %v9933_v53 = vpop.f32.mrf.mxu1  ;;  %v9935_v57 = vpop.f32.mrf.mxu0 }
 0x19c   : > { %v9937_v62 = vpop.f32.mrf.mxu1  ;;  %v9939_v40 = vpop.f32.mrf.mxu0 }
 0x19e   : > { %v9941_v51 = vpop.f32.mrf.mxu1  ;;  %v9943_v42 = vpop.f32.mrf.mxu0 }
 0x1a0   : > { %v9945_v0 = vpop.f32.mrf.mxu1  ;;  %v9947_v59 = vpop.f32.mrf.mxu0 }
 0x1a1   : > { %11601 = vst [vmem:[#allocation30_spill] sm:$0xff] %v9947_v59 }
 0x1a2   : > { %v9949_v4 = vpop.f32.mrf.mxu1  ;;  %v9951_v29 = vpop.f32.mrf.mxu0 }
 0x1a3   : > { %11602 = vst [vmem:[#allocation31_spill] sm:$0xff] %v9951_v29 }
 0x1a4   : > { %v9953_v22 = vpop.f32.mrf.mxu1  ;;  %v9955_v9 = vpop.f32.mrf.mxu0 }
 0x1a5   : > { %11603 = vst [vmem:[#allocation32_spill] sm:$0xff] %v9953_v22  ;;  %11604 = vst [vmem:[#allocation33_spill] sm:$0xff] %v9955_v9 }
 0x1a6   : > { %v9957_v49 = vpop.f32.mrf.mxu1  ;;  %v9959_v14 = vpop.f32.mrf.mxu0 }
 0x1a7   : > { %11605 = vst [vmem:[#allocation34_spill] sm:$0xff] %v9957_v49  ;;  %11606 = vst [vmem:[#allocation35_spill] sm:$0xff] %v9959_v14 }
 0x1a8   : > { %v9961_v39 = vpop.f32.mrf.mxu1  ;;  %v9963_v58 = vpop.f32.mrf.mxu0 }
 0x1a9   : > { %11607 = vst [vmem:[#allocation36_spill] sm:$0xff] %v9961_v39  ;;  %11608 = vst [vmem:[#allocation37_spill] sm:$0xff] %v9963_v58 }
 0x1aa   : > { %v9965_v61 = vpop.f32.mrf.mxu1  ;;  %v9967_v1 = vpop.f32.mrf.mxu0 }
 0x1ab   : > { %11609 = vst [vmem:[#allocation38_spill] sm:$0xff] %v9965_v61  ;;  %11610 = vst [vmem:[#allocation39_spill] sm:$0xff] %v9967_v1 }
 0x1ac   : > { %v9969_v59 = vpop.f32.mrf.mxu1  ;;  %v9971_v50 = vpop.f32.mrf.mxu0 }
 0x1ad   : > { %11611 = vst [vmem:[#allocation40_spill] sm:$0xff] %v9969_v59  ;;  %11612 = vst [vmem:[#allocation41_spill] sm:$0xff] %v9971_v50 }
 0x1ae   : > { %v9973_v29 = vpop.f32.mrf.mxu1  ;;  %v9975_v22 = vpop.f32.mrf.mxu0 }
 0x1af   : > { %11613 = vst [vmem:[#allocation42_spill] sm:$0xff] %v9973_v29  ;;  %11614 = vst [vmem:[#allocation43_spill] sm:$0xff] %v9975_v22 }
 0x1b0   : > { %v9977_v9 = vpop.f32.mrf.mxu1  ;;  %v9979_v49 = vpop.f32.mrf.mxu0 }
 0x1b1   : > { %11615 = vst [vmem:[#allocation44_spill] sm:$0xff] %v9977_v9  ;;  %11616 = vst [vmem:[#allocation45_spill] sm:$0xff] %v9979_v49 }
 0x1b2   : > { %v9981_v14 = vpop.f32.mrf.mxu1  ;;  %v9983_v39 = vpop.f32.mrf.mxu0 }
 0x1b3   : > { %11617 = vst [vmem:[#allocation46_spill] sm:$0xff] %v9981_v14  ;;  %11618 = vst [vmem:[#allocation47_spill] sm:$0xff] %v9983_v39 }
 0x1b4   : > { %v9985_v58 = vpop.f32.mrf.mxu1  ;;  %v9987_v61 = vpop.f32.mrf.mxu0 }
 0x1b5   : > { %11619 = vst [vmem:[#allocation48_spill] sm:$0xff] %v9985_v58  ;;  %11620 = vst [vmem:[#allocation49_spill] sm:$0xff] %v9987_v61 }
 0x1b6   : > { %v9989_v1 = vpop.f32.mrf.mxu1  ;;  %v9991_v59 = vpop.f32.mrf.mxu0 }
 0x1b7   : > { %11621 = vst [vmem:[#allocation50_spill] sm:$0xff] %v9989_v1  ;;  %11622 = vst [vmem:[#allocation51_spill] sm:$0xff] %v9991_v59 }
 0x1b8   : > { %v9993_v50 = vpop.f32.mrf.mxu1  ;;  %v9995_v29 = vpop.f32.mrf.mxu0 }
 0x1b9   : > { %11623 = vst [vmem:[#allocation52_spill] sm:$0xff] %v9993_v50  ;;  %11624 = vst [vmem:[#allocation53_spill] sm:$0xff] %v9995_v29 }
 0x1ba   : > { %v9997_v22 = vpop.f32.mrf.mxu1  ;;  %v9999_v9 = vpop.f32.mrf.mxu0 }
 0x1bb   : > { %11625 = vst [vmem:[#allocation54_spill] sm:$0xff] %v9997_v22  ;;  %11626 = vst [vmem:[#allocation55_spill] sm:$0xff] %v9999_v9 }
 0x1bc   : > { %v10001_v49 = vpop.f32.mrf.mxu1  ;;  %v10003_v14 = vpop.f32.mrf.mxu0 }
 0x1bd   : > { %11627 = vst [vmem:[#allocation56_spill] sm:$0xff] %v10001_v49  ;;  %11628 = vst [vmem:[#allocation57_spill] sm:$0xff] %v10003_v14  ;;  %v1544_v14 = vadd.f32 %v9781_v2, %v9652_v56  ;;  %v904_v56 = vadd.f32 %v9703_v30, %v9578_v33  ;;  %v10054_v33 = vld [vmem:[%s11566_s2] ss:$0 sm:$0xff] }
 0x1be   : > { %v10005_v39 = vpop.f32.mrf.mxu1  ;;  %v10007_v58 = vpop.f32.mrf.mxu0 }
 0x1bf   : > { %11629 = vst [vmem:[#allocation58_spill] sm:$0xff] %v10007_v58  ;;  %v2157_v58 = vadd.f32 %v8087_v7, %v9769_v3 }
 0x1c0   : > { %v10009_v61 = vpop.f32.mrf.mxu1  ;;  %v10011_v1 = vpop.f32.mrf.mxu0 }
 0x1c1   : > { %11630 = vst [vmem:[#allocation59_spill] sm:$0xff] %v10009_v61  ;;  %11631 = vst [vmem:[#allocation60_spill] sm:$0xff] %v10011_v1 }
 0x1c2   : > { %v10013_v59 = vpop.f32.mrf.mxu1  ;;  %v10015_v50 = vpop.f32.mrf.mxu0 }
 0x1c3   : > { %11632 = vst [vmem:[#allocation61_spill] sm:$0xff] %v10013_v59  ;;  %11633 = vst [vmem:[#allocation62_spill] sm:$0xff] %v10015_v50  ;;  %v2155_v59 = vadd.f32 %v2028_v38, %v9778_v47 }
 0x1c4   : > { %v10017_v29 = vpop.f32.mrf.mxu1  ;;  %v10019_v22 = vpop.f32.mrf.mxu0 }
 0x1c5   : > { %11634 = vst [vmem:[#allocation63_spill] sm:$0xff] %v10017_v29  ;;  %11635 = vst [vmem:[#allocation64_spill] sm:$0xff] %v10019_v22  ;;  %v1850_v22 = vadd.f32 %v9783_v18, %v1544_v14  ;;  %v2462_v7 = vadd.f32 %v9911_v28, %v2155_v59  ;;  %v1548_v18 = vadd.f32 %v9806_v17, %v9664_v25 }
 0x1c6   : > { %v10021_v9 = vpop.f32.mrf.mxu1  ;;  %v10023_v49 = vpop.f32.mrf.mxu0  ;;  %v1254_v59 = vadd.f32 %v9705_v26, %v904_v56  ;;  %v2162_v26 = vadd.f32 %v9929_v10, %v9810_v32 }
 0x1c7   : > { %11636 = vst [vmem:[#allocation65_spill] sm:$0xff] %v10021_v9  ;;  %11637 = vst [vmem:[#allocation66_spill] sm:$0xff] %v10023_v49  ;;  %v2464_v9 = vadd.f32 %v9909_v43, %v2157_v58  ;;  %v2158_v49 = vadd.f32 %v9913_v23, %v9785_v63  ;;  %v2156_v47 = vadd.f32 %v9917_v21, %v1850_v22 }
 0x1c8   : > { %v10028_v61 = vpop.f32.mrf.mxu1  ;;  %v10030_v1 = vpop.f32.mrf.mxu0  ;;  %v2161_v58 = vadd.f32 %v9921_v5, %v9794_v34 }
 0x1c9   : > { %v2465_v14 = vadd.f32 %v9915_v54, %v2158_v49  ;;  %v2463_v34 = vadd.f32 %v9919_v8, %v2156_v47  ;;  %v1854_v49 = vadd.f32 %v9808_v12, %v1548_v18 }
 0x1ca   : > { %v10033_v50 = vpop.f32.mrf.mxu1  ;;  %v10035_v29 = vpop.f32.mrf.mxu0  ;;  %v2468_v54 = vadd.f32 %v9923_v48, %v2161_v58 }
 0x1cb   : > { %11638 = vst [vmem:[#allocation67_spill] sm:$0xff] %v10035_v29  ;;  %v920_v29 = vadd.f32 %v9719_v41, %v9598_v45  ;;  %v2159_v45 = vadd.f32 %v9925_v44, %v9803_v46 }
 0x1cc   : > { %v8183_v3 = vpop.f32.mrf.mxu1  ;;  %v8231_v2 = vpop.f32.mrf.mxu0 }
 0x1cd   : > { %v2770_v38 = vadd.f32 %v8183_v3, %v2464_v9  ;;  %v10063_v23 = vadd.f32 %v9721_v35, %v920_v29  ;;  %v936_v3 = vadd.f32 %v9737_v36, %v9622_v16  ;;  %v1552_v35 = vadd.f32 %v9825_v11, %v9676_v6 }
 0x1ce   : > { %v2641_v30 = vpop.f32.mrf.mxu1  ;;  %v2947_v63 = vpop.f32.mrf.mxu0  ;;  %v2466_v12 = vadd.f32 %v9927_v60, %v2159_v45  ;;  %v2160_v29 = vadd.f32 %v9933_v53, %v1854_v49  ;;  %v2469_v16 = vadd.f32 %v9931_v52, %v2162_v26  ;;  %v2165_v6 = vadd.f32 %v9937_v62, %v9816_v19  ;;  %v8872_v26 = vld [vmem:[%s11567_s3 + $0xb0] sm:$0xff]  }
 0x1cf   : > { %v3076_v22 = vadd.f32 %v8231_v2, %v2770_v38  ;;  %v2768_v9 = vadd.f32 %v2641_v30, %v2462_v7  ;;  %v952_v38 = vadd.f32 %v9759_v37, %v9640_v55  ;;  %v2163_v36 = vadd.f32 %v9941_v51, %v9822_v20 }
 0x1d0   : > { %v8184_v25 = vpop.f32.mrf.mxu1  ;;  %v8232_v41 = vpop.f32.mrf.mxu0  ;;  %v1556_v55 = vadd.f32 %v9839_v24, %v9691_v31  ;;  %v1560_v37 = vadd.f32 %v9858_v15, %v1254_v59  ;;  %v2467_v19 = vadd.f32 %v9935_v57, %v2160_v29 }
 0x1d1   : > { %v3115_v17 = vadd.f32 %v10054_v33, %v3076_v22  ;;  %v3074_v43 = vadd.f32 %v2947_v63, %v2768_v9  ;;  %v2771_v28 = vadd.f32 %v8184_v25, %v2465_v14  ;;  %v1858_v63 = vadd.f32 %v9827_v13, %v1552_v35 }
 0x1d2   : > { %v2644_v21 = vpop.f32.mrf.mxu1  ;;  %v2950_v46 = vpop.f32.mrf.mxu0  ;;  %v2472_v9 = vadd.f32 %v9939_v40, %v2165_v6  ;;  %v2470_v45 = vadd.f32 %v9943_v42, %v2163_v36  ;;  %v2166_v13 = vadd.f32 %v9945_v0, %v9829_v27  ;;  %v11642_v42 = vld [vmem:[#allocation34_spill] sm:$0xff]  ;;  %v11647_v36 = vld [vmem:[#allocation9_spill] sm:$0xff] }
 0x1d3   : > { %v3147_v5 = vmax.f32 %v3115_v17, 0.0  ;;  %v3113_v44 = vadd.f32 %v10054_v33, %v3074_v43  ;;  %v3077_v8 = vadd.f32 %v8232_v41, %v2771_v28  ;;  %v2769_v56 = vadd.f32 %v2644_v21, %v2463_v34  ;;  %v11639_v17 = vld [vmem:[#allocation5_spill] sm:$0xff]  ;;  %v11640_v43 = vld [vmem:[#allocation32_spill] sm:$0xff]  ;;  %v11641_v28 = vld [vmem:[#allocation6_spill] sm:$0xff] }
 0x1d4   : > { %v8187_v48 = vpop.f32.mrf.mxu1  ;;  %v8235_v2 = vpop.f32.mrf.mxu0  ;;  %v2164_v34 = vadd.f32 %v9949_v4, %v1858_v63  ;;  %v2169_v40 = vadd.f32 %v11640_v43, %v11639_v17  ;;  %v2167_v49 = vadd.f32 %v11642_v42, %v11641_v28 }
 0x1d5   : > { %3179 = vst [vmem:[#allocation2 + $0x31] sm:$0xff] %v3147_v5  ;;  %v3145_v32 = vmax.f32 %v3113_v44, 0.0  ;;  %v3116_v10 = vadd.f32 %v10054_v33, %v3077_v8  ;;  %v3075_v7 = vadd.f32 %v2950_v46, %v2769_v56  ;;  %v2774_v47 = vadd.f32 %v8187_v48, %v2468_v54  ;;  %v11643_v44 = vld [vmem:[#allocation3_spill] sm:$0xff]  ;;  %v11644_v56 = vld [vmem:[#allocation4_spill] sm:$0xff]  ;;  %v11646_v48 = vld [vmem:[#allocation30_spill] sm:$0xff] }
 0x1d6   : > { %v2657_v11 = vpop.f32.mrf.mxu1  ;;  %v2963_v53 = vpop.f32.mrf.mxu0  ;;  %v10109_v8 = vadd.f32 %v11643_v44, %v936_v3  ;;  %v10112_v35 = vadd.f32 %v11644_v56, %v952_v38  ;;  %v11648_v3 = vld [vmem:[#allocation12_spill] sm:$0xff]  ;;  %v11649_v38 = vld [vmem:[#allocation31_spill] sm:$0xff] }
 0x1d7   : > { %3177 = vst [vmem:[#allocation2 + $0x19] sm:$0xff] %v3145_v32  ;;  %v3148_v60 = vmax.f32 %v3116_v10, 0.0  ;;  %v3114_v18 = vadd.f32 %v10054_v33, %v3075_v7  ;;  %v3080_v58 = vadd.f32 %v8235_v2, %v2774_v47  ;;  %v2772_v30 = vadd.f32 %v2657_v11, %v2466_v12  ;;  %v11645_v12 = vld [vmem:[#allocation7_spill] sm:$0xff] }
 0x1d8   : > { %v8188_v52 = vpop.f32.mrf.mxu1  ;;  %v8236_v62 = vpop.f32.mrf.mxu0  ;;  %v1862_v29 = vadd.f32 %v11645_v12, %v1556_v55  ;;  %v2473_v2 = vadd.f32 %v11646_v48, %v2166_v13  ;;  %v10119_v11 = vadd.f32 %v11648_v3, %v1560_v37 }
 0x1d9   : > { %3180 = vst [vmem:[#allocation2 + $0x39] sm:$0xff] %v3148_v60  ;;  %v3146_v20 = vmax.f32 %v3114_v18, 0.0  ;;  %v3119_v51 = vadd.f32 %v10054_v33, %v3080_v58  ;;  %v3078_v14 = vadd.f32 %v2963_v53, %v2772_v30  ;;  %v2775_v22 = vadd.f32 %v8188_v52, %v2469_v16  ;;  %v11651_v58 = vld [vmem:[#allocation35_spill] sm:$0xff] }
 0x1da   : > { %v2660_v31 = vpop.f32.mrf.mxu1  ;;  %v2966_v24 = vpop.f32.mrf.mxu0  ;;  %v3371_v15 = vpack.c.bf16 %v3148_v60, %v3147_v5  ;;  %v2471_v53 = vadd.f32 %v11649_v38, %v2164_v34  ;;  %v11650_v60 = vld [vmem:[#allocation33_spill] sm:$0xff]  ;;  %v2474_v30 = vadd.f32 %v11651_v58, %v2167_v49  ;;  %v11663_v58 = vld [vmem:[#allocation43_spill] sm:$0xff] }
 0x1db   : > { %3178 = vst [vmem:[#allocation2 + $0x21] sm:$0xff] %v3146_v20  ;;  %v3151_v57 = vmax.f32 %v3119_v51, 0.0  ;;  %v10096_v59 = vadd.f32 %v10054_v33, %v3078_v14  ;;  %v3081_v25 = vadd.f32 %v8236_v62, %v2775_v22  ;;  %v2773_v41 = vadd.f32 %v2660_v31, %v2467_v19  ;;  %v8873_v19 = vld [vmem:[%s11567_s3 + $0xa8] sm:$0xff]   ;;  %v11652_v14 = vld [vmem:[#allocation8_spill] sm:$0xff] }
 0x1dc   : > { %v8191_v54 = vpop.f32.mrf.mxu1  ;;  %v8239_v27 = vpop.f32.mrf.mxu0  ;;  %v3370_v0 = vpack.c.bf16 %v3146_v20, %v3145_v32  ;;  %v2476_v18 = vadd.f32 %v11650_v60, %v2169_v40  ;;  %v11653_v22 = vld [vmem:[#allocation36_spill] sm:$0xff]  ;;  %v11655_v31 = vld [vmem:[#allocation10_spill] sm:$0xff]  ;;  %v3277_v49 = vld [vmem:[#allocation2 + $0x30] sm:$0xff] }
 0x1dd   : > { %3183 = vst [vmem:[#allocation2 + $0x61] sm:$0xff] %v3151_v57  ;;  %v3149_v21 = vmax.f32 %v10096_v59, 0.0  ;;  %v3120_v46 = vadd.f32 %v10054_v33, %v3081_v25  ;;  %v3079_v5 = vadd.f32 %v2966_v24, %v2773_v41  ;;  %v2778_v4 = vadd.f32 %v8191_v54, %v2472_v9  ;;  %v11656_v24 = vld [vmem:[#allocation40_spill] sm:$0xff]  ;;  %v11657_v54 = vld [vmem:[#allocation11_spill] sm:$0xff] }
 0x1de   : > { %v2673_v32 = vpop.f32.mrf.mxu1  ;;  %v2979_v10 = vpop.f32.mrf.mxu0  ;;  %8278 = vmatmul.mubr.bf16.vlgmr.msra.gmra.mxu1 %v3370_v0  ;;  %v2170_v9 = vadd.f32 %v11653_v22, %v11652_v14  ;;  %v3275_v42 = vld [vmem:[#allocation2 + $0x18] sm:$0xff] }
 0x1df   : > { %3181 = vst [vmem:[#allocation2 + $0x49] sm:$0xff] %v3149_v21  ;;  %v3152_v7 = vmax.f32 %v3120_v46, 0.0  ;;  %v3118_v47 = vadd.f32 %v10054_v33, %v3079_v5  ;;  %v3084_v16 = vadd.f32 %v8239_v27, %v2778_v4  ;;  %v2776_v6 = vadd.f32 %v2673_v32, %v2470_v45  ;;  %8281 = vmatprep.mubr.bf16.mxu1 %v3371_v15  ;;  %v11654_v45 = vld [vmem:[#allocation38_spill] sm:$0xff]  ;;  %v11659_v32 = vld [vmem:[#allocation16_spill] sm:$0xff] }
 0x1e0   : > { %8358 = vmatpush3.bf16.msra.mxu1 %v11647_v36  ;;  %v8192_v63 = vpop.f32.mrf.mxu1  ;;  %v8240_v55 = vpop.f32.mrf.mxu0  ;;  %v3278_v51 = vld [vmem:[#allocation2 + $0x38] sm:$0xff]  ;;  %v2168_v13 = vadd.f32 %v11654_v45, %v1862_v29  ;;  %v2173_v15 = vadd.f32 %v11656_v24, %v11655_v31  ;;  %v11658_v27 = vld [vmem:[#allocation42_spill] sm:$0xff] }
 0x1e1   : > { %8359 = vmatprep.subr.bf16.mxu1 %v8872_v26  ;;  %3184 = vst [vmem:[#allocation2 + $0x69] sm:$0xff] %v3152_v7  ;;  %v3150_v52 = vmax.f32 %v3118_v47, 0.0  ;;  %v10128_v62 = vadd.f32 %v10054_v33, %v3084_v16  ;;  %v3082_v37 = vadd.f32 %v2979_v10, %v2776_v6  ;;  %v2779_v20 = vadd.f32 %v8192_v63, %v2473_v2  ;;  %v8877_v2 = vld [vmem:[%s11567_s3 + $0xf0] sm:$0xff]   ;;  %v11667_v31 = vld [vmem:[#allocation46_spill] sm:$0xff] }
 0x1e2   : > { %v2676_v59 = vpop.f32.mrf.mxu1  ;;  %v2982_v25 = vpop.f32.mrf.mxu0  ;;  %v3276_v41 = vld [vmem:[#allocation2 + $0x20] sm:$0xff]  ;;  %v3373_v34 = vpack.c.bf16 %v3152_v7, %v3151_v57  ;;  %v2171_v0 = vadd.f32 %v11658_v27, %v11657_v54  ;;  %v10143_v44 = vpack.c.bf16 %v3278_v51, %v3277_v49  ;;  %v1564_v10 = vadd.f32 %v11659_v32, %v10063_v23  ;;  %v11661_v47 = vld [vmem:[#allocation39_spill] sm:$0xff]  ;;  %v11666_v51 = vld [vmem:[#allocation24_spill] sm:$0xff] }
 0x1e3   : > { %3182 = vst [vmem:[#allocation2 + $0x51] sm:$0xff] %v3150_v52  ;;  %v3155_v17 = vmax.f32 %v10128_v62, 0.0  ;;  %v10137_v43 = vadd.f32 %v10054_v33, %v3082_v37  ;;  %v3085_v40 = vadd.f32 %v8240_v55, %v2779_v20  ;;  %v2777_v28 = vadd.f32 %v2676_v59, %v2471_v53  ;;  %v11664_v55 = vld [vmem:[#allocation13_spill] sm:$0xff]  ;;  %v11669_v59 = vld [vmem:[#allocation48_spill] sm:$0xff] }
 0x1e4   : > { %8360 = vmatpush3.bf16.msra.mxu1 %v8872_v26  ;;  %v8195_v46 = vpop.f32.mrf.mxu1  ;;  %v8243_v5 = vpop.f32.mrf.mxu0  ;;  %v10141_v4 = vpack.c.bf16 %v3276_v41, %v3275_v42  ;;  %v3372_v57 = vpack.c.bf16 %v3150_v52, %v3149_v21  ;;  %v8874_v26 = vld [vmem:[%s11567_s3 + $0xa0] sm:$0xff]   ;;  %v2475_v16 = vadd.f32 %v11661_v47, %v2168_v13  ;;  %v2478_v63 = vadd.f32 %v11663_v58, %v2171_v0  ;;  %v11665_v52 = vld [vmem:[#allocation44_spill] sm:$0xff]  ;;  %v11670_v41 = vld [vmem:[#allocation15_spill] sm:$0xff] }
 0x1e5   : > { %8361 = vmatprep.subr.bf16.mxu1 %v8873_v19  ;;  %3187 = vst [vmem:[#allocation2 + $0x91] sm:$0xff] %v3155_v17  ;;  %v3153_v56 = vmax.f32 %v10137_v43, 0.0  ;;  %v3124_v12 = vadd.f32 %v10054_v33, %v3085_v40  ;;  %v3083_v29 = vadd.f32 %v2982_v25, %v2777_v28  ;;  %v2782_v48 = vadd.f32 %v8195_v46, %v2476_v18  ;;  %v11660_v21 = vld [vmem:[#allocation37_spill] sm:$0xff]  ;;  %v8875_v13 = vld [vmem:[%s11567_s3 + $0x98] sm:$0xff]  }
 0x1e6   : > { %v2477_v7 = vadd.f32 %v11660_v21, %v2170_v9  ;;  %8326 = vmatmul.mubr.bf16.vlgmr.msra.gmra.mxu0 %v10141_v4  ;;  %v2689_v6 = vpop.f32.mrf.mxu1  ;;  %v2995_v36 = vpop.f32.mrf.mxu0  ;;  %8282 = vmatmul.mubr.bf16.gmra.mxu1 %v3372_v57  ;;  %v11662_v18 = vld [vmem:[#allocation41_spill] sm:$0xff]  ;;  %v2174_v62 = vadd.f32 %v11665_v52, %v11664_v55  ;;  %v2172_v24 = vadd.f32 %v11667_v31, %v10119_v11  ;;  %v8881_v31 = vld [vmem:[%s11567_s3 + $0x88] sm:$0xff]  }
 0x1e7   : > { %3185 = vst [vmem:[#allocation2 + $0x79] sm:$0xff] %v3153_v56  ;;  %v3156_v3 = vmax.f32 %v3124_v12, 0.0  ;;  %v3122_v38 = vadd.f32 %v10054_v33, %v3083_v29  ;;  %v3088_v53 = vadd.f32 %v8243_v5, %v2782_v48  ;;  %v2780_v60 = vadd.f32 %v2689_v6, %v2474_v30  ;;  %8329 = vmatprep.mubr.bf16.mxu0 %v10143_v44  ;;  %v3279_v5 = vld [vmem:[#allocation2 + $0x48] sm:$0xff]  ;;  %v3281_v11 = vld [vmem:[#allocation2 + $0x60] sm:$0xff] }
 0x1e8   : > { %8285 = vmatprep.mubr.bf16.mxu1 %v3373_v34  ;;  %v2480_v23 = vadd.f32 %v11662_v18, %v2173_v15  ;;  %v8196_v37 = vpop.f32.mrf.mxu1  ;;  %v8244_v20 = vpop.f32.mrf.mxu0  ;;  %8362 = vmatpush3.bf16.msra.mxu1 %v8873_v19  ;;  %v3282_v45 = vld [vmem:[#allocation2 + $0x68] sm:$0xff]  ;;  %v8880_v6 = vld [vmem:[%s11567_s3 + $0xe0] sm:$0xff]  }
 0x1e9   : > { %8406 = vmatpush3.bf16.msra.mxu0 %v11666_v51  ;;  %3188 = vst [vmem:[#allocation2 + $0x99] sm:$0xff] %v3156_v3  ;;  %v3154_v14 = vmax.f32 %v3122_v38, 0.0  ;;  %v10166_v22 = vadd.f32 %v10054_v33, %v3088_v53  ;;  %v3086_v30 = vadd.f32 %v2995_v36, %v2780_v60  ;;  %v2783_v9 = vadd.f32 %v8196_v37, %v2477_v7  ;;  %v8879_v19 = vld [vmem:[%s11567_s3 + $0xe8] sm:$0xff]   ;;  %v11676_v37 = vld [vmem:[#allocation49_spill] sm:$0xff] }
 0x1ea   : > { %8363 = vmatprep.subr.bf16.mxu1 %v8874_v26  ;;  %8407 = vmatprep.subr.bf16.mxu0 %v8877_v2  ;;  %v11668_v15 = vld [vmem:[#allocation14_spill] sm:$0xff]  ;;  %v2692_v40 = vpop.f32.mrf.mxu1  ;;  %v2998_v28 = vpop.f32.mrf.mxu0  ;;  %v3280_v42 = vld [vmem:[#allocation2 + $0x50] sm:$0xff]  ;;  %v3375_v49 = vpack.c.bf16 %v3156_v3, %v3155_v17  ;;  %v10186_v48 = vpack.c.bf16 %v3282_v45, %v3281_v11  ;;  %v11674_v3 = vld [vmem:[#allocation45_spill] sm:$0xff] }
 0x1eb   : > { %v2177_v25 = vadd.f32 %v11669_v59, %v11668_v15  ;;  %v11671_v34 = vld [vmem:[#allocation50_spill] sm:$0xff]  ;;  %3186 = vst [vmem:[#allocation2 + $0x81] sm:$0xff] %v3154_v14  ;;  %v3159_v54 = vmax.f32 %v10166_v22, 0.0  ;;  %v10182_v27 = vadd.f32 %v10054_v33, %v3086_v30  ;;  %v3089_v0 = vadd.f32 %v8244_v20, %v2783_v9  ;;  %v11677_v20 = vld [vmem:[#allocation51_spill] sm:$0xff] }
 0x1ec   : > { %v2175_v43 = vadd.f32 %v11671_v34, %v11670_v41  ;;  %v2781_v46 = vadd.f32 %v2692_v40, %v2475_v16  ;;  %v8199_v57 = vpop.f32.mrf.mxu1  ;;  %v8247_v12 = vpop.f32.mrf.mxu0  ;;  %v10184_v29 = vpack.c.bf16 %v3280_v42, %v3279_v5  ;;  %v3374_v32 = vpack.c.bf16 %v3154_v14, %v3153_v56  ;;  %8364 = vmatpush3.bf16.msra.mxu1 %v8874_v26  ;;  %v8878_v16 = vld [vmem:[%s11567_s3 + $0x90] sm:$0xff]   ;;  %v11672_v56 = vld [vmem:[#allocation17_spill] sm:$0xff]  ;;  %v11680_v59 = vld [vmem:[#allocation54_spill] sm:$0xff] }
 0x1ed   : > { %8408 = vmatpush3.bf16.msra.mxu0 %v8877_v2  ;;  %3191 = vst [vmem:[#allocation2 + $0xc1] sm:$0xff] %v3159_v54  ;;  %v3157_v17 = vmax.f32 %v10182_v27, 0.0  ;;  %v3128_v21 = vadd.f32 %v10054_v33, %v3089_v0  ;;  %v2786_v47 = vadd.f32 %v8199_v57, %v2480_v23  ;;  %8365 = vmatprep.subr.bf16.mxu1 %v8875_v13  ;;  %v11673_v2 = vld [vmem:[#allocation21_spill] sm:$0xff]  ;;  %v11681_v41 = vld [vmem:[#allocation19_spill] sm:$0xff]  ;;  %v11682_v34 = vld [vmem:[#allocation56_spill] sm:$0xff] }
 0x1ee   : > { %v3087_v7 = vadd.f32 %v2998_v28, %v2781_v46  ;;  %8409 = vmatprep.subr.bf16.mxu0 %v8879_v19  ;;  %v1870_v26 = vadd.f32 %v11672_v56, %v1564_v10  ;;  %v1568_v36 = vadd.f32 %v11673_v2, %v10109_v8  ;;  %v2481_v38 = vadd.f32 %v11674_v3, %v2174_v62  ;;  %v2705_v53 = vpop.f32.mrf.mxu1  ;;  %v3011_v60 = vpop.f32.mrf.mxu0  ;;  %v11675_v10 = vld [vmem:[#allocation47_spill] sm:$0xff]  ;;  %v3283_v11 = vld [vmem:[#allocation2 + $0x78] sm:$0xff] }
 0x1ef   : > { %8330 = vmatmul.mubr.bf16.gmra.mxu0 %v10184_v29  ;;  %8286 = vmatmul.mubr.bf16.gmra.mxu1 %v3374_v32  ;;  %3189 = vst [vmem:[#allocation2 + $0xa9] sm:$0xff] %v3157_v17  ;;  %v3160_v18 = vmax.f32 %v3128_v21, 0.0  ;;  %v3092_v58 = vadd.f32 %v8247_v12, %v2786_v47  ;;  %v2784_v55 = vadd.f32 %v2705_v53, %v2478_v63  ;;  %v3285_v57 = vld [vmem:[#allocation2 + $0x90] sm:$0xff] }
 0x1f0   : > { %v3126_v23 = vadd.f32 %v10054_v33, %v3087_v7  ;;  %8333 = vmatprep.mubr.bf16.mxu0 %v10186_v48  ;;  %8289 = vmatprep.mubr.bf16.mxu1 %v3375_v49  ;;  %v2479_v52 = vadd.f32 %v11675_v10, %v2172_v24  ;;  %v2484_v8 = vadd.f32 %v11676_v37, %v2177_v25  ;;  %v8200_v51 = vpop.f32.mrf.mxu1  ;;  %v8248_v14 = vpop.f32.mrf.mxu0  ;;  %v3286_v45 = vld [vmem:[#allocation2 + $0x98] sm:$0xff]  ;;  %v8883_v3 = vld [vmem:[%s11567_s3 + $0xd0] sm:$0xff]  }
 0x1f1   : > { %v2482_v62 = vadd.f32 %v11677_v20, %v2175_v43  ;;  %8366 = vmatpush3.bf16.msra.mxu1 %v8875_v13  ;;  %8410 = vmatpush3.bf16.msra.mxu0 %v8879_v19  ;;  %3192 = vst [vmem:[#allocation2 + $0xc9] sm:$0xff] %v3160_v18  ;;  %v10207_v30 = vadd.f32 %v10054_v33, %v3092_v58  ;;  %v8882_v24 = vld [vmem:[%s11567_s3 + $0xd8] sm:$0xff]   ;;  %v11678_v13 = vld [vmem:[#allocation18_spill] sm:$0xff]  ;;  %v11687_v20 = vld [vmem:[#allocation55_spill] sm:$0xff] }
 0x1f2   : > { %v3158_v22 = vmax.f32 %v3126_v23, 0.0  ;;  %v3090_v9 = vadd.f32 %v3011_v60, %v2784_v55  ;;  %v2787_v63 = vadd.f32 %v8200_v51, %v2481_v38  ;;  %8367 = vmatprep.subr.bf16.mxu1 %v8878_v16  ;;  %8411 = vmatprep.subr.bf16.mxu0 %v8880_v6  ;;  %v11679_v19 = vld [vmem:[#allocation52_spill] sm:$0xff]  ;;  %v2176_v25 = vadd.f32 %v11680_v59, %v1870_v26  ;;  %v2708_v40 = vpop.f32.mrf.mxu1  ;;  %v3014_v28 = vpop.f32.mrf.mxu0  ;;  %v3284_v42 = vld [vmem:[#allocation2 + $0x80] sm:$0xff]  ;;  %v11691_v59 = vld [vmem:[#allocation59_spill] sm:$0xff] }
 0x1f3   : > { %v2178_v15 = vadd.f32 %v11679_v19, %v11678_v13  ;;  %v2181_v43 = vadd.f32 %v11682_v34, %v11681_v41  ;;  %v3377_v49 = vpack.c.bf16 %v3160_v18, %v3159_v54  ;;  %v3163_v27 = vmax.f32 %v10207_v30, 0.0  ;;  %v8884_v38 = vld [vmem:[%s11567_s3 + $0x80] sm:$0xff]   ;;  %v11685_v60 = vld [vmem:[#allocation20_spill] sm:$0xff] }
 0x1f4   : > { %3190 = vst [vmem:[#allocation2 + $0xb1] sm:$0xff] %v3158_v22  ;;  %v10222_v0 = vadd.f32 %v10054_v33, %v3090_v9  ;;  %v3093_v46 = vadd.f32 %v8248_v14, %v2787_v63  ;;  %v2785_v5 = vadd.f32 %v2708_v40, %v2479_v52  ;;  %v8203_v12 = vpop.f32.mrf.mxu1  ;;  %v8251_v32 = vpop.f32.mrf.mxu0  ;;  %v10224_v21 = vpack.c.bf16 %v3284_v42, %v3283_v11  ;;  %v10256_v19 = vld [vmem:[%s11567_s3 + $0x138] sm:$0xff]   ;;  %v11692_v41 = vld [vmem:[#allocation61_spill] sm:$0xff] }
 0x1f5   : > { %v10226_v7 = vpack.c.bf16 %v3286_v45, %v3285_v57  ;;  %v3376_v47 = vpack.c.bf16 %v3158_v22, %v3157_v17  ;;  %8368 = vmatpush3.bf16.msra.mxu1 %v8878_v16  ;;  %8412 = vmatpush3.bf16.msra.mxu0 %v8880_v6  ;;  %3195 = vst [vmem:[#allocation2 + $0xf1] sm:$0xff] %v3163_v27  ;;  %v11683_v17 = vld [vmem:[#allocation22_spill] sm:$0xff]  ;;  %v11684_v6 = vld [vmem:[#allocation53_spill] sm:$0xff] }
 0x1f6   : > { %v3161_v54 = vmax.f32 %v10222_v0, 0.0  ;;  %v3132_v56 = vadd.f32 %v10054_v33, %v3093_v46  ;;  %v3091_v26 = vadd.f32 %v3014_v28, %v2785_v5  ;;  %v2790_v2 = vadd.f32 %v8203_v12, %v2484_v8  ;;  %8369 = vmatprep.subr.bf16.mxu1 %v8881_v31  ;;  %8413 = vmatprep.subr.bf16.mxu0 %v8882_v24  ;;  %v2721_v23 = vpop.f32.mrf.mxu1  ;;  %v3027_v58 = vpop.f32.mrf.mxu0  ;;  %v3287_v11 = vld [vmem:[#allocation2 + $0xa8] sm:$0xff]  ;;  %v3289_v57 = vld [vmem:[#allocation2 + $0xc0] sm:$0xff] }
 0x1f7   : > { %v1874_v16 = vadd.f32 %v11683_v17, %v1568_v36  ;;  %v2485_v53 = vadd.f32 %v11684_v6, %v2178_v15  ;;  %v2179_v18 = vadd.f32 %v10005_v39, %v11685_v60  ;;  %8334 = vmatmul.mubr.bf16.gmra.mxu0 %v10224_v21  ;;  %8290 = vmatmul.mubr.bf16.gmra.mxu1 %v3376_v47  ;;  %v11686_v36 = vld [vmem:[#allocation27_spill] sm:$0xff]  ;;  %v11688_v39 = vld [vmem:[#allocation57_spill] sm:$0xff] }
 0x1f8   : > { %3193 = vst [vmem:[#allocation2 + $0xd9] sm:$0xff] %v3161_v54  ;;  %v3164_v55 = vmax.f32 %v3132_v56, 0.0  ;;  %v3130_v10 = vadd.f32 %v10054_v33, %v3091_v26  ;;  %v3096_v52 = vadd.f32 %v8251_v32, %v2790_v2  ;;  %v2788_v37 = vadd.f32 %v2721_v23, %v2482_v62  ;;  %8337 = vmatprep.mubr.bf16.mxu0 %v10226_v7  ;;  %v8204_v22 = vpop.f32.mrf.mxu1  ;;  %v8252_v30 = vpop.f32.mrf.mxu0  ;;  %v3290_v13 = vld [vmem:[#allocation2 + $0xc8] sm:$0xff]  ;;  %v11690_v15 = vld [vmem:[#allocation23_spill] sm:$0xff]  ;;  %v8886_v6 = vld [vmem:[%s11567_s3 + $0xc0] sm:$0xff]  }
 0x1f9   : > { %8293 = vmatprep.mubr.bf16.mxu1 %v3377_v49  ;;  %v1572_v8 = vadd.f32 %v11686_v36, %v10112_v35  ;;  %v2483_v51 = vadd.f32 %v11687_v20, %v2176_v25  ;;  %v2488_v14 = vadd.f32 %v11688_v39, %v2181_v43  ;;  %8370 = vmatpush3.bf16.msra.mxu1 %v8881_v31  ;;  %v8885_v35 = vld [vmem:[%s11567_s3 + $0xc8] sm:$0xff]   ;;  %v11697_v23 = vld [vmem:[#allocation65_spill] sm:$0xff] }
 0x1fa   : > { %8414 = vmatpush3.bf16.msra.mxu0 %v8882_v24  ;;  %3196 = vst [vmem:[#allocation2 + $0xf9] sm:$0xff] %v3164_v55  ;;  %v3162_v9 = vmax.f32 %v3130_v10, 0.0  ;;  %v10248_v63 = vadd.f32 %v10054_v33, %v3096_v52  ;;  %v3094_v62 = vadd.f32 %v3027_v58, %v2788_v37  ;;  %v2791_v45 = vadd.f32 %v8204_v22, %v2485_v53  ;;  %v11689_v31 = vld [vmem:[#allocation58_spill] sm:$0xff]  ;;  %v2724_v43 = vpop.f32.mrf.mxu1  ;;  %v3030_v40 = vpop.f32.mrf.mxu0  ;;  %v11693_v53 = vld [vmem:[#allocation60_spill] sm:$0xff] }
 0x1fb   : > { %8415 = vmatprep.subr.bf16.mxu0 %v8883_v3  ;;  %8371 = vmatprep.subr.bf16.mxu1 %v8884_v38  ;;  %v2486_v24 = vadd.f32 %v11689_v31, %v2179_v18  ;;  %v2182_v25 = vadd.f32 %v11691_v59, %v11690_v15  ;;  %v2180_v34 = vadd.f32 %v11692_v41, %v1874_v16  ;;  %v3288_v28 = vld [vmem:[#allocation2 + $0xb0] sm:$0xff]  ;;  %v11694_v18 = vld [vmem:[#allocation25_spill] sm:$0xff]  ;;  %v11701_v59 = vld [vmem:[#allocation66_spill] sm:$0xff] }
 0x1fc   : > { %v3379_v42 = vpack.c.bf16 %v3164_v55, %v3163_v27  ;;  %3194 = vst [vmem:[#allocation2 + $0xe1] sm:$0xff] %v3162_v9  ;;  %v3167_v49 = vmax.f32 %v10248_v63, 0.0  ;;  %v10264_v0 = vadd.f32 %v10054_v33, %v3094_v62  ;;  %v3097_v46 = vadd.f32 %v8252_v30, %v2791_v45  ;;  %v8207_v12 = vpop.f32.mrf.mxu1  ;;  %v8255_v32 = vpop.f32.mrf.mxu0  ;;  %v11702_v41 = vld [vmem:[#allocation29_spill] sm:$0xff] }
 0x1fd   : > { %v2789_v5 = vadd.f32 %v2724_v43, %v2483_v51  ;;  %v10266_v47 = vpack.c.bf16 %v3288_v28, %v3287_v11  ;;  %v10268_v56 = vpack.c.bf16 %v3290_v13, %v3289_v57  ;;  %v3378_v26 = vpack.c.bf16 %v3162_v9, %v3161_v54  ;;  %8372 = vmatpush3.bf16.msra.mxu1 %v8884_v38  ;;  %v11695_v54 = vld [vmem:[#allocation63_spill] sm:$0xff]  ;;  %v11696_v38 = vld [vmem:[#allocation26_spill] sm:$0xff]  ;;  %v11698_v51 = vld [vmem:[#allocation28_spill] sm:$0xff] }
 0x1fe   : > { %8416 = vmatpush3.bf16.msra.mxu0 %v8883_v3  ;;  %3199 = vst [vmem:[#allocation2 + $0x121] sm:$0xff] %v3167_v49  ;;  %v3165_v27 = vmax.f32 %v10264_v0, 0.0  ;;  %v3136_v2 = vadd.f32 %v10054_v33, %v3097_v46  ;;  %v2794_v16 = vadd.f32 %v8207_v12, %v2488_v14  ;;  %8453 = vmatprep.subr.bf16.mxu1 %v10256_v19  ;;  %v2737_v55 = vpop.f32.mrf.mxu1  ;;  %v3043_v10 = vpop.f32.mrf.mxu0  ;;  %v11699_v14 = vld [vmem:[#allocation62_spill] sm:$0xff]  ;;  %v3293_v57 = vld [vmem:[#allocation2 + $0xf0] sm:$0xff] }
 0x1ff   : > { %v3095_v17 = vadd.f32 %v3030_v40, %v2789_v5  ;;  %8417 = vmatprep.subr.bf16.mxu0 %v8885_v35  ;;  %v2489_v60 = vadd.f32 %v11693_v53, %v2182_v25  ;;  %v2185_v3 = vadd.f32 %v11695_v54, %v11694_v18  ;;  %v2183_v58 = vadd.f32 %v11697_v23, %v11696_v38  ;;  %v3291_v11 = vld [vmem:[#allocation2 + $0xd8] sm:$0xff]  ;;  %v11703_v23 = vld [vmem:[#allocation67_spill] sm:$0xff] }
 0x200   : > { %8338 = vmatmul.mubr.bf16.gmra.mxu0 %v10266_v47  ;;  %8294 = vmatmul.mubr.bf16.gmra.mxu1 %v3378_v26  ;;  %3197 = vst [vmem:[#allocation2 + $0x109] sm:$0xff] %v3165_v27  ;;  %v3168_v52 = vmax.f32 %v3136_v2, 0.0  ;;  %v3100_v36 = vadd.f32 %v8255_v32, %v2794_v16  ;;  %v2792_v20 = vadd.f32 %v2737_v55, %v2486_v24  ;;  %v8208_v30 = vpop.f32.mrf.mxu1  ;;  %v8256_v9 = vpop.f32.mrf.mxu0  ;;  %v10292_v24 = vld [vmem:[%s11567_s3 + $0x178] sm:$0xff]  }
 0x201   : > { %v3134_v37 = vadd.f32 %v10054_v33, %v3095_v17  ;;  %8341 = vmatprep.mubr.bf16.mxu0 %v10268_v56  ;;  %8297 = vmatprep.mubr.bf16.mxu1 %v3379_v42  ;;  %v1878_v39 = vadd.f32 %v11698_v51, %v1572_v8  ;;  %v2487_v22 = vadd.f32 %v11699_v14, %v2180_v34  ;;  %v3294_v31 = vld [vmem:[#allocation2 + $0xf8] sm:$0xff] }
 0x202   : > { %8418 = vmatpush3.bf16.msra.mxu0 %v8885_v35  ;;  %3200 = vst [vmem:[#allocation2 + $0x129] sm:$0xff] %v3168_v52  ;;  %v3139_v62 = vadd.f32 %v10054_v33, %v3100_v36  ;;  %v3098_v45 = vadd.f32 %v3043_v10, %v2792_v20  ;;  %v2795_v13 = vadd.f32 %v8208_v30, %v2489_v60  ;;  %v11700_v8 = vld [vmem:[#allocation64_spill] sm:$0xff]  ;;  %v2740_v34 = vpop.f32.mrf.mxu1  ;;  %v3046_v43 = vpop.f32.mrf.mxu0 }
 0x203   : > { %v10286_v63 = vmax.f32 %v3134_v37, 0.0  ;;  %8419 = vmatprep.subr.bf16.mxu0 %v8886_v6  ;;  %v2492_v15 = vadd.f32 %v11700_v8, %v2185_v3  ;;  %v2490_v25 = vadd.f32 %v11701_v59, %v2183_v58  ;;  %v2186_v35 = vadd.f32 %v10028_v61, %v11702_v41  ;;  %v3292_v40 = vld [vmem:[#allocation2 + $0xe0] sm:$0xff] }
 0x204   : > { %v3381_v28 = vpack.c.bf16 %v3168_v52, %v3167_v49  ;;  %v3171_v42 = vmax.f32 %v3139_v62, 0.0  ;;  %v3137_v0 = vadd.f32 %v10054_v33, %v3098_v45  ;;  %v3101_v46 = vadd.f32 %v8256_v9, %v2795_v13  ;;  %v8211_v32 = vpop.f32.mrf.mxu1  ;;  %v8259_v26 = vpop.f32.mrf.mxu0 }
 0x205   : > { %3198 = vst [vmem:[#allocation2 + $0x111] sm:$0xff] %v10286_v63  ;;  %v2793_v5 = vadd.f32 %v2740_v34, %v2487_v22  ;;  %v2184_v12 = vadd.f32 %v10033_v50, %v1878_v39  ;;  %v10301_v2 = vpack.c.bf16 %v3292_v40, %v3291_v11  ;;  %v10303_v61 = vpack.c.bf16 %v3294_v31, %v3293_v57  ;;  %v3297_v8 = vld [vmem:[#allocation2 + $0x120] sm:$0xff] }
 0x206   : > { %v3380_v17 = vpack.c.bf16 %v10286_v63, %v3165_v27  ;;  %8420 = vmatpush3.bf16.msra.mxu0 %v8886_v6  ;;  %3203 = vst [vmem:[#allocation2 + $0x151] sm:$0xff] %v3171_v42  ;;  %v3169_v49 = vmax.f32 %v3137_v0, 0.0  ;;  %v3140_v16 = vadd.f32 %v10054_v33, %v3101_v46  ;;  %v2798_v60 = vadd.f32 %v8211_v32, %v2492_v15  ;;  %v2753_v50 = vpop.f32.mrf.mxu1  ;;  %v3059_v54 = vpop.f32.mrf.mxu0  ;;  %v3820_v40 = vld [vmem:[#allocation2 + $0x2] sm:$0xff] }
 0x207   : > { %v3099_v53 = vadd.f32 %v3046_v43, %v2793_v5  ;;  %8501 = vmatprep.subr.bf16.mxu0 %v10292_v24  ;;  %v2493_v18 = vadd.f32 %v10030_v1, %v2186_v35  ;;  %v2796_v38 = vadd.f32 %v2753_v50, %v2490_v25  ;;  %v2491_v58 = vadd.f32 %v11703_v23, %v2184_v12  ;;  %v3295_v45 = vld [vmem:[#allocation2 + $0x108] sm:$0xff] }
 0x208   : > { %8342 = vmatmul.mubr.bf16.gmra.mxu0 %v10301_v2  ;;  %8298 = vmatmul.mubr.bf16.gmra.mxu1 %v3380_v17  ;;  %3201 = vst [vmem:[#allocation2 + $0x139] sm:$0xff] %v3169_v49  ;;  %v3172_v3 = vmax.f32 %v3140_v16, 0.0  ;;  %v3104_v6 = vadd.f32 %v8259_v26, %v2798_v60  ;;  %v8212_v55 = vpop.f32.mrf.mxu1  ;;  %v8260_v10 = vpop.f32.mrf.mxu0  ;;  %v3822_v26 = vld [vmem:[#allocation2 + $0x1a] sm:$0xff]  ;;  %v3823_v17 = vld [vmem:[#allocation2 + $0x22] sm:$0xff] }
 0x209   : > { %v3138_v27 = vadd.f32 %v10054_v33, %v3099_v53  ;;  %8345 = vmatprep.mubr.bf16.mxu0 %v10303_v61  ;;  %8301 = vmatprep.mubr.bf16.mxu1 %v3381_v28  ;;  %v3102_v37 = vadd.f32 %v3059_v54, %v2796_v38  ;;  %v2799_v36 = vadd.f32 %v8212_v55, %v2493_v18  ;;  %v3298_v39 = vld [vmem:[#allocation2 + $0x128] sm:$0xff]  ;;  %v3825_v60 = vld [vmem:[#allocation2 + $0x3a] sm:$0xff] }
 0x20a   : > { %3204 = vst [vmem:[#allocation2 + $0x159] sm:$0xff] %v3172_v3  ;;  %v3143_v52 = vadd.f32 %v10054_v33, %v3104_v6  ;;  %v2756_v20 = vpop.f32.mrf.mxu1  ;;  %v3383_v14 = vpack.c.bf16 %v3172_v3, %v3171_v42  ;;  %v3062_v13 = vpop.f32.mrf.mxu0  ;;  %v10324_v35 = vpack.c.bf16 %v3298_v39, %v3297_v8  ;;  %v3821_v28 = vld [vmem:[#allocation2 + $0xa] sm:$0xff]  ;;  %v10343_v50 = vpack.c.bf16 %v3823_v17, %v3822_v26  ;;  %v3827_v6 = vld [vmem:[#allocation2 + $0x52] sm:$0xff]  ;;  %v3828_v23 = vld [vmem:[#allocation2 + $0x62] sm:$0xff] }
 0x20b   : > { %v10313_v1 = vmax.f32 %v3138_v27, 0.0  ;;  %v3141_v30 = vadd.f32 %v10054_v33, %v3102_v37  ;;  %v3105_v9 = vadd.f32 %v8260_v10, %v2799_v36  ;;  %v2797_v62 = vadd.f32 %v2756_v20, %v2491_v58  ;;  %v8888_v3 = vld [vmem:[%s11567_s3 + $0x130] sm:$0xff]   ;;  %v8889_v38 = vld [vmem:[%s11567_s3 + $0x128] sm:$0xff]   ;;  %v3830_v37 = vld [vmem:[#allocation2 + $0x7a] sm:$0xff] }
 0x20c   : > { %v3296_v51 = vld [vmem:[#allocation2 + $0x110] sm:$0xff]  ;;  %v3175_v22 = vmax.f32 %v3143_v52, 0.0  ;;  %v3852_v12 = vpack.c.bf16 %v3821_v28, %v3820_v40  ;;  %v8891_v52 = vld [vmem:[%s11567_s3 + $0x118] sm:$0xff]   ;;  %v3831_v36 = vld [vmem:[#allocation2 + $0x82] sm:$0xff] }
 0x20d   : > { %3202 = vst [vmem:[#allocation2 + $0x141] sm:$0xff] %v10313_v1  ;;  %v10318_v31 = vpack.c.bf16 %v3296_v51, %v3295_v45  ;;  %v3382_v15 = vpack.c.bf16 %v10313_v1, %v3169_v49  ;;  %v3173_v59 = vmax.f32 %v3141_v30, 0.0  ;;  %v10322_v25 = vadd.f32 %v10054_v33, %v3105_v9  ;;  %v3301_v32 = vld [vmem:[#allocation2 + $0x150] sm:$0xff]  ;;  %v3833_v51 = vld [vmem:[#allocation2 + $0x9a] sm:$0xff] }
 0x20e   : > { %3207 = vst [vmem:[#allocation2 + $0x181] sm:$0xff] %v3175_v22  ;;  %v3103_v41 = vadd.f32 %v3062_v13, %v2797_v62  ;;  %v3824_v49 = vld [vmem:[#allocation2 + $0x32] sm:$0xff]  ;;  %v3826_v27 = vld [vmem:[#allocation2 + $0x4a] sm:$0xff]  ;;  %v3836_v62 = vld [vmem:[#allocation2 + $0xc2] sm:$0xff] }
 0x20f   : > { %3205 = vst [vmem:[#allocation2 + $0x169] sm:$0xff] %v3173_v59  ;;  %v3176_v34 = vmax.f32 %v10322_v25, 0.0  ;;  %v3299_v0 = vld [vmem:[#allocation2 + $0x138] sm:$0xff]  ;;  %v10345_v54 = vpack.c.bf16 %v3825_v60, %v3824_v49  ;;  %v3829_v58 = vld [vmem:[#allocation2 + $0x6a] sm:$0xff]  ;;  %v10358_v55 = vpack.c.bf16 %v3827_v6, %v3826_v27  ;;  %v4433_v27 = vld [vmem:[#allocation2 + $0x21] sm:$0xff] }
 0x210   : > { %8346 = vmatmul.mubr.bf16.gmra.mxu0 %v10318_v31  ;;  %8302 = vmatmul.mubr.bf16.gmra.mxu1 %v3382_v15  ;;  %v3142_v43 = vadd.f32 %v10054_v33, %v3103_v41  ;;  %v10360_v10 = vpack.c.bf16 %v3829_v58, %v3828_v23  ;;  %v3832_v20 = vld [vmem:[#allocation2 + $0x92] sm:$0xff]  ;;  %v8897_v22 = vld [vmem:[%s11567_s3 + $0x108] sm:$0xff]   ;;  %v8900_v15 = vld [vmem:[%s11567_s3 + $0x100] sm:$0xff]  }
 0x211   : > { %8349 = vmatprep.mubr.bf16.mxu0 %v10324_v35  ;;  %8305 = vmatprep.mubr.bf16.mxu1 %v3383_v14  ;;  %3208 = vst [vmem:[#allocation2 + $0x189] sm:$0xff] %v3176_v34  ;;  %v3302_v5 = vld [vmem:[#allocation2 + $0x158] sm:$0xff]  ;;  %v10381_v39 = vpack.c.bf16 %v3833_v51, %v3832_v20  ;;  %v8896_v14 = vld [vmem:[%s11567_s3 + $0x160] sm:$0xff]   ;;  %v3834_v30 = vld [vmem:[#allocation2 + $0xaa] sm:$0xff] }
 0x212   : > { %v3174_v42 = vmax.f32 %v3142_v43, 0.0  ;;  %v10336_v33 = vpack.c.bf16 %v3302_v5, %v3301_v32  ;;  %v3835_v9 = vld [vmem:[#allocation2 + $0xb2] sm:$0xff]  ;;  %v3837_v45 = vld [vmem:[#allocation2 + $0xca] sm:$0xff]  ;;  %v3838_v41 = vld [vmem:[#allocation2 + $0xda] sm:$0xff] }
 0x213   : > { %v10399_v13 = vpack.c.bf16 %v3835_v9, %v3834_v30  ;;  %v8899_v8 = vld [vmem:[%s11567_s3 + $0x150] sm:$0xff]   ;;  %v3839_v43 = vld [vmem:[#allocation2 + $0xe2] sm:$0xff]  ;;  %v3841_v28 = vld [vmem:[#allocation2 + $0xfa] sm:$0xff] }
 0x214   : > { %v3300_v46 = vld [vmem:[#allocation2 + $0x140] sm:$0xff]  ;;  %3206 = vst [vmem:[#allocation2 + $0x171] sm:$0xff] %v3174_v42  ;;  %v10334_v57 = vpack.c.bf16 %v3174_v42, %v3173_v59  ;;  %v8901_v59 = vld [vmem:[%s11567_s3 + $0x148] sm:$0xff]   ;;  %v3840_v40 = vld [vmem:[#allocation2 + $0xf2] sm:$0xff]  ;;  %v10419_v42 = vpack.c.bf16 %v3839_v43, %v3838_v41 }
 0x215   : > { %v10332_v11 = vpack.c.bf16 %v3300_v46, %v3299_v0  ;;  %v8902_v0 = vld [vmem:[%s11567_s3 + $0x140] sm:$0xff]   ;;  %v3842_v46 = vld [vmem:[#allocation2 + $0x10a] sm:$0xff]  ;;  %v3843_v5 = vld [vmem:[#allocation2 + $0x112] sm:$0xff] }
 0x216   : > { %v3303_v16 = vld [vmem:[#allocation2 + $0x168] sm:$0xff]  ;;  %v10433_v17 = vpack.c.bf16 %v3843_v5, %v3842_v46  ;;  %v4435_v58 = vld [vmem:[#allocation2 + $0x39] sm:$0xff]  ;;  %v8909_v9 = vld [vmem:[%s11567_s3 + $0x1f0] sm:$0xff]  }
 0x217   : > { %v3844_v32 = vld [vmem:[#allocation2 + $0x122] sm:$0xff]  ;;  %v3845_v26 = vld [vmem:[#allocation2 + $0x12a] sm:$0xff] }
 0x218   : > { %8350 = vmatmul.mubr.bf16.gmra.mxu0 %v10332_v11  ;;  %8306 = vmatmul.mubr.bf16.gmra.mxu1 %v10334_v57  ;;  %v3847_v49 = vld [vmem:[#allocation2 + $0x142] sm:$0xff]  ;;  %v8910_v41 = vld [vmem:[%s11567_s3 + $0x190] sm:$0xff]  }
 0x219   : > { %8353 = vmatprep.mubr.bf16.mxu0 %v10336_v33  ;;  %8373 = vmatprep.mubr.bf16.mxu1 %v3852_v12  ;;  %v8908_v12 = vld [vmem:[%s11567_s3 + $0x1f8] sm:$0xff]   ;;  %v8905_v20 = vld [vmem:[%s11567_s3 + $0x1a8] sm:$0xff]   ;;  %v8912_v43 = vld [vmem:[%s11567_s3 + $0x1e0] sm:$0xff]  }
 0x21a   : > { %v4441_v51 = vld [vmem:[#allocation2 + $0x81] sm:$0xff]  ;;  %v8920_v25 = vld [vmem:[%s11567_s3 + $0x230] sm:$0xff]  }
 0x21b   : > { %v3304_v53 = vld [vmem:[#allocation2 + $0x170] sm:$0xff] }
 0x21c   : > { %v10341_v18 = vpack.c.bf16 %v3304_v53, %v3303_v16  ;;  %v3848_v16 = vld [vmem:[#allocation2 + $0x152] sm:$0xff]  ;;  %v3849_v53 = vld [vmem:[#allocation2 + $0x15a] sm:$0xff] }
 0x220   : > { %8354 = vmatmul.mubr.bf16.gmra.mxu0 %v10341_v18  ;;  %8374 = vmatmul.mubr.bf16.vlgmr.msra.gmra.mxu1 %v10343_v50 }
 0x221   : > { %8421 = vmatprep.mubr.bf16.mxu0 %v10141_v4  ;;  %8377 = vmatprep.mubr.bf16.mxu1 %v10345_v54  ;;  %v8890_v4 = vld [vmem:[%s11567_s3 + $0x120] sm:$0xff]  }
 0x222   : > { %8454 = vmatpush3.bf16.msra.mxu1 %v10256_v19  ;;  %v8893_v19 = vld [vmem:[%s11567_s3 + $0x170] sm:$0xff]  }
 0x223   : > { %8455 = vmatprep.subr.bf16.mxu1 %v8888_v3 }
 0x226   : > { %8456 = vmatpush3.bf16.msra.mxu1 %v8888_v3  ;;  %v10443_v3 = vpack.c.bf16 %v3849_v53, %v3848_v16  ;;  %v4450_v16 = vld [vmem:[#allocation2 + $0xf1] sm:$0xff] }
 0x227   : > { %8457 = vmatprep.subr.bf16.mxu1 %v8889_v38 }
 0x228   : > { %8422 = vmatmul.mubr.bf16.vlgmr.msra.gmra.mxu0 %v10143_v44  ;;  %8378 = vmatmul.mubr.bf16.gmra.mxu1 %v10358_v55  ;;  %v8895_v44 = vld [vmem:[%s11567_s3 + $0x168] sm:$0xff]  }
 0x229   : > { %8425 = vmatprep.mubr.bf16.mxu0 %v10184_v29  ;;  %8381 = vmatprep.mubr.bf16.mxu1 %v10360_v10  ;;  %v10379_v29 = vpack.c.bf16 %v3831_v36, %v3830_v37  ;;  %v4436_v36 = vld [vmem:[#allocation2 + $0x49] sm:$0xff] }
 0x22a   : > { %8458 = vmatpush3.bf16.msra.mxu1 %v8889_v38  ;;  %8502 = vmatpush3.bf16.msra.mxu0 %v10292_v24  ;;  %v8894_v24 = vld [vmem:[%s11567_s3 + $0x110] sm:$0xff]   ;;  %v4432_v38 = vld [vmem:[#allocation2 + $0x19] sm:$0xff] }
 0x22b   : > { %8459 = vmatprep.subr.bf16.mxu1 %v8890_v4  ;;  %8503 = vmatprep.subr.bf16.mxu0 %v8893_v19  ;;  %v4464_v23 = vpack.c.bf16 %v4433_v27, %v4432_v38  ;;  %v10542_v27 = vld [vmem:[#allocation2 + $0x139] sm:$0xff]  ;;  %v4454_v38 = vld [vmem:[#allocation2 + $0x121] sm:$0xff] }
 0x22e   : > { %8460 = vmatpush3.bf16.msra.mxu1 %v8890_v4  ;;  %8504 = vmatpush3.bf16.msra.mxu0 %v8893_v19  ;;  %v4437_v4 = vld [vmem:[#allocation2 + $0x51] sm:$0xff] }
 0x22f   : > { %8461 = vmatprep.subr.bf16.mxu1 %v8891_v52  ;;  %8505 = vmatprep.subr.bf16.mxu0 %v8895_v44  ;;  %v4434_v19 = vld [vmem:[#allocation2 + $0x31] sm:$0xff] }
 0x230   : > { %8426 = vmatmul.mubr.bf16.gmra.mxu0 %v10186_v48  ;;  %8382 = vmatmul.mubr.bf16.gmra.mxu1 %v10379_v29  ;;  %v8898_v48 = vld [vmem:[%s11567_s3 + $0x158] sm:$0xff]   ;;  %v10456_v37 = vpack.c.bf16 %v4435_v58, %v4434_v19  ;;  %v5044_v58 = vld [vmem:[#allocation2 + $0x30] sm:$0xff]  ;;  %v5049_v19 = vld [vmem:[#allocation2 + $0x68] sm:$0xff] }
 0x231   : > { %8429 = vmatprep.mubr.bf16.mxu0 %v10224_v21  ;;  %8385 = vmatprep.mubr.bf16.mxu1 %v10381_v39  ;;  %v10401_v21 = vpack.c.bf16 %v3837_v45, %v3836_v62  ;;  %v8907_v62 = vld [vmem:[%s11567_s3 + $0x198] sm:$0xff]   ;;  %v8911_v45 = vld [vmem:[%s11567_s3 + $0x1e8] sm:$0xff]  }
 0x232   : > { %8462 = vmatpush3.bf16.msra.mxu1 %v8891_v52  ;;  %8506 = vmatpush3.bf16.msra.mxu0 %v8895_v44  ;;  %v10458_v44 = vpack.c.bf16 %v4437_v4, %v4436_v36 }
 0x233   : > { %8463 = vmatprep.subr.bf16.mxu1 %v8894_v24  ;;  %8507 = vmatprep.subr.bf16.mxu0 %v8896_v14 }
 0x236   : > { %8464 = vmatpush3.bf16.msra.mxu1 %v8894_v24  ;;  %8508 = vmatpush3.bf16.msra.mxu0 %v8896_v14  ;;  %v4438_v24 = vld [vmem:[#allocation2 + $0x61] sm:$0xff] }
 0x237   : > { %8465 = vmatprep.subr.bf16.mxu1 %v8897_v22  ;;  %8509 = vmatprep.subr.bf16.mxu0 %v8898_v48 }
 0x238   : > { %8430 = vmatmul.mubr.bf16.gmra.mxu0 %v10226_v7  ;;  %8386 = vmatmul.mubr.bf16.gmra.mxu1 %v10399_v13  ;;  %v8903_v7 = vld [vmem:[%s11567_s3 + $0x1b8] sm:$0xff]  }
 0x239   : > { %8433 = vmatprep.mubr.bf16.mxu0 %v10266_v47  ;;  %8389 = vmatprep.mubr.bf16.mxu1 %v10401_v21  ;;  %v10421_v47 = vpack.c.bf16 %v3841_v28, %v3840_v40  ;;  %v8913_v40 = vld [vmem:[%s11567_s3 + $0x188] sm:$0xff]   ;;  %v8914_v28 = vld [vmem:[%s11567_s3 + $0x1d8] sm:$0xff]  }
 0x23a   : > { %8466 = vmatpush3.bf16.msra.mxu1 %v8897_v22  ;;  %8510 = vmatpush3.bf16.msra.mxu0 %v8898_v48  ;;  %v4440_v22 = vld [vmem:[#allocation2 + $0x79] sm:$0xff] }
 0x23b   : > { %8511 = vmatprep.subr.bf16.mxu0 %v8899_v8  ;;  %8467 = vmatprep.subr.bf16.mxu1 %v8900_v15  ;;  %v10472_v30 = vpack.c.bf16 %v4441_v51, %v4440_v22  ;;  %v4443_v48 = vld [vmem:[#allocation2 + $0x99] sm:$0xff]  ;;  %v8921_v51 = vld [vmem:[%s11567_s3 + $0x228] sm:$0xff]  }
 0x23c   : > { %v5053_v22 = vld [vmem:[#allocation2 + $0x98] sm:$0xff] }
 0x23e   : > { %8512 = vmatpush3.bf16.msra.mxu0 %v8899_v8  ;;  %8468 = vmatpush3.bf16.msra.mxu1 %v8900_v15  ;;  %v4442_v8 = vld [vmem:[#allocation2 + $0x91] sm:$0xff] }
 0x23f   : > { %8513 = vmatprep.subr.bf16.mxu0 %v8901_v59  ;;  %8549 = vmatprep.subr.bf16.mxu1 %v8903_v7  ;;  %v10490_v15 = vpack.c.bf16 %v4443_v48, %v4442_v8 }
 0x240   : > { %8434 = vmatmul.mubr.bf16.gmra.mxu0 %v10268_v56  ;;  %8390 = vmatmul.mubr.bf16.gmra.mxu1 %v10419_v42  ;;  %v10435_v56 = vpack.c.bf16 %v3845_v26, %v3844_v32  ;;  %v8916_v32 = vld [vmem:[%s11567_s3 + $0x180] sm:$0xff]  }
 0x241   : > { %8437 = vmatprep.mubr.bf16.mxu0 %v10301_v2  ;;  %8393 = vmatprep.mubr.bf16.mxu1 %v10421_v47  ;;  %v3846_v2 = vld [vmem:[#allocation2 + $0x13a] sm:$0xff] }
 0x242   : > { %8514 = vmatpush3.bf16.msra.mxu0 %v8901_v59  ;;  %v10441_v60 = vpack.c.bf16 %v3847_v49, %v3846_v2  ;;  %v4451_v26 = vld [vmem:[#allocation2 + $0xf9] sm:$0xff]  ;;  %v8917_v2 = vld [vmem:[%s11567_s3 + $0x1c8] sm:$0xff]  }
 0x243   : > { %8515 = vmatprep.subr.bf16.mxu0 %v8902_v0  ;;  %v8919_v49 = vld [vmem:[%s11567_s3 + $0x238] sm:$0xff]   ;;  %v10532_v53 = vpack.c.bf16 %v4451_v26, %v4450_v16 }
 0x246   : > { %8516 = vmatpush3.bf16.msra.mxu0 %v8902_v0  ;;  %v4446_v0 = vld [vmem:[#allocation2 + $0xc1] sm:$0xff] }
 0x247   : > { %8597 = vmatprep.subr.bf16.mxu0 %v8908_v12 }
 0x248   : > { %8438 = vmatmul.mubr.bf16.gmra.mxu0 %v10303_v61  ;;  %8394 = vmatmul.mubr.bf16.gmra.mxu1 %v10433_v17  ;;  %v3850_v61 = vld [vmem:[#allocation2 + $0x16a] sm:$0xff] }
 0x249   : > { %8441 = vmatprep.mubr.bf16.mxu0 %v10318_v31  ;;  %8397 = vmatprep.mubr.bf16.mxu1 %v10435_v56  ;;  %v3851_v31 = vld [vmem:[#allocation2 + $0x172] sm:$0xff] }
 0x24a   : > { %v10449_v6 = vpack.c.bf16 %v3851_v31, %v3850_v61  ;;  %v8918_v61 = vld [vmem:[%s11567_s3 + $0x1c0] sm:$0xff]   ;;  %v4455_v31 = vld [vmem:[#allocation2 + $0x129] sm:$0xff] }
 0x250   : > { %8442 = vmatmul.mubr.bf16.gmra.mxu0 %v10324_v35  ;;  %8398 = vmatmul.mubr.bf16.gmra.mxu1 %v10441_v60  ;;  %v4157_v35 = vld [vmem:[#allocation2 + $0x188] sm:$0xff] }
 0x251   : > { %8445 = vmatprep.mubr.bf16.mxu0 %v10332_v11  ;;  %8401 = vmatprep.mubr.bf16.mxu1 %v10443_v3  ;;  %v4156_v11 = vld [vmem:[#allocation2 + $0x180] sm:$0xff] }
 0x252   : > { %v10454_v52 = vpack.c.bf16 %v4157_v35, %v4156_v11  ;;  %v4769_v11 = vld [vmem:[#allocation2 + $0x18a] sm:$0xff] }
 0x258   : > { %8446 = vmatmul.mubr.bf16.gmra.mxu0 %v10336_v33  ;;  %8402 = vmatmul.mubr.bf16.gmra.mxu1 %v10449_v6  ;;  %v8904_v33 = vld [vmem:[%s11567_s3 + $0x1b0] sm:$0xff]  }
 0x259   : > { %8449 = vmatprep.mubr.bf16.mxu0 %v10341_v18  ;;  %8469 = vmatprep.mubr.bf16.mxu1 %v4464_v23  ;;  %v4439_v18 = vld [vmem:[#allocation2 + $0x69] sm:$0xff]  ;;  %v4476_v23 = vpack.c.bf16 %v10313_v1, %v10542_v27  ;;  %v10557_v1 = vld [vmem:[#allocation2 + $0x181] sm:$0xff] }
 0x25a   : > { %v10470_v14 = vpack.c.bf16 %v4439_v18, %v4438_v24  ;;  %v5048_v18 = vld [vmem:[#allocation2 + $0x60] sm:$0xff] }
 0x260   : > { %8450 = vmatmul.mubr.bf16.gmra.mxu0 %v10454_v52  ;;  %8470 = vmatmul.mubr.bf16.vlgmr.msra.gmra.mxu1 %v10456_v37 }
 0x261   : > { %8517 = vmatprep.mubr.bf16.mxu0 %v10343_v50  ;;  %8473 = vmatprep.mubr.bf16.mxu1 %v10458_v44  ;;  %v8906_v50 = vld [vmem:[%s11567_s3 + $0x1a0] sm:$0xff]  }
 0x262   : > { %8550 = vmatpush3.bf16.msra.mxu1 %v8903_v7  ;;  %v4447_v7 = vld [vmem:[#allocation2 + $0xc9] sm:$0xff] }
 0x263   : > { %8551 = vmatprep.subr.bf16.mxu1 %v8904_v33  ;;  %v10510_v46 = vpack.c.bf16 %v4447_v7, %v4446_v0  ;;  %v5057_v0 = vld [vmem:[#allocation2 + $0xc8] sm:$0xff] }
 0x266   : > { %8552 = vmatpush3.bf16.msra.mxu1 %v8904_v33 }
 0x267   : > { %8553 = vmatprep.subr.bf16.mxu1 %v8905_v20 }
 0x268   : > { %8518 = vmatmul.mubr.bf16.vlgmr.msra.gmra.mxu0 %v10345_v54  ;;  %8474 = vmatmul.mubr.bf16.gmra.mxu1 %v10470_v14  ;;  %v4445_v54 = vld [vmem:[#allocation2 + $0xb1] sm:$0xff] }
 0x269   : > { %8521 = vmatprep.mubr.bf16.mxu0 %v10358_v55  ;;  %8477 = vmatprep.mubr.bf16.mxu1 %v10472_v30  ;;  %v4444_v55 = vld [vmem:[#allocation2 + $0xa9] sm:$0xff] }
 0x26a   : > { %8554 = vmatpush3.bf16.msra.mxu1 %v8905_v20  ;;  %8598 = vmatpush3.bf16.msra.mxu0 %v8908_v12  ;;  %v10492_v59 = vpack.c.bf16 %v4445_v54, %v4444_v55  ;;  %v8915_v12 = vld [vmem:[%s11567_s3 + $0x1d0] sm:$0xff]   ;;  %v5078_v20 = vpack.c.bf16 %v5049_v19, %v5048_v18 }
 0x26b   : > { %8555 = vmatprep.subr.bf16.mxu1 %v8906_v50  ;;  %8599 = vmatprep.subr.bf16.mxu0 %v8909_v9 }
 0x26e   : > { %8556 = vmatpush3.bf16.msra.mxu1 %v8906_v50  ;;  %8600 = vmatpush3.bf16.msra.mxu0 %v8909_v9  ;;  %v5050_v50 = vld [vmem:[#allocation2 + $0x78] sm:$0xff] }
 0x26f   : > { %8557 = vmatprep.subr.bf16.mxu1 %v8907_v62  ;;  %8601 = vmatprep.subr.bf16.mxu0 %v8911_v45 }
 0x270   : > { %8522 = vmatmul.mubr.bf16.gmra.mxu0 %v10360_v10  ;;  %8478 = vmatmul.mubr.bf16.gmra.mxu1 %v10490_v15  ;;  %v4449_v10 = vld [vmem:[#allocation2 + $0xe1] sm:$0xff] }
 0x271   : > { %8525 = vmatprep.mubr.bf16.mxu0 %v10379_v29  ;;  %8481 = vmatprep.mubr.bf16.mxu1 %v10492_v59  ;;  %v4448_v29 = vld [vmem:[#allocation2 + $0xd9] sm:$0xff] }
 0x272   : > { %8558 = vmatpush3.bf16.msra.mxu1 %v8907_v62  ;;  %8602 = vmatpush3.bf16.msra.mxu0 %v8911_v45  ;;  %v10512_v5 = vpack.c.bf16 %v4449_v10, %v4448_v29  ;;  %v5052_v62 = vld [vmem:[#allocation2 + $0x90] sm:$0xff] }
 0x273   : > { %8559 = vmatprep.subr.bf16.mxu1 %v8910_v41  ;;  %8603 = vmatprep.subr.bf16.mxu0 %v8912_v43  ;;  %v5080_v45 = vpack.c.bf16 %v5053_v22, %v5052_v62  ;;  %v5063_v22 = vld [vmem:[#allocation2 + $0x110] sm:$0xff] }
 0x276   : > { %8560 = vmatpush3.bf16.msra.mxu1 %v8910_v41  ;;  %8604 = vmatpush3.bf16.msra.mxu0 %v8912_v43 }
 0x277   : > { %8561 = vmatprep.subr.bf16.mxu1 %v8913_v40  ;;  %8605 = vmatprep.subr.bf16.mxu0 %v8914_v28 }
 0x278   : > { %8526 = vmatmul.mubr.bf16.gmra.mxu0 %v10381_v39  ;;  %8482 = vmatmul.mubr.bf16.gmra.mxu1 %v10510_v46  ;;  %v10530_v39 = vld [vmem:[#allocation2 + $0x109] sm:$0xff] }
 0x279   : > { %8529 = vmatprep.mubr.bf16.mxu0 %v10399_v13  ;;  %8485 = vmatprep.mubr.bf16.mxu1 %v10512_v5  ;;  %v4474_v13 = vpack.c.bf16 %v10286_v63, %v10530_v39  ;;  %v10544_v63 = vpack.c.bf16 %v4455_v31, %v4454_v38 }
 0x27a   : > { %8562 = vmatpush3.bf16.msra.mxu1 %v8913_v40  ;;  %8606 = vmatpush3.bf16.msra.mxu0 %v8914_v28  ;;  %v5055_v40 = vld [vmem:[#allocation2 + $0xb0] sm:$0xff]  ;;  %v8923_v28 = vld [vmem:[%s11567_s3 + $0x218] sm:$0xff]  }
 0x27b   : > { %8607 = vmatprep.subr.bf16.mxu0 %v8915_v12  ;;  %8563 = vmatprep.subr.bf16.mxu1 %v8916_v32 }
 0x27e   : > { %8608 = vmatpush3.bf16.msra.mxu0 %v8915_v12  ;;  %8564 = vmatpush3.bf16.msra.mxu1 %v8916_v32  ;;  %v5054_v12 = vld [vmem:[#allocation2 + $0xa8] sm:$0xff] }
 0x27f   : > { %8609 = vmatprep.subr.bf16.mxu0 %v8917_v2  ;;  %8645 = vmatprep.subr.bf16.mxu1 %v8919_v49  ;;  %v5081_v26 = vpack.c.bf16 %v5055_v40, %v5054_v12  ;;  %v5369_v12 = vld [vmem:[#allocation2 + $0x111] sm:$0xff] }
 0x280   : > { %8530 = vmatmul.mubr.bf16.gmra.mxu0 %v10401_v21  ;;  %8486 = vmatmul.mubr.bf16.gmra.mxu1 %v10532_v53  ;;  %v4459_v21 = vld [vmem:[#allocation2 + $0x159] sm:$0xff] }
 0x281   : > { %8533 = vmatprep.mubr.bf16.mxu0 %v10419_v42  ;;  %8489 = vmatprep.mubr.bf16.mxu1 %v4474_v13  ;;  %v4458_v42 = vld [vmem:[#allocation2 + $0x151] sm:$0xff] }
 0x282   : > { %8610 = vmatpush3.bf16.msra.mxu0 %v8917_v2  ;;  %v10551_v35 = vpack.c.bf16 %v4459_v21, %v4458_v42  ;;  %v5056_v2 = vld [vmem:[#allocation2 + $0xc0] sm:$0xff]  ;;  %v8924_v13 = vld [vmem:[%s11567_s3 + $0x210] sm:$0xff]  }
 0x283   : > { %8611 = vmatprep.subr.bf16.mxu0 %v8918_v61  ;;  %v5082_v16 = vpack.c.bf16 %v5057_v0, %v5056_v2  ;;  %v5069_v2 = vld [vmem:[#allocation2 + $0x158] sm:$0xff] }
 0x286   : > { %8612 = vmatpush3.bf16.msra.mxu0 %v8918_v61 }
 0x288   : > { %8534 = vmatmul.mubr.bf16.gmra.mxu0 %v10421_v47  ;;  %8490 = vmatmul.mubr.bf16.gmra.mxu1 %v10544_v63  ;;  %v5045_v47 = vld [vmem:[#allocation2 + $0x38] sm:$0xff] }
 0x289   : > { %8537 = vmatprep.mubr.bf16.mxu0 %v10433_v17  ;;  %8493 = vmatprep.mubr.bf16.mxu1 %v4476_v23  ;;  %v4479_v17 = vpack.c.bf16 %v3176_v34, %v10557_v1  ;;  %v5076_v4 = vpack.c.bf16 %v5045_v47, %v5044_v58  ;;  %v5059_v47 = vld [vmem:[#allocation2 + $0xe0] sm:$0xff] }
 0x290   : > { %8538 = vmatmul.mubr.bf16.gmra.mxu0 %v10435_v56  ;;  %8494 = vmatmul.mubr.bf16.gmra.mxu1 %v10551_v35  ;;  %v4768_v56 = vld [vmem:[#allocation2 + $0x182] sm:$0xff] }
 0x291   : > { %8541 = vmatprep.mubr.bf16.mxu0 %v10441_v60  ;;  %8497 = vmatprep.mubr.bf16.mxu1 %v10334_v57  ;;  %v5047_v60 = vld [vmem:[#allocation2 + $0x50] sm:$0xff]  ;;  %v5046_v57 = vld [vmem:[#allocation2 + $0x48] sm:$0xff]  ;;  %v10564_v36 = vpack.c.bf16 %v4769_v11, %v4768_v56  ;;  %v5058_v11 = vld [vmem:[#allocation2 + $0xd8] sm:$0xff] }
 0x292   : > { %v5077_v33 = vpack.c.bf16 %v5047_v60, %v5046_v57  ;;  %v5083_v19 = vpack.c.bf16 %v5059_v47, %v5058_v11  ;;  %v5060_v57 = vld [vmem:[#allocation2 + $0xf0] sm:$0xff] }
 0x298   : > { %8542 = vmatmul.mubr.bf16.gmra.mxu0 %v10443_v3  ;;  %8498 = vmatmul.mubr.bf16.gmra.mxu1 %v4479_v17  ;;  %v8925_v17 = vld [vmem:[%s11567_s3 + $0x208] sm:$0xff]  }
 0x299   : > { %8545 = vmatprep.mubr.bf16.mxu0 %v10449_v6  ;;  %8565 = vmatprep.mubr.bf16.mxu1 %v5076_v4  ;;  %v5051_v6 = vld [vmem:[#allocation2 + $0x80] sm:$0xff]  ;;  %v5061_v4 = vld [vmem:[#allocation2 + $0xf8] sm:$0xff] }
 0x29a   : > { %v5079_v48 = vpack.c.bf16 %v5051_v6, %v5050_v50  ;;  %v5084_v18 = vpack.c.bf16 %v5061_v4, %v5060_v57 }
 0x29e   : > { %v8279_v34 = vpop.f32.mrf.mxu1 }
 0x2a0   : > { %8546 = vmatmul.mubr.bf16.gmra.mxu0 %v10564_v36  ;;  %8566 = vmatmul.mubr.bf16.vlgmr.msra.gmra.mxu1 %v5077_v33  ;;  %v3484_v3 = vpop.f32.mrf.mxu1 }
 0x2a1   : > { %8613 = vmatprep.mubr.bf16.mxu0 %v10456_v37  ;;  %8569 = vmatprep.mubr.bf16.mxu1 %v5078_v20  ;;  %v8922_v37 = vld [vmem:[%s11567_s3 + $0x220] sm:$0xff]  }
 0x2a2   : > { %8646 = vmatpush3.bf16.msra.mxu1 %v8919_v49  ;;  %v8280_v24 = vpop.f32.mrf.mxu1  ;;  %v8926_v20 = vld [vmem:[%s11567_s3 + $0x200] sm:$0xff]  }
 0x2a3   : > { %8647 = vmatprep.subr.bf16.mxu1 %v8920_v25 }
 0x2a4   : > { %v3487_v9 = vpop.f32.mrf.mxu1 }
 0x2a6   : > { %8648 = vmatpush3.bf16.msra.mxu1 %v8920_v25  ;;  %v8327_v54 = vpop.f32.mrf.mxu0  ;;  %v8283_v8 = vpop.f32.mrf.mxu1 }
 0x2a7   : > { %8649 = vmatprep.subr.bf16.mxu1 %v8921_v51  ;;  %v10578_v55 = vadd.f32 %v8327_v54, %v8279_v34 }
 0x2a8   : > { %8614 = vmatmul.mubr.bf16.vlgmr.msra.gmra.mxu0 %v10458_v44  ;;  %8570 = vmatmul.mubr.bf16.gmra.mxu1 %v5079_v48  ;;  %v3693_v41 = vpop.f32.mrf.mxu0  ;;  %v3500_v43 = vpop.f32.mrf.mxu1  ;;  %v5065_v48 = vld [vmem:[#allocation2 + $0x128] sm:$0xff] }
 0x2a9   : > { %8617 = vmatprep.mubr.bf16.mxu0 %v10470_v14  ;;  %8573 = vmatprep.mubr.bf16.mxu1 %v5080_v45  ;;  %v10581_v7 = vadd.f32 %v3693_v41, %v3484_v3 }
 0x2aa   : > { %8650 = vmatpush3.bf16.msra.mxu1 %v8921_v51  ;;  %v8328_v10 = vpop.f32.mrf.mxu0  ;;  %v8284_v44 = vpop.f32.mrf.mxu1 }
 0x2ab   : > { %8651 = vmatprep.subr.bf16.mxu1 %v8922_v37  ;;  %v10586_v29 = vadd.f32 %v8328_v10, %v8280_v24 }
 0x2ac   : > { %v3696_v32 = vpop.f32.mrf.mxu0  ;;  %v3503_v14 = vpop.f32.mrf.mxu1 }
 0x2ad   : > { %v10588_v49 = vadd.f32 %v3696_v32, %v3487_v9  ;;  %v5067_v32 = vld [vmem:[#allocation2 + $0x140] sm:$0xff] }
 0x2ae   : > { %8652 = vmatpush3.bf16.msra.mxu1 %v8922_v37 }
 0x2af   : > { %8653 = vmatprep.subr.bf16.mxu1 %v8923_v28  ;;  %v8331_v61 = vpop.f32.mrf.mxu0  ;;  %v8287_v31 = vpop.f32.mrf.mxu1 }
 0x2b0   : > { %8618 = vmatmul.mubr.bf16.gmra.mxu0 %v10472_v30  ;;  %8574 = vmatmul.mubr.bf16.gmra.mxu1 %v5081_v26  ;;  %v10594_v38 = vadd.f32 %v8331_v61, %v8283_v8  ;;  %v5064_v8 = vld [vmem:[#allocation2 + $0x120] sm:$0xff]  ;;  %v5391_v61 = vpack.c.bf16 %v5369_v12, %v10530_v39 }
 0x2b1   : > { %8621 = vmatprep.mubr.bf16.mxu0 %v10490_v15  ;;  %8577 = vmatprep.mubr.bf16.mxu1 %v5082_v16  ;;  %v3709_v23 = vpop.f32.mrf.mxu0  ;;  %v3516_v21 = vpop.f32.mrf.mxu1  ;;  %v5086_v41 = vpack.c.bf16 %v5065_v48, %v5064_v8  ;;  %v5373_v39 = vld [vmem:[#allocation2 + $0x141] sm:$0xff] }
 0x2b2   : > { %8654 = vmatpush3.bf16.msra.mxu1 %v8923_v28  ;;  %v10597_v42 = vadd.f32 %v3709_v23, %v3500_v43  ;;  %v9072_v8 = vld [vmem:[#allocation2] sm:$0xff] }
 0x2b3   : > { %8655 = vmatprep.subr.bf16.mxu1 %v8924_v13  ;;  %v8332_v58 = vpop.f32.mrf.mxu0  ;;  %v8288_v30 = vpop.f32.mrf.mxu1 }
 0x2b4   : > { %v10602_v56 = vadd.f32 %v8332_v58, %v8284_v44 }
 0x2b5   : > { %v3712_v60 = vpop.f32.mrf.mxu0  ;;  %v3519_v15 = vpop.f32.mrf.mxu1 }
 0x2b6   : > { %8656 = vmatpush3.bf16.msra.mxu1 %v8924_v13  ;;  %v10604_v33 = vadd.f32 %v3712_v60, %v3503_v14  ;;  %v5066_v13 = vld [vmem:[#allocation2 + $0x138] sm:$0xff] }
 0x2b7   : > { %8657 = vmatprep.subr.bf16.mxu1 %v8925_v17  ;;  %v8335_v25 = vpop.f32.mrf.mxu0  ;;  %v8291_v34 = vpop.f32.mrf.mxu1  ;;  %v5087_v23 = vpack.c.bf16 %v5067_v32, %v5066_v13 }
 0x2b8   : > { %8622 = vmatmul.mubr.bf16.gmra.mxu0 %v10492_v59  ;;  %8578 = vmatmul.mubr.bf16.gmra.mxu1 %v5083_v19  ;;  %v10610_v3 = vadd.f32 %v8335_v25, %v8287_v31  ;;  %v5062_v59 = vld [vmem:[#allocation2 + $0x108] sm:$0xff] }
 0x2b9   : > { %8625 = vmatprep.mubr.bf16.mxu0 %v10510_v46  ;;  %8581 = vmatprep.mubr.bf16.mxu1 %v5084_v18  ;;  %v3725_v6 = vpop.f32.mrf.mxu0  ;;  %v3532_v51 = vpop.f32.mrf.mxu1  ;;  %v5085_v54 = vpack.c.bf16 %v5063_v22, %v5062_v59 }
 0x2ba   : > { %8658 = vmatpush3.bf16.msra.mxu1 %v8925_v17  ;;  %v10613_v24 = vadd.f32 %v3725_v6, %v3516_v21 }
 0x2bb   : > { %8659 = vmatprep.subr.bf16.mxu1 %v8926_v20  ;;  %v8336_v50 = vpop.f32.mrf.mxu0  ;;  %v8292_v9 = vpop.f32.mrf.mxu1 }
 0x2bc   : > { %v10615_v62 = vadd.f32 %v8336_v50, %v8288_v30 }
 0x2bd   : > { %v3728_v45 = vpop.f32.mrf.mxu0  ;;  %v3535_v37 = vpop.f32.mrf.mxu1 }
 0x2be   : > { %8660 = vmatpush3.bf16.msra.mxu1 %v8926_v20  ;;  %v10617_v46 = vadd.f32 %v3728_v45, %v3519_v15  ;;  %v5071_v15 = vld [vmem:[#allocation2 + $0x170] sm:$0xff]  ;;  %v5070_v20 = vld [vmem:[#allocation2 + $0x168] sm:$0xff] }
 0x2bf   : > { %v5377_v45 = vld [vmem:[#allocation2 + $0x171] sm:$0xff] }
 0x2c0   : > { %v8339_v43 = vpop.f32.mrf.mxu0  ;;  %8626 = vmatmul.mubr.bf16.gmra.mxu0 %v10512_v5  ;;  %v8295_v40 = vpop.f32.mrf.mxu1  ;;  %8582 = vmatmul.mubr.bf16.gmra.mxu1 %v5085_v54 }
 0x2c1   : > { %v10620_v28 = vadd.f32 %v8339_v43, %v8291_v34  ;;  %8629 = vmatprep.mubr.bf16.mxu0 %v10532_v53  ;;  %8585 = vmatprep.mubr.bf16.mxu1 %v5086_v41  ;;  %v5068_v53 = vld [vmem:[#allocation2 + $0x150] sm:$0xff]  ;;  %v5393_v34 = vpack.c.bf16 %v5373_v39, %v10542_v27  ;;  %v5091_v41 = vpack.c.bf16 %v9072_v8, %v9072_v8  ;;  %v5660_v39 = vld [vmem:[#allocation2 + $0x62] sm:$0xff]  ;;  %v5662_v8 = vld [vmem:[#allocation2 + $0x7a] sm:$0xff] }
 0x2c2   : > { %v3741_v10 = vpop.f32.mrf.mxu0  ;;  %v3548_v44 = vpop.f32.mrf.mxu1  ;;  %v5088_v47 = vpack.c.bf16 %v5069_v2, %v5068_v53  ;;  %v5379_v27 = vld [vmem:[#allocation2 + $0x189] sm:$0xff]  ;;  %v5656_v43 = vld [vmem:[#allocation2 + $0x32] sm:$0xff] }
 0x2c3   : > { %v10623_v0 = vadd.f32 %v3741_v10, %v3532_v51  ;;  %v5089_v51 = vpack.c.bf16 %v5071_v15, %v5070_v20  ;;  %v5661_v15 = vld [vmem:[#allocation2 + $0x6a] sm:$0xff] }
 0x2c4   : > { %v8340_v14 = vpop.f32.mrf.mxu0  ;;  %v8296_v26 = vpop.f32.mrf.mxu1 }
 0x2c5   : > { %v10625_v16 = vadd.f32 %v8340_v14, %v8292_v9 }
 0x2c6   : > { %v3744_v5 = vpop.f32.mrf.mxu0  ;;  %v10628_v31 = vpop.f32.mrf.mxu1 }
 0x2c7   : > { %v10630_v21 = vadd.f32 %v3744_v5, %v3535_v37  ;;  %v5380_v5 = vld [vmem:[#allocation2 + $0x199] sm:$0xff] }
 0x2c8   : > { %v8343_v17 = vpop.f32.mrf.mxu0  ;;  %8630 = vmatmul.mubr.bf16.gmra.mxu0 %v5391_v61  ;;  %v8299_v58 = vpop.f32.mrf.mxu1  ;;  %8586 = vmatmul.mubr.bf16.gmra.mxu1 %v5087_v23  ;;  %v5381_v61 = vld [vmem:[#allocation2 + $0x1a1] sm:$0xff] }
 0x2c9   : > { %v10632_v30 = vadd.f32 %v8343_v17, %v8295_v40  ;;  %8633 = vmatprep.mubr.bf16.mxu0 %v10544_v63  ;;  %8589 = vmatprep.mubr.bf16.mxu1 %v5088_v47  ;;  %v5657_v40 = vld [vmem:[#allocation2 + $0x3a] sm:$0xff]  ;;  %v5658_v17 = vld [vmem:[#allocation2 + $0x4a] sm:$0xff] }
 0x2ca   : > { %v3757_v4 = vpop.f32.mrf.mxu0  ;;  %v3564_v11 = vpop.f32.mrf.mxu1  ;;  %v5688_v14 = vpack.c.bf16 %v5657_v40, %v5656_v43 }
 0x2cb   : > { %v10635_v60 = vadd.f32 %v3757_v4, %v3548_v44  ;;  %v5376_v44 = vld [vmem:[#allocation2 + $0x169] sm:$0xff] }
 0x2cc   : > { %v8344_v19 = vpop.f32.mrf.mxu0  ;;  %v8300_v57 = vpop.f32.mrf.mxu1 }
 0x2cd   : > { %v10637_v18 = vadd.f32 %v8344_v19, %v8296_v26 }
 0x2ce   : > { %v10639_v25 = vpop.f32.mrf.mxu0  ;;  %v10642_v6 = vpop.f32.mrf.mxu1 }
 0x2d0   : > { %v8347_v63 = vpop.f32.mrf.mxu0  ;;  %8634 = vmatmul.mubr.bf16.gmra.mxu0 %v5393_v34  ;;  %v8303_v22 = vpop.f32.mrf.mxu1  ;;  %8590 = vmatmul.mubr.bf16.gmra.mxu1 %v5089_v51  ;;  %v5690_v51 = vpack.c.bf16 %v5661_v15, %v5660_v39  ;;  %v5667_v39 = vld [vmem:[#allocation2 + $0xb2] sm:$0xff] }
 0x2d1   : > { %v10644_v50 = vadd.f32 %v8347_v63, %v8299_v58  ;;  %8637 = vmatprep.mubr.bf16.mxu0 %v10551_v35  ;;  %8593 = vmatprep.mubr.bf16.mxu1 %v10454_v52  ;;  %v5395_v35 = vpack.c.bf16 %v5377_v45, %v5376_v44  ;;  %v5396_v52 = vpack.c.bf16 %v5379_v27, %v10557_v1  ;;  %v5659_v58 = vld [vmem:[#allocation2 + $0x52] sm:$0xff] }
 0x2d2   : > { %v3773_v9 = vpop.f32.mrf.mxu0  ;;  %v3580_v48 = vpop.f32.mrf.mxu1  ;;  %v5689_v34 = vpack.c.bf16 %v5659_v58, %v5658_v17  ;;  %v5664_v44 = vld [vmem:[#allocation2 + $0x92] sm:$0xff] }
 0x2d3   : > { %v10648_v59 = vadd.f32 %v3773_v9, %v3564_v11  ;;  %v5397_v11 = vpack.c.bf16 %v5381_v61, %v5380_v5 }
 0x2d4   : > { %v8348_v37 = vpop.f32.mrf.mxu0  ;;  %v8304_v54 = vpop.f32.mrf.mxu1 }
 0x2d5   : > { %v10650_v10 = vadd.f32 %v8348_v37, %v8300_v57 }
 0x2d6   : > { %v10652_v12 = vpop.f32.mrf.mxu0  ;;  %v10654_v32 = vpop.f32.mrf.mxu1 }
 0x2d8   : > { %v8351_v26 = vpop.f32.mrf.mxu0  ;;  %8638 = vmatmul.mubr.bf16.gmra.mxu0 %v5395_v35  ;;  %v8307_v2 = vpop.f32.mrf.mxu1  ;;  %8594 = vmatmul.mubr.bf16.gmra.mxu1 %v5091_v41  ;;  %v5663_v41 = vld [vmem:[#allocation2 + $0x82] sm:$0xff]  ;;  %v5665_v35 = vld [vmem:[#allocation2 + $0x9a] sm:$0xff] }
 0x2d9   : > { %v10657_v13 = vadd.f32 %v8351_v26, %v8303_v22  ;;  %8641 = vmatprep.mubr.bf16.mxu0 %v5396_v52  ;;  %8661 = vmatprep.mubr.bf16.mxu1 %v5688_v14  ;;  %v5692_v61 = vpack.c.bf16 %v5665_v35, %v5664_v44 }
 0x2da   : > { %v3789_v23 = vpop.f32.mrf.mxu0  ;;  %v3596_v53 = vpop.f32.mrf.mxu1 }
 0x2db   : > { %v10659_v47 = vadd.f32 %v3789_v23, %v3580_v48 }
 0x2dc   : > { %v8352_v4 = vpop.f32.mrf.mxu0  ;;  %v8308_v1 = vpop.f32.mrf.mxu1 }
 0x2dd   : > { %v10661_v19 = vadd.f32 %v8352_v4, %v8304_v54 }
 0x2de   : > { %v10663_v57 = vpop.f32.mrf.mxu0  ;;  %v10665_v20 = vpop.f32.mrf.mxu1 }
 0x2e0   : > { %v8355_v63 = vpop.f32.mrf.mxu0  ;;  %8642 = vmatmul.mubr.bf16.gmra.mxu0 %v5397_v11  ;;  %v8375_v22 = vpop.f32.mrf.mxu1  ;;  %8662 = vmatmul.mubr.bf16.vlgmr.msra.gmra.mxu1 %v5689_v34  ;;  %v5668_v34 = vld [vmem:[#allocation2 + $0xc2] sm:$0xff] }
 0x2e1   : > { %v10667_v9 = vadd.f32 %v8355_v63, %v8307_v2  ;;  %v4096_v48 = vadd.f32 %v8375_v22, %v10578_v55  ;;  %8665 = vmatprep.mubr.bf16.mxu1 %v5690_v51  ;;  %v5691_v2 = vpack.c.bf16 %v5663_v41, %v5662_v8  ;;  %v5669_v51 = vld [vmem:[#allocation2 + $0xca] sm:$0xff] }
 0x2e2   : > { %v3805_v45 = vpop.f32.mrf.mxu0  ;;  %v3967_v37 = vpop.f32.mrf.mxu1 }
 0x2e3   : > { %v10670_v27 = vadd.f32 %v3805_v45, %v3596_v53  ;;  %v4094_v54 = vadd.f32 %v3967_v37, %v10581_v7 }
 0x2e4   : > { %v8356_v43 = vpop.f32.mrf.mxu0  ;;  %v8376_v40 = vpop.f32.mrf.mxu1 }
 0x2e5   : > { %v10673_v52 = vadd.f32 %v8356_v43, %v8308_v1  ;;  %v4097_v14 = vadd.f32 %v8376_v40, %v10586_v29  ;;  %v5666_v1 = vld [vmem:[#allocation2 + $0xaa] sm:$0xff] }
 0x2e6   : > { %v10676_v26 = vpop.f32.mrf.mxu0  ;;  %v3970_v55 = vpop.f32.mrf.mxu1  ;;  %v5693_v45 = vpack.c.bf16 %v5667_v39, %v5666_v1 }
 0x2e7   : > { %v10679_v5 = vadd.f32 %v3970_v55, %v10588_v49  ;;  %v5671_v55 = vld [vmem:[#allocation2 + $0xe2] sm:$0xff] }
 0x2e8   : > { %v8423_v23 = vpop.f32.mrf.mxu0  ;;  %v8379_v7 = vpop.f32.mrf.mxu1  ;;  %8666 = vmatmul.mubr.bf16.gmra.mxu1 %v5691_v2 }
 0x2e9   : > { %v10681_v53 = vadd.f32 %v8423_v23, %v4096_v48  ;;  %v4100_v17 = vadd.f32 %v8379_v7, %v10594_v38  ;;  %8669 = vmatprep.mubr.bf16.mxu1 %v5692_v61  ;;  %v5672_v61 = vld [vmem:[#allocation2 + $0xf2] sm:$0xff]  ;;  %v5673_v23 = vld [vmem:[#allocation2 + $0xfa] sm:$0xff] }
 0x2ea   : > { %v4273_v58 = vpop.f32.mrf.mxu0  ;;  %v3983_v4 = vpop.f32.mrf.mxu1 }
 0x2eb   : > { %v10684_v11 = vadd.f32 %v4273_v58, %v4094_v54  ;;  %v4098_v29 = vadd.f32 %v3983_v4, %v10597_v42  ;;  %v5694_v54 = vpack.c.bf16 %v5669_v51, %v5668_v34 }
 0x2ec   : > { %v8424_v15 = vpop.f32.mrf.mxu0  ;;  %v8380_v49 = vpop.f32.mrf.mxu1 }
 0x2ed   : > { %v10687_v63 = vadd.f32 %v8424_v15, %v4097_v14  ;;  %v4101_v22 = vadd.f32 %v8380_v49, %v10602_v56  ;;  %v5670_v14 = vld [vmem:[#allocation2 + $0xda] sm:$0xff] }
 0x2ee   : > { %v10690_v48 = vpop.f32.mrf.mxu0  ;;  %v3986_v38 = vpop.f32.mrf.mxu1  ;;  %v5695_v4 = vpack.c.bf16 %v5671_v55, %v5670_v14 }
 0x2ef   : > { %v10693_v37 = vadd.f32 %v3986_v38, %v10604_v33  ;;  %v5674_v38 = vld [vmem:[#allocation2 + $0x10a] sm:$0xff] }
 0x2f0   : > { %v8427_v8 = vpop.f32.mrf.mxu0  ;;  %v8383_v42 = vpop.f32.mrf.mxu1  ;;  %8670 = vmatmul.mubr.bf16.gmra.mxu1 %v5693_v45  ;;  %v5675_v45 = vld [vmem:[#allocation2 + $0x112] sm:$0xff] }
 0x2f1   : > { %v10695_v41 = vadd.f32 %v8427_v8, %v4100_v17  ;;  %v4104_v43 = vadd.f32 %v8383_v42, %v10610_v3  ;;  %8673 = vmatprep.mubr.bf16.mxu1 %v5694_v54  ;;  %v5676_v42 = vld [vmem:[#allocation2 + $0x122] sm:$0xff]  ;;  %v5697_v14 = vpack.c.bf16 %v5675_v45, %v5674_v38 }
 0x2f2   : > { %v4289_v40 = vpop.f32.mrf.mxu0  ;;  %v3999_v44 = vpop.f32.mrf.mxu1 }
 0x2f3   : > { %v10698_v35 = vadd.f32 %v4289_v40, %v4098_v29  ;;  %v4102_v56 = vadd.f32 %v3999_v44, %v10613_v24  ;;  %v5696_v29 = vpack.c.bf16 %v5673_v23, %v5672_v61 }
 0x2f4   : > { %v8428_v2 = vpop.f32.mrf.mxu0  ;;  %v8384_v33 = vpop.f32.mrf.mxu1 }
 0x2f5   : > { %v10701_v7 = vadd.f32 %v8428_v2, %v4101_v22  ;;  %v4105_v17 = vadd.f32 %v8384_v33, %v10615_v62 }
 0x2f6   : > { %v10704_v58 = vpop.f32.mrf.mxu0  ;;  %v4002_v3 = vpop.f32.mrf.mxu1 }
 0x2f7   : > { %v10707_v1 = vadd.f32 %v4002_v3, %v10617_v46  ;;  %v8927_v46 = vld [vmem:[%s11569_s5 + $0x38] sm:$0xff]  }
 0x2f8   : > { %v8431_v39 = vpop.f32.mrf.mxu0  ;;  %v8387_v24 = vpop.f32.mrf.mxu1  ;;  %8674 = vmatmul.mubr.bf16.gmra.mxu1 %v5695_v4  ;;  %8693 = vmatprep.subr.bf16.mxu0 %v8927_v46 }
 0x2f9   : > { %v10709_v15 = vadd.f32 %v8431_v39, %v4104_v43  ;;  %v4108_v49 = vadd.f32 %v8387_v24, %v10620_v28  ;;  %8677 = vmatprep.mubr.bf16.mxu1 %v5696_v29  ;;  %v5677_v43 = vld [vmem:[#allocation2 + $0x12a] sm:$0xff]  ;;  %8694 = vmatpush3.bf16.msra.mxu0 %v8927_v46  ;;  %v5678_v29 = vld [vmem:[#allocation2 + $0x13a] sm:$0xff]  ;;  %v5679_v39 = vld [vmem:[#allocation2 + $0x142] sm:$0xff] }
 0x2fa   : > { %v4305_v34 = vpop.f32.mrf.mxu0  ;;  %v4015_v51 = vpop.f32.mrf.mxu1  ;;  %v5698_v55 = vpack.c.bf16 %v5677_v43, %v5676_v42  ;;  %v5699_v46 = vpack.c.bf16 %v5679_v39, %v5678_v29 }
 0x2fb   : > { %v10712_v22 = vadd.f32 %v4305_v34, %v4102_v56  ;;  %v4106_v62 = vadd.f32 %v4015_v51, %v10623_v0  ;;  %v5680_v51 = vld [vmem:[#allocation2 + $0x152] sm:$0xff] }
 0x2fc   : > { %v8432_v54 = vpop.f32.mrf.mxu0  ;;  %v8388_v8 = vpop.f32.mrf.mxu1 }
 0x2fd   : > { %v10718_v40 = vadd.f32 %v8432_v54, %v4105_v17  ;;  %v4109_v28 = vadd.f32 %v8388_v8, %v10625_v16 }
 0x2fe   : > { %v10721_v44 = vpop.f32.mrf.mxu0  ;;  %v4018_v56 = vpop.f32.mrf.mxu1 }
 0x2ff   : > { %v10724_v0 = vadd.f32 %v4018_v56, %v10630_v21  ;;  %v8928_v21 = vld [vmem:[%s11569_s5 + $0x30] sm:$0xff]  }
 0x300   : > { %v8435_v2 = vpop.f32.mrf.mxu0  ;;  %v8391_v33 = vpop.f32.mrf.mxu1  ;;  %8678 = vmatmul.mubr.bf16.gmra.mxu1 %v5697_v14  ;;  %8695 = vmatprep.subr.bf16.mxu0 %v8928_v21 }
 0x301   : > { %v10726_v61 = vadd.f32 %v8435_v2, %v4108_v49  ;;  %v4112_v23 = vadd.f32 %v8391_v33, %v10632_v30  ;;  %8681 = vmatprep.mubr.bf16.mxu1 %v5698_v55  ;;  %v5681_v49 = vld [vmem:[#allocation2 + $0x15a] sm:$0xff]  ;;  %v3761_v30 = vadd.f32 %v10639_v25, %v10628_v31  ;;  %8696 = vmatpush3.bf16.msra.mxu0 %v8928_v21  ;;  %v5682_v55 = vld [vmem:[#allocation2 + $0x16a] sm:$0xff]  ;;  %v5683_v2 = vld [vmem:[#allocation2 + $0x172] sm:$0xff] }
 0x302   : > { %v4321_v17 = vpop.f32.mrf.mxu0  ;;  %v4031_v16 = vpop.f32.mrf.mxu1  ;;  %v5700_v8 = vpack.c.bf16 %v5681_v49, %v5680_v51  ;;  %v8929_v33 = vld [vmem:[%s11569_s5 + $0x28] sm:$0xff]   ;;  %v5701_v21 = vpack.c.bf16 %v5683_v2, %v5682_v55 }
 0x303   : > { %v10729_v3 = vadd.f32 %v4321_v17, %v4106_v62  ;;  %v4110_v4 = vadd.f32 %v4031_v16, %v10635_v60  ;;  %8697 = vmatprep.subr.bf16.mxu0 %v8929_v33 }
 0x304   : > { %v8436_v24 = vpop.f32.mrf.mxu0  ;;  %v8392_v34 = vpop.f32.mrf.mxu1 }
 0x305   : > { %v10737_v38 = vadd.f32 %v8436_v24, %v4109_v28  ;;  %v4113_v62 = vadd.f32 %v8392_v34, %v10637_v18  ;;  %8698 = vmatpush3.bf16.msra.mxu0 %v8929_v33 }
 0x306   : > { %v10740_v45 = vpop.f32.mrf.mxu0  ;;  %v4034_v60 = vpop.f32.mrf.mxu1 }
 0x307   : > { %v4111_v54 = vadd.f32 %v4034_v60, %v3761_v30 }
 0x308   : > { %v8439_v42 = vpop.f32.mrf.mxu0  ;;  %v8395_v43 = vpop.f32.mrf.mxu1  ;;  %8682 = vmatmul.mubr.bf16.gmra.mxu1 %v5699_v46 }
 0x309   : > { %v10742_v56 = vadd.f32 %v8439_v42, %v4112_v23  ;;  %v4116_v14 = vadd.f32 %v8395_v43, %v10644_v50  ;;  %8685 = vmatprep.mubr.bf16.mxu1 %v5700_v8  ;;  %v3777_v23 = vadd.f32 %v10652_v12, %v10642_v6  ;;  %v5686_v6 = vld [vmem:[#allocation2 + $0x19a] sm:$0xff]  ;;  %v5687_v12 = vld [vmem:[#allocation2 + $0x1a2] sm:$0xff] }
 0x30a   : > { %v4337_v31 = vpop.f32.mrf.mxu0  ;;  %v4047_v25 = vpop.f32.mrf.mxu1  ;;  %v5703_v43 = vpack.c.bf16 %v5687_v12, %v5686_v6 }
 0x30b   : > { %v10745_v28 = vadd.f32 %v4337_v31, %v4110_v4  ;;  %v4114_v18 = vadd.f32 %v4047_v25, %v10648_v59 }
 0x30c   : > { %v8440_v17 = vpop.f32.mrf.mxu0  ;;  %v8396_v16 = vpop.f32.mrf.mxu1 }
 0x30d   : > { %v10753_v29 = vadd.f32 %v8440_v17, %v4113_v62  ;;  %v4117_v50 = vadd.f32 %v8396_v16, %v10650_v10 }
 0x30e   : > { %v4340_v4 = vpop.f32.mrf.mxu0  ;;  %v4050_v39 = vpop.f32.mrf.mxu1 }
 0x30f   : > { %v10756_v59 = vadd.f32 %v4340_v4, %v4111_v54  ;;  %v4115_v24 = vadd.f32 %v4050_v39, %v3777_v23  ;;  %v8930_v54 = vld [vmem:[%s11569_s5 + $0x20] sm:$0xff]   ;;  %v8931_v23 = vld [vmem:[%s11569_s5 + $0x18] sm:$0xff]   ;;  %v3809_v39 = vadd.f32 %v10676_v26, %v10665_v20  ;;  %v8932_v20 = vld [vmem:[%s11569_s5 + $0x10] sm:$0xff]  }
 0x310   : > { %v8443_v34 = vpop.f32.mrf.mxu0  ;;  %v8399_v51 = vpop.f32.mrf.mxu1  ;;  %8686 = vmatmul.mubr.bf16.gmra.mxu1 %v5701_v21  ;;  %8699 = vmatprep.subr.bf16.mxu0 %v8930_v54 }
 0x311   : > { %v10758_v49 = vadd.f32 %v8443_v34, %v4116_v14  ;;  %v4120_v30 = vadd.f32 %v8399_v51, %v10657_v13  ;;  %8689 = vmatprep.mubr.bf16.mxu1 %v10564_v36  ;;  %v3793_v13 = vadd.f32 %v10663_v57, %v10654_v32  ;;  %8700 = vmatpush3.bf16.msra.mxu0 %v8930_v54 }
 0x312   : > { %v4353_v10 = vpop.f32.mrf.mxu0  ;;  %v4063_v62 = vpop.f32.mrf.mxu1  ;;  %8701 = vmatprep.subr.bf16.mxu0 %v8931_v23 }
 0x313   : > { %v10762_v60 = vadd.f32 %v4353_v10, %v4114_v18  ;;  %v4118_v46 = vadd.f32 %v4063_v62, %v10659_v47 }
 0x314   : > { %v8444_v8 = vpop.f32.mrf.mxu0  ;;  %v8400_v42 = vpop.f32.mrf.mxu1 }
 0x315   : > { %v10770_v14 = vadd.f32 %v8444_v8, %v4117_v50  ;;  %v4121_v36 = vadd.f32 %v8400_v42, %v10661_v19  ;;  %8702 = vmatpush3.bf16.msra.mxu0 %v8931_v23  ;;  %v4401_v42 = vadd.f32 %v10690_v48, %v10679_v5  ;;  %v8933_v5 = vld [vmem:[%s11569_s5 + $0x8] sm:$0xff]   ;;  %v4405_v23 = vadd.f32 %v10704_v58, %v10693_v37 }
 0x316   : > { %v4356_v31 = vpop.f32.mrf.mxu0  ;;  %v4066_v25 = vpop.f32.mrf.mxu1  ;;  %8703 = vmatprep.subr.bf16.mxu0 %v8932_v20 }
 0x317   : > { %v10773_v18 = vadd.f32 %v4356_v31, %v4115_v24  ;;  %v4119_v47 = vadd.f32 %v4066_v25, %v3793_v13 }
 0x318   : > { %v8447_v55 = vpop.f32.mrf.mxu0  ;;  %v8403_v2 = vpop.f32.mrf.mxu1  ;;  %8690 = vmatmul.mubr.bf16.gmra.mxu1 %v5703_v43 }
 0x319   : > { %v10775_v33 = vadd.f32 %v8447_v55, %v4120_v30  ;;  %v4124_v17 = vadd.f32 %v8403_v2, %v10667_v9  ;;  %8704 = vmatpush3.bf16.msra.mxu0 %v8932_v20 }
 0x31a   : > { %v4369_v16 = vpop.f32.mrf.mxu0  ;;  %v4079_v32 = vpop.f32.mrf.mxu1  ;;  %8705 = vmatprep.subr.bf16.mxu0 %v8933_v5 }
 0x31b   : > { %v10778_v57 = vadd.f32 %v4369_v16, %v4118_v46  ;;  %v4122_v19 = vadd.f32 %v4079_v32, %v10670_v27 }
 0x31c   : > { %v8448_v50 = vpop.f32.mrf.mxu0  ;;  %v8404_v4 = vpop.f32.mrf.mxu1 }
 0x31d   : > { %v10786_v21 = vadd.f32 %v8448_v50, %v4121_v36  ;;  %v4125_v24 = vadd.f32 %v8404_v4, %v10673_v52  ;;  %8706 = vmatpush3.bf16.msra.mxu0 %v8933_v5 }
 0x31e   : > { %v4372_v9 = vpop.f32.mrf.mxu0  ;;  %v4082_v34 = vpop.f32.mrf.mxu1 }
 0x31f   : > { %v10789_v51 = vadd.f32 %v4372_v9, %v4119_v47  ;;  %v4123_v27 = vadd.f32 %v4082_v34, %v3809_v39 }
 0x320   : > { %v8451_v30 = vpop.f32.mrf.mxu0  ;;  %v8471_v6 = vpop.f32.mrf.mxu1 }
 0x321   : > { %v10791_v12 = vadd.f32 %v8451_v30, %v4124_v17  ;;  %v4708_v10 = vadd.f32 %v8471_v6, %v10681_v53  ;;  %v8934_v30 = vld [vmem:[%s11569_s5] sm:$0xff]  }
 0x322   : > { %v4385_v26 = vpop.f32.mrf.mxu0  ;;  %v4579_v62 = vpop.f32.mrf.mxu1  ;;  %8707 = vmatprep.subr.bf16.mxu0 %v8934_v30 }
 0x323   : > { %v10797_v52 = vadd.f32 %v4385_v26, %v4122_v19  ;;  %v4706_v46 = vadd.f32 %v4579_v62, %v10684_v11  ;;  %8708 = vmatpush3.bf16.msra.mxu0 %v8934_v30  ;;  %v4409_v26 = vadd.f32 %v10721_v44, %v10707_v1 }
 0x324   : > { %v8452_v54 = vpop.f32.mrf.mxu0  ;;  %v8472_v8 = vpop.f32.mrf.mxu1 }
 0x325   : > { %v10802_v43 = vadd.f32 %v8452_v54, %v4125_v24  ;;  %v4709_v53 = vadd.f32 %v8472_v8, %v10687_v63 }
 0x326   : > { %v4388_v13 = vpop.f32.mrf.mxu0  ;;  %v4582_v36 = vpop.f32.mrf.mxu1 }
 0x327   : > { %v10805_v31 = vadd.f32 %v4388_v13, %v4123_v27  ;;  %v10807_v25 = vadd.f32 %v4582_v36, %v4401_v42 }
 0x328   : > { %v8519_v47 = vpop.f32.mrf.mxu0  ;;  %v8475_v55 = vpop.f32.mrf.mxu1 }
 0x329   : > { %v10809_v11 = vadd.f32 %v8519_v47, %v4708_v10  ;;  %v4712_v2 = vadd.f32 %v8475_v55, %v10695_v41 }
 0x32a   : > { %v4885_v48 = vpop.f32.mrf.mxu0  ;;  %v4595_v17 = vpop.f32.mrf.mxu1 }
 0x32b   : > { %v10815_v16 = vadd.f32 %v4885_v48, %v4706_v46  ;;  %v4710_v63 = vadd.f32 %v4595_v17, %v10698_v35 }
 0x32c   : > { %v8520_v32 = vpop.f32.mrf.mxu0  ;;  %v8476_v19 = vpop.f32.mrf.mxu1 }
 0x32d   : > { %v10820_v50 = vadd.f32 %v8520_v32, %v4709_v53  ;;  %v4713_v41 = vadd.f32 %v8476_v19, %v10701_v7 }
 0x32e   : > { %v10823_v4 = vpop.f32.mrf.mxu0  ;;  %v4598_v39 = vpop.f32.mrf.mxu1 }
 0x32f   : > { %v10825_v24 = vadd.f32 %v4598_v39, %v4405_v23 }
 0x330   : > { %v8523_v9 = vpop.f32.mrf.mxu0  ;;  %v8479_v34 = vpop.f32.mrf.mxu1 }
 0x331   : > { %v10827_v27 = vadd.f32 %v8523_v9, %v4712_v2  ;;  %v4716_v35 = vadd.f32 %v8479_v34, %v10709_v15 }
 0x332   : > { %v4901_v37 = vpop.f32.mrf.mxu0  ;;  %v4611_v58 = vpop.f32.mrf.mxu1 }
 0x333   : > { %v10833_v6 = vadd.f32 %v4901_v37, %v4710_v63  ;;  %v4714_v7 = vadd.f32 %v4611_v58, %v10712_v22 }
 0x334   : > { %v8524_v10 = vpop.f32.mrf.mxu0  ;;  %v8480_v20 = vpop.f32.mrf.mxu1 }
 0x335   : > { %v10838_v62 = vadd.f32 %v8524_v10, %v4713_v41  ;;  %v4717_v15 = vadd.f32 %v8480_v20, %v10718_v40  ;;  %v4413_v40 = vadd.f32 %v10740_v45, %v10724_v0 }
 0x336   : > { %v10841_v46 = vpop.f32.mrf.mxu0  ;;  %v4614_v54 = vpop.f32.mrf.mxu1 }
 0x337   : > { %v10843_v8 = vadd.f32 %v4614_v54, %v4409_v26 }
 0x338   : > { %v8527_v42 = vpop.f32.mrf.mxu0  ;;  %v8483_v53 = vpop.f32.mrf.mxu1 }
 0x339   : > { %v10845_v13 = vadd.f32 %v8527_v42, %v4716_v35  ;;  %v4720_v22 = vadd.f32 %v8483_v53, %v10726_v61 }
 0x33a   : > { %v4917_v36 = vpop.f32.mrf.mxu0  ;;  %v4627_v47 = vpop.f32.mrf.mxu1 }
 0x33b   : > { %v10848_v55 = vadd.f32 %v4917_v36, %v4714_v7  ;;  %v4718_v1 = vadd.f32 %v4627_v47, %v10729_v3 }
 0x33c   : > { %v8528_v44 = vpop.f32.mrf.mxu0  ;;  %v8484_v2 = vpop.f32.mrf.mxu1 }
 0x33d   : > { %v10853_v5 = vadd.f32 %v8528_v44, %v4717_v15  ;;  %v4721_v48 = vadd.f32 %v8484_v2, %v10737_v38 }
 0x33e   : > { %v10856_v17 = vpop.f32.mrf.mxu0  ;;  %v4630_v63 = vpop.f32.mrf.mxu1 }
 0x33f   : > { %v10858_v32 = vadd.f32 %v4630_v63, %v4413_v40 }
 0x340   : > { %v8531_v61 = vpop.f32.mrf.mxu0  ;;  %v8487_v19 = vpop.f32.mrf.mxu1 }
 0x341   : > { %v10860_v23 = vadd.f32 %v8531_v61, %v4720_v22  ;;  %v4724_v3 = vadd.f32 %v8487_v19, %v10742_v56 }
 0x342   : > { %v4933_v41 = vpop.f32.mrf.mxu0  ;;  %v4643_v39 = vpop.f32.mrf.mxu1 }
 0x343   : > { %v10863_v9 = vadd.f32 %v4933_v41, %v4718_v1  ;;  %v4722_v0 = vadd.f32 %v4643_v39, %v10745_v28 }
 0x344   : > { %v8532_v45 = vpop.f32.mrf.mxu0  ;;  %v8488_v34 = vpop.f32.mrf.mxu1 }
 0x345   : > { %v10866_v38 = vadd.f32 %v8532_v45, %v4721_v48  ;;  %v4725_v35 = vadd.f32 %v8488_v34, %v10753_v29 }
 0x346   : > { %v10869_v30 = vpop.f32.mrf.mxu0  ;;  %v4646_v37 = vpop.f32.mrf.mxu1 }
 0x347   : > { %v10872_v58 = vadd.f32 %v4646_v37, %v10756_v59 }
 0x348   : > { %v8535_v7 = vpop.f32.mrf.mxu0  ;;  %v8491_v56 = vpop.f32.mrf.mxu1 }
 0x349   : > { %v10874_v10 = vadd.f32 %v8535_v7, %v4724_v3  ;;  %v4728_v20 = vadd.f32 %v8491_v56, %v10758_v49 }
 0x34a   : > { %v4949_v26 = vpop.f32.mrf.mxu0  ;;  %v4659_v28 = vpop.f32.mrf.mxu1 }
 0x34b   : > { %v10877_v15 = vadd.f32 %v4949_v26, %v4722_v0  ;;  %v4726_v54 = vadd.f32 %v4659_v28, %v10762_v60 }
 0x34c   : > { %v8536_v42 = vpop.f32.mrf.mxu0  ;;  %v8492_v29 = vpop.f32.mrf.mxu1 }
 0x34d   : > { %v10880_v53 = vadd.f32 %v8536_v42, %v4725_v35  ;;  %v4729_v22 = vadd.f32 %v8492_v29, %v10770_v14 }
 0x34e   : > { %v10883_v59 = vpop.f32.mrf.mxu0  ;;  %v4662_v36 = vpop.f32.mrf.mxu1 }
 0x34f   : > { %v10886_v47 = vadd.f32 %v4662_v36, %v10773_v18 }
 0x350   : > { %v8539_v1 = vpop.f32.mrf.mxu0  ;;  %v8495_v49 = vpop.f32.mrf.mxu1 }
 0x351   : > { %11704 = vst [vmem:[#allocation5_spill] sm:$0xff] %v10886_v47  ;;  %v10888_v44 = vadd.f32 %v8539_v1, %v4728_v20  ;;  %v4732_v2 = vadd.f32 %v8495_v49, %v10775_v33 }
 0x352   : > { %v4965_v40 = vpop.f32.mrf.mxu0  ;;  %v4675_v60 = vpop.f32.mrf.mxu1 }
 0x353   : > { %v10891_v48 = vadd.f32 %v4965_v40, %v4726_v54  ;;  %v4730_v63 = vadd.f32 %v4675_v60, %v10778_v57 }
 0x354   : > { %v8540_v61 = vpop.f32.mrf.mxu0  ;;  %v8496_v14 = vpop.f32.mrf.mxu1 }
 0x355   : > { %v10894_v19 = vadd.f32 %v8540_v61, %v4729_v22  ;;  %v4733_v3 = vadd.f32 %v8496_v14, %v10786_v21 }
 0x356   : > { %v10897_v18 = vpop.f32.mrf.mxu0  ;;  %v4678_v41 = vpop.f32.mrf.mxu1 }
 0x357   : > { %11705 = vst [vmem:[#allocation32_spill] sm:$0xff] %v10897_v18  ;;  %v10900_v39 = vadd.f32 %v4678_v41, %v10789_v51 }
 0x358   : > { %v8543_v0 = vpop.f32.mrf.mxu0  ;;  %v8499_v33 = vpop.f32.mrf.mxu1 }
 0x359   : > { %11706 = vst [vmem:[#allocation6_spill] sm:$0xff] %v10900_v39  ;;  %v10902_v45 = vadd.f32 %v8543_v0, %v4732_v2  ;;  %v4736_v34 = vadd.f32 %v8499_v33, %v10791_v12 }
 0x35a   : > { %v4981_v35 = vpop.f32.mrf.mxu0  ;;  %v4691_v57 = vpop.f32.mrf.mxu1 }
 0x35b   : > { %v10905_v37 = vadd.f32 %v4981_v35, %v4730_v63  ;;  %v4734_v7 = vadd.f32 %v4691_v57, %v10797_v52 }
 0x35c   : > { %v8544_v56 = vpop.f32.mrf.mxu0  ;;  %v8500_v21 = vpop.f32.mrf.mxu1 }
 0x35d   : > { %v10908_v20 = vadd.f32 %v8544_v56, %v4733_v3  ;;  %v4737_v26 = vadd.f32 %v8500_v21, %v10802_v43 }
 0x35e   : > { %v10911_v51 = vpop.f32.mrf.mxu0  ;;  %v4694_v28 = vpop.f32.mrf.mxu1 }
 0x35f   : > { %11707 = vst [vmem:[#allocation34_spill] sm:$0xff] %v10911_v51  ;;  %v10914_v54 = vadd.f32 %v4694_v28, %v10805_v31 }
 0x360   : > { %v8547_v42 = vpop.f32.mrf.mxu0  ;;  %v8567_v12 = vpop.f32.mrf.mxu1 }
 0x361   : > { %11708 = vst [vmem:[#allocation3_spill] sm:$0xff] %v10914_v54  ;;  %v10916_v29 = vadd.f32 %v8547_v42, %v4736_v34  ;;  %v10919_v22 = vadd.f32 %v8567_v12, %v10809_v11 }
 0x362   : > { %v4997_v52 = vpop.f32.mrf.mxu0  ;;  %v5191_v36 = vpop.f32.mrf.mxu1 }
 0x363   : > { %v10921_v1 = vadd.f32 %v4997_v52, %v4734_v7  ;;  %v10924_v49 = vadd.f32 %v5191_v36, %v10815_v16 }
 0x364   : > { %v8548_v43 = vpop.f32.mrf.mxu0  ;;  %v8568_v2 = vpop.f32.mrf.mxu1 }
 0x365   : > { %v10926_v40 = vadd.f32 %v8548_v43, %v4737_v26  ;;  %v10929_v31 = vadd.f32 %v8568_v2, %v10820_v50 }
 0x366   : > { %v10931_v60 = vpop.f32.mrf.mxu0  ;;  %v10933_v63 = vpop.f32.mrf.mxu1 }
 0x367   : > { %11709 = vst [vmem:[#allocation4_spill] sm:$0xff] %v10931_v60 }
 0x368   : > { %v10935_v11 = vpop.f32.mrf.mxu0  ;;  %v8571_v61 = vpop.f32.mrf.mxu1 }
 0x369   : > { %v10938_v14 = vadd.f32 %v8571_v61, %v10827_v27 }
 0x36a   : > { %v10940_v3 = vpop.f32.mrf.mxu0  ;;  %v5207_v16 = vpop.f32.mrf.mxu1 }
 0x36b   : > { %v10943_v41 = vadd.f32 %v5207_v16, %v10833_v6 }
 0x36c   : > { %v10945_v0 = vpop.f32.mrf.mxu0  ;;  %v8572_v50 = vpop.f32.mrf.mxu1 }
 0x36d   : > { %v10948_v33 = vadd.f32 %v8572_v50, %v10838_v62 }
 0x36e   : > { %v10950_v34 = vpop.f32.mrf.mxu0  ;;  %v10952_v35 = vpop.f32.mrf.mxu1 }
 0x370   : > { %v10954_v57 = vpop.f32.mrf.mxu0  ;;  %v8575_v27 = vpop.f32.mrf.mxu1 }
 0x371   : > { %v10957_v7 = vadd.f32 %v8575_v27, %v10845_v13 }
 0x372   : > { %v10959_v56 = vpop.f32.mrf.mxu0  ;;  %v5223_v6 = vpop.f32.mrf.mxu1 }
 0x373   : > { %v10962_v21 = vadd.f32 %v5223_v6, %v10848_v55 }
 0x374   : > { %v8576_v26 = vpop.f32.mrf.mxu1  ;;  %v10967_v28 = vpop.f32.mrf.mxu0 }
 0x375   : > { %v10965_v62 = vadd.f32 %v8576_v26, %v10853_v5  ;;  %v5631_v47 = vadd.f32 %v10967_v28, %v10948_v33 }
 0x376   : > { %v10969_v42 = vpop.f32.mrf.mxu1  ;;  %v10974_v13 = vpop.f32.mrf.mxu0 }
 0x378   : > { %v8579_v12 = vpop.f32.mrf.mxu1  ;;  %v10982_v5 = vpop.f32.mrf.mxu0 }
 0x379   : > { %v10972_v52 = vadd.f32 %v8579_v12, %v10860_v23 }
 0x37a   : > { %v5239_v36 = vpop.f32.mrf.mxu1  ;;  %v10989_v23 = vpop.f32.mrf.mxu0 }
 0x37b   : > { %v10977_v43 = vadd.f32 %v5239_v36, %v10863_v9 }
 0x37c   : > { %v8580_v55 = vpop.f32.mrf.mxu1 }
 0x37d   : > { %v10980_v2 = vadd.f32 %v8580_v55, %v10866_v38  ;;  %v10997_v38 = vpop.f32.mrf.mxu0 }
 0x37e   : > { %v10984_v61 = vpop.f32.mrf.mxu1 }
 0x380   : > { %v8583_v16 = vpop.f32.mrf.mxu1 }
 0x381   : > { %v10987_v50 = vadd.f32 %v8583_v16, %v10874_v10  ;;  %v11004_v10 = vpop.f32.mrf.mxu0 }
 0x382   : > { %v5255_v27 = vpop.f32.mrf.mxu1 }
 0x383   : > { %v10992_v6 = vadd.f32 %v5255_v27, %v10877_v15 }
 0x384   : > { %v8584_v9 = vpop.f32.mrf.mxu1 }
 0x385   : > { %v10995_v26 = vadd.f32 %v8584_v9, %v10880_v53  ;;  %v11012_v53 = vpop.f32.mrf.mxu0 }
 0x386   : > { %v10999_v12 = vpop.f32.mrf.mxu1 }
 0x388   : > { %v8587_v36 = vpop.f32.mrf.mxu1 }
 0x389   : > { %v11002_v55 = vadd.f32 %v8587_v36, %v10888_v44  ;;  %v11019_v44 = vpop.f32.mrf.mxu0 }
 0x38a   : > { %v5271_v16 = vpop.f32.mrf.mxu1 }
 0x38b   : > { %v11007_v60 = vadd.f32 %v5271_v16, %v10891_v48 }
 0x38c   : > { %v8588_v15 = vpop.f32.mrf.mxu1 }
 0x38d   : > { %11710 = vst [vmem:[#allocation7_spill] sm:$0xff] %v11007_v60  ;;  %v11010_v27 = vadd.f32 %v8588_v15, %v10894_v19  ;;  %v11027_v19 = vpop.f32.mrf.mxu0 }
 0x38e   : > { %v11014_v9 = vpop.f32.mrf.mxu1 }
 0x38f   : > { %11711 = vst [vmem:[#allocation30_spill] sm:$0xff] %v11010_v27  ;;  %11712 = vst [vmem:[#allocation9_spill] sm:$0xff] %v11014_v9 }
 0x390   : > { %v8591_v54 = vpop.f32.mrf.mxu1 }
 0x391   : > { %v11017_v51 = vadd.f32 %v8591_v54, %v10902_v45  ;;  %v11034_v45 = vpop.f32.mrf.mxu0 }
 0x392   : > { %v5287_v36 = vpop.f32.mrf.mxu1 }
 0x393   : > { %11713 = vst [vmem:[#allocation12_spill] sm:$0xff] %v11017_v51  ;;  %v11022_v39 = vadd.f32 %v5287_v36, %v10905_v37 }
 0x394   : > { %v8592_v48 = vpop.f32.mrf.mxu1 }
 0x395   : > { %11714 = vst [vmem:[#allocation31_spill] sm:$0xff] %v11022_v39  ;;  %v11025_v16 = vadd.f32 %v8592_v48, %v10908_v20  ;;  %v11042_v20 = vpop.f32.mrf.mxu0 }
 0x396   : > { %v11029_v15 = vpop.f32.mrf.mxu1 }
 0x397   : > { %11715 = vst [vmem:[#allocation33_spill] sm:$0xff] %v11025_v16  ;;  %11716 = vst [vmem:[#allocation35_spill] sm:$0xff] %v11029_v15  ;;  %v5626_v16 = vadd.f32 %v10935_v11, %v10919_v22  ;;  %v5627_v22 = vadd.f32 %v10945_v0, %v10929_v31  ;;  %v7360_v31 = vld [vmem:[%s9150_s12 + $0x18] sm:$0xff]   ;;  %v5630_v0 = vadd.f32 %v10954_v57, %v10938_v14 }
 0x398   : > { %v8595_v27 = vpop.f32.mrf.mxu1 }
 0x399   : > { %v11032_v9 = vadd.f32 %v8595_v27, %v10916_v29  ;;  %v7358_v29 = vld [vmem:[%s9150_s12 + $0x8] sm:$0xff]  }
 0x39a   : > { %v5303_v54 = vpop.f32.mrf.mxu1  ;;  %v7285_v11 = vunpack.c.l.bf16 %v7358_v29 }
 0x39b   : > { %11717 = vst [vmem:[#allocation8_spill] sm:$0xff] %v11032_v9  ;;  %v11037_v51 = vadd.f32 %v5303_v54, %v10921_v1  ;;  %v11052_v9 = vld [vmem:[%s11568_s4] ss:$0 sm:$0xff]  ;;  %v5624_v1 = vadd.f32 %v10940_v3, %v10924_v49  ;;  %v7286_v49 = vunpack.c.h.bf16 %v7358_v29 }
 0x39c   : > { %v8596_v37 = vpop.f32.mrf.mxu1 }
 0x39d   : > { %11718 = vst [vmem:[#allocation36_spill] sm:$0xff] %v11037_v51  ;;  %v11040_v36 = vadd.f32 %v8596_v37, %v10926_v40  ;;  %v5013_v40 = vadd.f32 %v10823_v4, %v10807_v25  ;;  %v11058_v37 = vpop.f32.mrf.mxu0  ;;  %v7280_v51 = vld [vmem:[%s9150_s12] sm:$0xff]  }
 0x39e   : > { %v11044_v48 = vpop.f32.mrf.mxu1  ;;  %v7281_v4 = vunpack.c.l.bf16 %v7280_v51 }
 0x39f   : > { %11719 = vst [vmem:[#allocation38_spill] sm:$0xff] %v11040_v36  ;;  %11720 = vst [vmem:[#allocation10_spill] sm:$0xff] %v11044_v48  ;;  %v5319_v39 = vadd.f32 %v10933_v63, %v5013_v40  ;;  %v11066_v25 = vpop.f32.mrf.mxu0  ;;  %v5017_v63 = vadd.f32 %v10841_v46, %v10825_v24  ;;  %v7293_v40 = vunpack.c.l.bf16 %v7360_v31 }
 0x3a0   : > { %v8663_v27 = vpop.f32.mrf.mxu1 }
 0x3a1   : > { %v5932_v54 = vadd.f32 %v8663_v27, %v5626_v16  ;;  %v5625_v16 = vadd.f32 %v10950_v34, %v5319_v39  ;;  %v5628_v34 = vadd.f32 %v10959_v56, %v10943_v41  ;;  %v5323_v14 = vadd.f32 %v10952_v35, %v5017_v63  ;;  %v11081_v57 = vpop.f32.mrf.mxu0 }
 0x3a2   : > { %v5803_v36 = vpop.f32.mrf.mxu1 }
 0x3a3   : > { %v5971_v48 = vadd.f32 %v11052_v9, %v5932_v54  ;;  %v5930_v15 = vadd.f32 %v5803_v36, %v5624_v1 }
 0x3a4   : > { %v8664_v60 = vpop.f32.mrf.mxu1 }
 0x3a5   : > { %v5933_v3 = vadd.f32 %v8664_v60, %v5627_v22  ;;  %v5969_v27 = vadd.f32 %v11052_v9, %v5930_v15  ;;  %v6003_v54 = vadd.f32 %v7285_v11, %v5971_v48  ;;  %v7282_v60 = vunpack.c.h.bf16 %v7280_v51  ;;  %v7359_v22 = vld [vmem:[%s9150_s12 + $0x10] sm:$0xff]  }
 0x3a6   : > { %v5806_v18 = vpop.f32.mrf.mxu1 }
 0x3a7   : > { %v5972_v36 = vadd.f32 %v11052_v9, %v5933_v3  ;;  %v5931_v29 = vadd.f32 %v5806_v18, %v5625_v16  ;;  %v6001_v48 = vadd.f32 %v7281_v4, %v5969_v27  ;;  %v6035_v18 = vmax.f32 %v6003_v54, 0.0 }
 0x3a8   : > { %v8667_v39 = vpop.f32.mrf.mxu1  ;;  %v7294_v3 = vunpack.c.h.bf16 %v7360_v31  ;;  %v7290_v54 = vunpack.c.h.bf16 %v7359_v22 }
 0x3a9   : > { %v6004_v1 = vadd.f32 %v7286_v49, %v5972_v36  ;;  %v5936_v15 = vadd.f32 %v8667_v39, %v5630_v0  ;;  %v5970_v24 = vadd.f32 %v11052_v9, %v5931_v29  ;;  %v7289_v49 = vunpack.c.l.bf16 %v7359_v22  ;;  %v11087_v36 = vpop.f32.mrf.mxu0 }
 0x3aa   : > { %v5819_v46 = vpop.f32.mrf.mxu1  ;;  %v5629_v0 = vadd.f32 %v10974_v13, %v5323_v14  ;;  %v6033_v4 = vmax.f32 %v6001_v48, 0.0  ;;  %v5634_v29 = vadd.f32 %v10982_v5, %v10957_v7  ;;  %v5021_v13 = vadd.f32 %v10856_v17, %v10843_v8  ;;  %v7362_v48 = vld [vmem:[%s9150_s12 + $0x28] sm:$0xff]  }
 0x3ab   : > { %v6036_v51 = vmax.f32 %v6004_v1, 0.0  ;;  %v5975_v11 = vadd.f32 %v11052_v9, %v5936_v15  ;;  %v5934_v41 = vadd.f32 %v5819_v46, %v5628_v34  ;;  %v6002_v56 = vadd.f32 %v7282_v60, %v5970_v24  ;;  %v11099_v5 = vpop.f32.mrf.mxu0 }
 0x3ac   : > { %v8668_v16 = vpop.f32.mrf.mxu1  ;;  %v5327_v7 = vadd.f32 %v10969_v42, %v5021_v13 }
 0x3ad   : > { %v6066_v33 = vpack.c.bf16 %v6036_v51, %v6035_v18  ;;  %v5973_v35 = vadd.f32 %v11052_v9, %v5934_v41  ;;  %v5937_v28 = vadd.f32 %v8668_v16, %v5631_v47  ;;  %v6034_v27 = vmax.f32 %v6002_v56, 0.0  ;;  %v7361_v18 = vld [vmem:[%s9150_s12 + $0x20] sm:$0xff]   ;;  %v11106_v16 = vpop.f32.mrf.mxu0 }
 0x3ae   : > { %v5822_v63 = vpop.f32.mrf.mxu1  ;;  %v6007_v60 = vadd.f32 %v7293_v40, %v5975_v11  ;;  %v5632_v47 = vadd.f32 %v10989_v23, %v10962_v21  ;;  %v5635_v21 = vadd.f32 %v10997_v38, %v10965_v62  ;;  %v7301_v23 = vunpack.c.l.bf16 %v7362_v48 }
 0x3af   : > { %v5976_v31 = vadd.f32 %v11052_v9, %v5937_v28  ;;  %v5935_v39 = vadd.f32 %v5822_v63, %v5629_v0  ;;  %v6065_v1 = vpack.c.bf16 %v6034_v27, %v6033_v4  ;;  %v6005_v15 = vadd.f32 %v7289_v49, %v5973_v35 }
 0x3b0   : > { %v8671_v34 = vpop.f32.mrf.mxu1  ;;  %v6039_v46 = vmax.f32 %v6007_v60, 0.0  ;;  %v5633_v42 = vadd.f32 %v11004_v10, %v5327_v7  ;;  %v7297_v0 = vunpack.c.l.bf16 %v7361_v18  ;;  %v7302_v28 = vunpack.c.h.bf16 %v7362_v48 }
 0x3b1   : > { %v6008_v14 = vadd.f32 %v7294_v3, %v5976_v31  ;;  %v5974_v22 = vadd.f32 %v11052_v9, %v5935_v39  ;;  %v5940_v24 = vadd.f32 %v8671_v34, %v5634_v29  ;;  %8709 = vmatprep.mubr.bf16.mxu0 %v6065_v1  ;;  %v6037_v56 = vmax.f32 %v6005_v15, 0.0  ;;  %v7363_v34 = vld [vmem:[%s9150_s12 + $0x30] sm:$0xff]  }
 0x3b2   : > { %v5835_v40 = vpop.f32.mrf.mxu1  ;;  %8710 = vmatmul.mubr.bf16.vlgmr.msra.gmra.mxu0 %v6066_v33  ;;  %v5638_v62 = vadd.f32 %v11012_v53, %v10972_v52  ;;  %v7298_v38 = vunpack.c.h.bf16 %v7361_v18  ;;  %v5025_v10 = vadd.f32 %v10869_v30, %v10858_v32  ;;  %v5636_v39 = vadd.f32 %v11019_v44, %v10977_v43  ;;  %v11120_v53 = vpop.f32.mrf.mxu0 }
 0x3b3   : > { %v6040_v8 = vmax.f32 %v6008_v14, 0.0  ;;  %v6006_v17 = vadd.f32 %v7290_v54, %v5974_v22  ;;  %v5938_v51 = vadd.f32 %v5835_v40, %v5632_v47  ;;  %v5979_v11 = vadd.f32 %v11052_v9, %v5940_v24  ;;  %v7364_v54 = vld [vmem:[%s9150_s12 + $0x38] sm:$0xff]  }
 0x3b4   : > { %v8672_v41 = vpop.f32.mrf.mxu1  ;;  %v5331_v52 = vadd.f32 %v10984_v61, %v5025_v10  ;;  %v7309_v14 = vunpack.c.l.bf16 %v7364_v54  ;;  %v5639_v30 = vadd.f32 %v11027_v19, %v10980_v2  ;;  %v7305_v7 = vunpack.c.l.bf16 %v7363_v34 }
 0x3b5   : > { %v6068_v49 = vpack.c.bf16 %v6040_v8, %v6039_v46  ;;  %v6038_v3 = vmax.f32 %v6006_v17, 0.0  ;;  %v5977_v35 = vadd.f32 %v11052_v9, %v5938_v51  ;;  %v5941_v33 = vadd.f32 %v8672_v41, %v5635_v21  ;;  %v11127_v51 = vpop.f32.mrf.mxu0 }
 0x3b6   : > { %v5838_v4 = vpop.f32.mrf.mxu1  ;;  %v6011_v29 = vadd.f32 %v7301_v23, %v5979_v11  ;;  %v7310_v40 = vunpack.c.h.bf16 %v7364_v54  ;;  %v5637_v61 = vadd.f32 %v11034_v45, %v5331_v52  ;;  %v7306_v21 = vunpack.c.h.bf16 %v7363_v34  ;;  %v7365_v54 = vld [vmem:[%s9150_s12 + $0x40] sm:$0xff]  }
 0x3b7   : > { %v5939_v27 = vadd.f32 %v5838_v4, %v5633_v42  ;;  %v6067_v63 = vpack.c.bf16 %v6038_v3, %v6037_v56  ;;  %v5980_v60 = vadd.f32 %v11052_v9, %v5941_v33  ;;  %v6009_v1 = vadd.f32 %v7297_v0, %v5977_v35  ;;  %v7366_v4 = vld [vmem:[%s9150_s12 + $0x48] sm:$0xff]  }
 0x3b8   : > { %v8675_v31 = vpop.f32.mrf.mxu1  ;;  %v6043_v44 = vmax.f32 %v6011_v29, 0.0  ;;  %v5642_v11 = vadd.f32 %v11042_v20, %v10987_v50  ;;  %v5029_v45 = vadd.f32 %v10883_v59, %v10872_v58  ;;  %v11139_v20 = vpop.f32.mrf.mxu0  ;;  %v7318_v52 = vunpack.c.h.bf16 %v7366_v4 }
 0x3b9   : > { %v5978_v13 = vadd.f32 %v11052_v9, %v5939_v27  ;;  %v5944_v47 = vadd.f32 %v8675_v31, %v5638_v62  ;;  %8713 = vmatprep.mubr.bf16.mxu0 %v6067_v63  ;;  %v6012_v15 = vadd.f32 %v7302_v28, %v5980_v60  ;;  %v6041_v2 = vmax.f32 %v6009_v1, 0.0 }
 0x3ba   : > { %v5851_v32 = vpop.f32.mrf.mxu1  ;;  %8714 = vmatmul.mubr.bf16.gmra.mxu0 %v6068_v49  ;;  %v5640_v49 = vadd.f32 %v11058_v37, %v10992_v6  ;;  %v5335_v50 = vadd.f32 %v10999_v12, %v5029_v45  ;;  %v5643_v6 = vadd.f32 %v11066_v25, %v10995_v26  ;;  %v7317_v37 = vunpack.c.l.bf16 %v7366_v4 }
 0x3bb   : > { %v6010_v22 = vadd.f32 %v7298_v38, %v5978_v13  ;;  %v5983_v48 = vadd.f32 %v11052_v9, %v5944_v47  ;;  %v5942_v43 = vadd.f32 %v5851_v32, %v5636_v39  ;;  %v6044_v24 = vmax.f32 %v6012_v15, 0.0  ;;  %v11146_v13 = vpop.f32.mrf.mxu0  ;;  %v7368_v32 = vld [vmem:[%s9150_s12 + $0x58] sm:$0xff]  }
 0x3bc   : > { %v8676_v46 = vpop.f32.mrf.mxu1  ;;  %v5641_v12 = vadd.f32 %v11081_v57, %v5335_v50  ;;  %v7313_v47 = vunpack.c.l.bf16 %v7365_v54  ;;  %v5646_v26 = vadd.f32 %v11087_v36, %v11002_v55  ;;  %v7314_v25 = vunpack.c.h.bf16 %v7365_v54  ;;  %v11721_v57 = vld [vmem:[#allocation5_spill] sm:$0xff] }
 0x3bd   : > { %v6042_v8 = vmax.f32 %v6010_v22, 0.0  ;;  %v5981_v17 = vadd.f32 %v11052_v9, %v5942_v43  ;;  %v5945_v18 = vadd.f32 %v8676_v46, %v5639_v30  ;;  %v6070_v19 = vpack.c.bf16 %v6044_v24, %v6043_v44  ;;  %v11722_v22 = vld [vmem:[#allocation32_spill] sm:$0xff]  ;;  %v11724_v55 = vld [vmem:[#allocation9_spill] sm:$0xff] }
 0x3be   : > { %v5854_v23 = vpop.f32.mrf.mxu1  ;;  %v6015_v41 = vadd.f32 %v7309_v14, %v5983_v48  ;;  %v5033_v48 = vadd.f32 %v11722_v22, %v11721_v57  ;;  %v7369_v57 = vld [vmem:[%s9150_s12 + $0x60] sm:$0xff]  }
 0x3bf   : > { %v5984_v42 = vadd.f32 %v11052_v9, %v5945_v18  ;;  %v5943_v56 = vadd.f32 %v5854_v23, %v5637_v61  ;;  %v6069_v0 = vpack.c.bf16 %v6042_v8, %v6041_v2  ;;  %v6013_v35 = vadd.f32 %v7305_v7, %v5981_v17  ;;  %v11723_v7 = vld [vmem:[#allocation7_spill] sm:$0xff]  ;;  %v5596_v17 = vpop.f32.mrf.mxu0  ;;  %v11725_v23 = vld [vmem:[#allocation30_spill] sm:$0xff] }
 0x3c0   : > { %v8679_v3 = vpop.f32.mrf.mxu1  ;;  %v6047_v27 = vmax.f32 %v6015_v41, 0.0  ;;  %v7367_v8 = vld [vmem:[%s9150_s12 + $0x50] sm:$0xff]   ;;  %v5339_v36 = vadd.f32 %v11724_v55, %v5033_v48  ;;  %v7329_v55 = vunpack.c.l.bf16 %v7369_v57 }
 0x3c1   : > { %v6016_v28 = vadd.f32 %v7310_v40, %v5984_v42  ;;  %v5982_v33 = vadd.f32 %v11052_v9, %v5943_v56  ;;  %v5948_v62 = vadd.f32 %v8679_v3, %v5642_v11  ;;  %8717 = vmatprep.mubr.bf16.mxu0 %v6069_v0  ;;  %v6045_v60 = vmax.f32 %v6013_v35, 0.0 }
 0x3c2   : > { %v5867_v38 = vpop.f32.mrf.mxu1  ;;  %8718 = vmatmul.mubr.bf16.gmra.mxu0 %v6070_v19  ;;  %v5644_v40 = vadd.f32 %v11099_v5, %v11723_v7  ;;  %v7325_v19 = vunpack.c.l.bf16 %v7368_v32  ;;  %v5647_v11 = vadd.f32 %v11106_v16, %v11725_v23  ;;  %v7326_v3 = vunpack.c.h.bf16 %v7368_v32 }
 0x3c3   : > { %v6048_v58 = vmax.f32 %v6016_v28, 0.0  ;;  %v6014_v59 = vadd.f32 %v7306_v21, %v5982_v33  ;;  %v5946_v63 = vadd.f32 %v5867_v38, %v5640_v49  ;;  %v5987_v10 = vadd.f32 %v11052_v9, %v5948_v62  ;;  %v8643_v62 = vpop.f32.mrf.mxu0 }
 0x3c4   : > { %v8680_v29 = vpop.f32.mrf.mxu1  ;;  %v7321_v49 = vunpack.c.l.bf16 %v7367_v8  ;;  %v5645_v35 = vadd.f32 %v11120_v53, %v5339_v36  ;;  %v7322_v38 = vunpack.c.h.bf16 %v7367_v8 }
 0x3c5   : > { %v6072_v31 = vpack.c.bf16 %v6048_v58, %v6047_v27  ;;  %v6046_v39 = vmax.f32 %v6014_v59, 0.0  ;;  %v5985_v34 = vadd.f32 %v11052_v9, %v5946_v63  ;;  %v5949_v1 = vadd.f32 %v8680_v29, %v5643_v6  ;;  %v11726_v58 = vld [vmem:[#allocation12_spill] sm:$0xff]  ;;  %v11729_v29 = vld [vmem:[#allocation31_spill] sm:$0xff] }
 0x3c6   : > { %v5870_v15 = vpop.f32.mrf.mxu1  ;;  %v6019_v43 = vadd.f32 %v7317_v37, %v5987_v10  ;;  %v5650_v59 = vadd.f32 %v11127_v51, %v11726_v58  ;;  %v11727_v37 = vld [vmem:[#allocation6_spill] sm:$0xff]  ;;  %v11730_v51 = vld [vmem:[#allocation35_spill] sm:$0xff] }
 0x3c7   : > { %v5947_v14 = vadd.f32 %v5870_v15, %v5641_v12  ;;  %v6071_v30 = vpack.c.bf16 %v6046_v39, %v6045_v60  ;;  %v5988_v44 = vadd.f32 %v11052_v9, %v5949_v1  ;;  %v6017_v18 = vadd.f32 %v7313_v47, %v5985_v34  ;;  %v11728_v10 = vld [vmem:[#allocation34_spill] sm:$0xff] }
 0x3c8   : > { %v8683_v24 = vpop.f32.mrf.mxu1  ;;  %v6051_v5 = vmax.f32 %v6019_v43, 0.0  ;;  %v5037_v53 = vadd.f32 %v11728_v10, %v11727_v37  ;;  %v5648_v12 = vadd.f32 %v11139_v20, %v11729_v29  ;;  %v11731_v20 = vld [vmem:[#allocation33_spill] sm:$0xff] }
 0x3c9   : > { %v5986_v46 = vadd.f32 %v11052_v9, %v5947_v14  ;;  %v5952_v61 = vadd.f32 %v8683_v24, %v5646_v26  ;;  %8721 = vmatprep.mubr.bf16.mxu0 %v6071_v30  ;;  %v6020_v2 = vadd.f32 %v7318_v52, %v5988_v44  ;;  %v6049_v50 = vmax.f32 %v6017_v18, 0.0  ;;  %v7370_v52 = vld [vmem:[%s9150_s12 + $0x68] sm:$0xff]   ;;  %v5609_v26 = vpop.f32.mrf.mxu0 }
 0x3ca   : > { %v5883_v21 = vpop.f32.mrf.mxu1  ;;  %8722 = vmatmul.mubr.bf16.gmra.mxu0 %v6072_v31  ;;  %v5343_v15 = vadd.f32 %v11730_v51, %v5037_v53  ;;  %v5651_v48 = vadd.f32 %v11146_v13, %v11731_v20  ;;  %v7333_v43 = vunpack.c.l.bf16 %v7370_v52  ;;  %v7334_v18 = vunpack.c.h.bf16 %v7370_v52 }
 0x3cb   : > { %v6018_v41 = vadd.f32 %v7314_v25, %v5986_v46  ;;  %v5991_v42 = vadd.f32 %v11052_v9, %v5952_v61  ;;  %v5950_v56 = vadd.f32 %v5883_v21, %v5644_v40  ;;  %v6052_v45 = vmax.f32 %v6020_v2, 0.0  ;;  %v8644_v8 = vpop.f32.mrf.mxu0  ;;  %v11732_v21 = vld [vmem:[#allocation8_spill] sm:$0xff] }
 0x3cc   : > { %v8684_v0 = vpop.f32.mrf.mxu1  ;;  %v5649_v7 = vadd.f32 %v5596_v17, %v5343_v15  ;;  %v5654_v23 = vadd.f32 %v8643_v62, %v11732_v21  ;;  %v7330_v13 = vunpack.c.h.bf16 %v7369_v57 }
 0x3cd   : > { %v6050_v28 = vmax.f32 %v6018_v41, 0.0  ;;  %v5989_v33 = vadd.f32 %v11052_v9, %v5950_v56  ;;  %v5953_v4 = vadd.f32 %v8684_v0, %v5647_v11  ;;  %v6074_v16 = vpack.c.bf16 %v6052_v45, %v6051_v5  ;;  %v7372_v41 = vld [vmem:[%s9150_s12 + $0x78] sm:$0xff]   ;;  %v11733_v56 = vld [vmem:[#allocation3_spill] sm:$0xff] }
 0x3ce   : > { %v5886_v27 = vpop.f32.mrf.mxu1  ;;  %v6023_v54 = vadd.f32 %v7325_v19, %v5991_v42  ;;  %v11734_v5 = vld [vmem:[#allocation4_spill] sm:$0xff]  ;;  %v7341_v58 = vunpack.c.l.bf16 %v7372_v41 }
 0x3cf   : > { %v5992_v63 = vadd.f32 %v11052_v9, %v5953_v4  ;;  %v5951_v6 = vadd.f32 %v5886_v27, %v5645_v35  ;;  %v6073_v31 = vpack.c.bf16 %v6050_v28, %v6049_v50  ;;  %v6021_v39 = vadd.f32 %v7321_v49, %v5989_v33  ;;  %v11735_v0 = vld [vmem:[#allocation36_spill] sm:$0xff]  ;;  %v7371_v4 = vld [vmem:[%s9150_s12 + $0x70] sm:$0xff]   ;;  %v11736_v50 = vld [vmem:[#allocation10_spill] sm:$0xff] }
 0x3d0   : > { %v8687_v60 = vpop.f32.mrf.mxu1  ;;  %v6055_v14 = vmax.f32 %v6023_v54, 0.0  ;;  %v5041_v17 = vadd.f32 %v11734_v5, %v11733_v56  ;;  %v5652_v35 = vadd.f32 %v5609_v26, %v11735_v0  ;;  %v11737_v54 = vld [vmem:[#allocation38_spill] sm:$0xff] }
 0x3d1   : > { %v6024_v47 = vadd.f32 %v7326_v3, %v5992_v63  ;;  %v5990_v34 = vadd.f32 %v11052_v9, %v5951_v6  ;;  %v5956_v1 = vadd.f32 %v8687_v60, %v5650_v59  ;;  %8725 = vmatprep.mubr.bf16.mxu0 %v6073_v31  ;;  %v6053_v40 = vmax.f32 %v6021_v39, 0.0 }
 0x3d2   : > { %v5899_v25 = vpop.f32.mrf.mxu1  ;;  %8726 = vmatmul.mubr.bf16.gmra.mxu0 %v6074_v16  ;;  %v5347_v62 = vadd.f32 %v11736_v50, %v5041_v17  ;;  %v5612_v16 = vpop.f32.mrf.mxu0  ;;  %v5655_v63 = vadd.f32 %v8644_v8, %v11737_v54  ;;  %v7342_v60 = vunpack.c.h.bf16 %v7372_v41 }
 0x3d3   : > { %v6056_v32 = vmax.f32 %v6024_v47, 0.0  ;;  %v6022_v30 = vadd.f32 %v7322_v38, %v5990_v34  ;;  %v5954_v22 = vadd.f32 %v5899_v25, %v5648_v12  ;;  %v5995_v44 = vadd.f32 %v11052_v9, %v5956_v1 }
 0x3d4   : > { %v8688_v24 = vpop.f32.mrf.mxu1  ;;  %v7337_v12 = vunpack.c.l.bf16 %v7371_v4  ;;  %v5653_v39 = vadd.f32 %v5612_v16, %v5347_v62 }
 0x3d5   : > { %v6076_v46 = vpack.c.bf16 %v6056_v32, %v6055_v14  ;;  %v6054_v61 = vmax.f32 %v6022_v30, 0.0  ;;  %v5993_v36 = vadd.f32 %v11052_v9, %v5954_v22  ;;  %v5957_v2 = vadd.f32 %v8688_v24, %v5651_v48 }
 0x3d6   : > { %v5902_v19 = vpop.f32.mrf.mxu1  ;;  %v6027_v45 = vadd.f32 %v7333_v43, %v5995_v44  ;;  %v7338_v14 = vunpack.c.h.bf16 %v7371_v4 }
 0x3d7   : > { %v5955_v11 = vadd.f32 %v5902_v19, %v5649_v7  ;;  %v6075_v42 = vpack.c.bf16 %v6054_v61, %v6053_v40  ;;  %v5996_v49 = vadd.f32 %v11052_v9, %v5957_v2  ;;  %v6025_v38 = vadd.f32 %v7329_v55, %v5993_v36  ;;  %v11199_v55 = vld [vmem:[%s11570_s6] ss:$0 sm:$0xff] }
 0x3d8   : > { %v8691_v3 = vpop.f32.mrf.mxu1  ;;  %v6059_v53 = vmax.f32 %v6027_v45, 0.0  ;;  %v6313_v61 = vlaneseq }
 0x3d9   : > { %v5994_v28 = vadd.f32 %v11052_v9, %v5955_v11  ;;  %v5960_v33 = vadd.f32 %v8691_v3, %v5654_v23  ;;  %8729 = vmatprep.mubr.bf16.mxu0 %v6075_v42  ;;  %v6028_v27 = vadd.f32 %v7334_v18, %v5996_v49  ;;  %v6057_v1 = vmax.f32 %v6025_v38, 0.0 }
 0x3da   : > { %v5915_v59 = vpop.f32.mrf.mxu1  ;;  %8730 = vmatmul.mubr.bf16.gmra.mxu0 %v6076_v46  ;;  %v11194_v8 = vand.u32 127, %v6313_v61 }
 0x3db   : > { %v6026_v6 = vadd.f32 %v7330_v13, %v5994_v28  ;;  %v5999_v37 = vadd.f32 %v11052_v9, %v5960_v33  ;;  %v5958_v10 = vadd.f32 %v5915_v59, %v5652_v35  ;;  %v6060_v29 = vmax.f32 %v6028_v27, 0.0 }
 0x3dc   : > { %v8692_v31 = vpop.f32.mrf.mxu1  ;;  %vm6315_vm0 = vcmp.lt.s32.totalorder %v11194_v8, 19 }
 0x3dd   : > { %v6058_v47 = vmax.f32 %v6026_v6, 0.0  ;;  %v5997_v34 = vadd.f32 %v11052_v9, %v5958_v10  ;;  %v5961_v52 = vadd.f32 %v8692_v31, %v5655_v63  ;;  %v6078_v51 = vpack.c.bf16 %v6060_v29, %v6059_v53 }
 0x3de   : > { %v5918_v15 = vpop.f32.mrf.mxu1  ;;  %v6031_v26 = vadd.f32 %v7341_v58, %v5999_v37 }
 0x3df   : > { %v6000_v25 = vadd.f32 %v11052_v9, %v5961_v52  ;;  %v5959_v32 = vadd.f32 %v5918_v15, %v5653_v39  ;;  %v6077_v30 = vpack.c.bf16 %v6058_v47, %v6057_v1  ;;  %v6029_v57 = vadd.f32 %v7337_v12, %v5997_v34 }
 0x3e0   : > { %v6063_v48 = vmax.f32 %v6031_v26, 0.0 }
 0x3e1   : > { %v6032_v22 = vadd.f32 %v7342_v60, %v6000_v25  ;;  %v5998_v20 = vadd.f32 %v11052_v9, %v5959_v32  ;;  %8733 = vmatprep.mubr.bf16.mxu0 %v6077_v30  ;;  %v6061_v24 = vmax.f32 %v6029_v57, 0.0 }
 0x3e2   : > { %8734 = vmatmul.mubr.bf16.gmra.mxu0 %v6078_v51 }
 0x3e3   : > { %v6064_v43 = vmax.f32 %v6032_v22, 0.0  ;;  %v6030_v44 = vadd.f32 %v7338_v14, %v5998_v20 }
 0x3e5   : > { %v6080_v7 = vpack.c.bf16 %v6064_v43, %v6063_v48  ;;  %v6062_v40 = vmax.f32 %v6030_v44, 0.0 }
 0x3e7   : > { %v6079_v46 = vpack.c.bf16 %v6062_v40, %v6061_v24 }
 0x3e9   : > { %8737 = vmatprep.mubr.bf16.mxu0 %v6079_v46 }
 0x3ea   : > { %8738 = vmatmul.mubr.bf16.gmra.mxu0 %v6080_v7 }
 0x472   : > { %v8711_v9 = vpop.f32.mrf.mxu0 }
 0x473   : > { %v6195_v36 = vadd.f32 %v8711_v9, %v11199_v55 }
 0x474   : > { %v6186_v18 = vpop.f32.mrf.mxu0 }
 0x475   : > { %v6187_v2 = vadd.f32 %v11199_v55, %v6186_v18  ;;  %v11206_v19 = vsel %vm6315_vm0, %v6195_v36, -1e+30 }
 0x476   : > { %6352 = vmax.xlane.f32.xlu0 %v11206_v19  ;;  %v8712_v21 = vpop.f32.mrf.mxu0 }
 0x477   : > { %v6198_v13 = vadd.f32 %v8712_v21, %v11199_v55  ;;  %v11213_v41 = vsel %vm6315_vm0, %v6187_v2, -1e+30 }
 0x478   : > { %v6189_v23 = vpop.f32.mrf.mxu0 }
 0x479   : > { %v6190_v11 = vadd.f32 %v11199_v55, %v6189_v23  ;;  %v11224_v45 = vsel %vm6315_vm0, %v6198_v13, -1e+30 }
 0x47a   : > { %v8715_v42 = vpop.f32.mrf.mxu0  ;;  %6348 = vmax.xlane.f32.xlu0 %v11213_v41 }
 0x47b   : > { %v11218_v56 = vsel %vm6315_vm0, %v6190_v11, -1e+30  ;;  %v6211_v17 = vadd.f32 %v8715_v42, %v11199_v55 }
 0x47c   : > { %v6202_v5 = vpop.f32.mrf.mxu0  ;;  %6350 = vmax.xlane.f32.xlu1 %v11218_v56 }
 0x47d   : > { %v6203_v0 = vadd.f32 %v11199_v55, %v6202_v5  ;;  %v11230_v35 = vsel %vm6315_vm0, %v6211_v17, -1e+30 }
 0x47e   : > { %v8716_v49 = vpop.f32.mrf.mxu0  ;;  %6354 = vmax.xlane.f32.xlu0 %v11224_v45 }
 0x47f   : > { %v6214_v4 = vadd.f32 %v8716_v49, %v11199_v55  ;;  %v11236_v50 = vsel %vm6315_vm0, %v6203_v0, -1e+30 }
 0x480   : > { %v6205_v3 = vpop.f32.mrf.mxu0 }
 0x481   : > { %v6206_v38 = vadd.f32 %v11199_v55, %v6205_v3  ;;  %v11242_v27 = vsel %vm6315_vm0, %v6214_v4, -1e+30 }
 0x482   : > { %v8719_v28 = vpop.f32.mrf.mxu0  ;;  %6360 = vmax.xlane.f32.xlu0 %v11230_v35 }
 0x483   : > { %v11249_v54 = vsel %vm6315_vm0, %v6206_v38, -1e+30  ;;  %v6227_v20 = vadd.f32 %v8719_v28, %v11199_v55 }
 0x484   : > { %v6218_v33 = vpop.f32.mrf.mxu0 }
 0x485   : > { %v6219_v47 = vadd.f32 %v11199_v55, %v6218_v33  ;;  %v11304_v46 = vsel %vm6315_vm0, %v6227_v20, -1e+30 }
 0x486   : > { %v8720_v62 = vpop.f32.mrf.mxu0  ;;  %6356 = vmax.xlane.f32.xlu0 %v11236_v50 }
 0x487   : > { %v11280_v14 = vsel %vm6315_vm0, %v6219_v47, -1e+30  ;;  %v6230_v40 = vadd.f32 %v8720_v62, %v11199_v55 }
 0x488   : > { %v6221_v16 = vpop.f32.mrf.mxu0 }
 0x489   : > { %v6222_v25 = vadd.f32 %v11199_v55, %v6221_v16  ;;  %v11318_v13 = vsel %vm6315_vm0, %v6230_v40, -1e+30 }
 0x48a   : > { %v11244_v58 = vpop.f32.mrf.mxu0  ;;  %6362 = vmax.xlane.f32.xlu0 %v11242_v27 }
 0x48b   : > { %v11292_v48 = vsel %vm6315_vm0, %v6222_v25, -1e+30 }
 0x48c   : > { %v6234_v59 = vpop.f32.mrf.mxu0 }
 0x48d   : > { %v6235_v21 = vadd.f32 %v11199_v55, %v6234_v59 }
 0x48e   : > { %v8724_v63 = vpop.f32.mrf.mxu0  ;;  %6358 = vmax.xlane.f32.xlu0 %v11249_v54 }
 0x48f   : > { %v6246_v6 = vadd.f32 %v8724_v63, %v11199_v55  ;;  %v11340_v4 = vsel %vm6315_vm0, %v6235_v21, -1e+30 }
 0x490   : > { %v6237_v37 = vpop.f32.mrf.mxu0 }
 0x491   : > { %v11255_v10 = vsel %vm6315_vm0, %v6246_v6, -1e+30  ;;  %v6238_v28 = vadd.f32 %v11199_v55, %v6237_v37 }
 0x492   : > { %v8727_v53 = vpop.f32.mrf.mxu0 }
 0x493   : > { %v6259_v29 = vadd.f32 %v8727_v53, %v11199_v55  ;;  %v6243_v53 = vadd.f32 %v11244_v58, %v11199_v55 }
 0x494   : > { %v6250_v12 = vpop.f32.mrf.mxu0 }
 0x495   : > { %v6251_v60 = vadd.f32 %v11199_v55, %v6250_v12  ;;  %v11261_v31 = vsel %vm6315_vm0, %v6259_v29, -1e+30  ;;  %v11363_v12 = vsel %vm6315_vm0, %v6238_v28, -1e+30 }
 0x496   : > { %v8728_v39 = vpop.f32.mrf.mxu0  ;;  %6384 = vmax.xlane.f32.xlu1 %v11261_v31 }
 0x497   : > { %v6262_v34 = vadd.f32 %v8728_v39, %v11199_v55  ;;  %v11268_v52 = vsel %vm6315_vm0, %v6251_v60, -1e+30 }
 0x498   : > { %v6253_v1 = vpop.f32.mrf.mxu0  ;;  %6380 = vmax.xlane.f32.xlu0 %v11268_v52 }
 0x499   : > { %v6254_v51 = vadd.f32 %v11199_v55, %v6253_v1  ;;  %v11274_v15 = vsel %vm6315_vm0, %v6262_v34, -1e+30  ;;  %v11382_v1 = vsel %vm6315_vm0, %v6243_v53, -1e+30 }
 0x49a   : > { %v8731_v26 = vpop.f32.mrf.mxu0  ;;  %6386 = vmax.xlane.f32.xlu1 %v11274_v15 }
 0x49b   : > { %v6275_v30 = vadd.f32 %v8731_v26, %v11199_v55  ;;  %v11286_v57 = vsel %vm6315_vm0, %v6254_v51, -1e+30 }
 0x49c   : > { %v6266_v32 = vpop.f32.mrf.mxu0  ;;  %6364 = vmax.xlane.f32.xlu0 %v11280_v14 }
 0x49d   : > { %v6267_v44 = vadd.f32 %v11199_v55, %v6266_v32  ;;  %v11298_v24 = vsel %vm6315_vm0, %v6275_v30, -1e+30 }
 0x49e   : > { %v8732_v22 = vpop.f32.mrf.mxu0  ;;  %6382 = vmax.xlane.f32.xlu1 %v11286_v57 }
 0x49f   : > { %v6278_v9 = vadd.f32 %v8732_v22, %v11199_v55  ;;  %v11311_v18 = vsel %vm6315_vm0, %v6267_v44, -1e+30 }
 0x4a0   : > { %v6269_v43 = vpop.f32.mrf.mxu0  ;;  %6366 = vmax.xlane.f32.xlu0 %v11292_v48 }
 0x4a1   : > { %v6270_v5 = vadd.f32 %v11199_v55, %v6269_v43  ;;  %v11329_v49 = vsel %vm6315_vm0, %v6278_v9, -1e+30 }
 0x4a2   : > { %v8735_v7 = vpop.f32.mrf.mxu0  ;;  %6392 = vmax.xlane.f32.xlu1 %v11298_v24 }
 0x4a3   : > { %v6291_v38 = vadd.f32 %v8735_v7, %v11199_v55  ;;  %v11351_v63 = vsel %vm6315_vm0, %v6270_v5, -1e+30 }
 0x4a4   : > { %v6282_v61 = vpop.f32.mrf.mxu0  ;;  %6368 = vmax.xlane.f32.xlu0 %v11304_v46 }
 0x4a5   : > { %v6283_v36 = vadd.f32 %v11199_v55, %v6282_v61  ;;  %v11373_v34 = vsel %vm6315_vm0, %v6291_v38, -1e+30 }
 0x4a6   : > { %v8736_v2 = vpop.f32.mrf.mxu0  ;;  %6388 = vmax.xlane.f32.xlu1 %v11311_v18 }
 0x4a7   : > { %v6294_v23 = vadd.f32 %v8736_v2, %v11199_v55  ;;  %v11322_v11 = vsel %vm6315_vm0, %v6283_v36, -1e+30 }
 0x4a8   : > { %v6285_v42 = vpop.f32.mrf.mxu0  ;;  %6370 = vmax.xlane.f32.xlu0 %v11318_v13 }
 0x4a9   : > { %v6286_v17 = vadd.f32 %v11199_v55, %v6285_v42  ;;  %v11333_v3 = vsel %vm6315_vm0, %v6294_v23, -1e+30 }
 0x4aa   : > { %v8739_v0 = vpop.f32.mrf.mxu0  ;;  %6394 = vmax.xlane.f32.xlu1 %v11329_v49 }
 0x4ab   : > { %v6307_v33 = vadd.f32 %v8739_v0, %v11199_v55  ;;  %v11344_v62 = vsel %vm6315_vm0, %v6286_v17, -1e+30 }
 0x4ac   : > { %v6298_v16 = vpop.f32.mrf.mxu0  ;;  %6372 = vmax.xlane.f32.xlu0 %v11340_v4 }
 0x4ad   : > { %v6299_v59 = vadd.f32 %v11199_v55, %v6298_v16  ;;  %v11355_v6 = vsel %vm6315_vm0, %v6307_v33, -1e+30 }
 0x4ae   : > { %v8740_v37 = vpop.f32.mrf.mxu0  ;;  %6390 = vmax.xlane.f32.xlu1 %v11351_v63 }
 0x4af   : > { %v6310_v29 = vadd.f32 %v8740_v37, %v11199_v55  ;;  %v11367_v60 = vsel %vm6315_vm0, %v6299_v59, -1e+30 }
 0x4b0   : > { %v6301_v39 = vpop.f32.mrf.mxu0  ;;  %6374 = vmax.xlane.f32.xlu0 %v11363_v12 }
 0x4b1   : > { %v6302_v47 = vadd.f32 %v11199_v55, %v6301_v39  ;;  %v11377_v58 = vsel %vm6315_vm0, %v6310_v29, -1e+30 }
 0x4b2   : > { %6400 = vmax.xlane.f32.xlu1 %v11373_v34 }
 0x4b3   : > { %v11386_v51 = vsel %vm6315_vm0, %v6302_v47, -1e+30 }
 0x4b4   : > { %6376 = vmax.xlane.f32.xlu0 %v11382_v1 }
 0x4b6   : > { %6396 = vmax.xlane.f32.xlu1 %v11322_v11 }
 0x4b8   : > { %6378 = vmax.xlane.f32.xlu0 %v11255_v10 }
 0x4ba   : > { %6402 = vmax.xlane.f32.xlu1 %v11333_v3 }
 0x4be   : > { %6398 = vmax.xlane.f32.xlu1 %v11344_v62 }
 0x4c2   : > { %6408 = vmax.xlane.f32.xlu1 %v11355_v6 }
 0x4c6   : > { %6404 = vmax.xlane.f32.xlu1 %v11367_v60 }
 0x4ca   : > { %6406 = vmax.xlane.f32.xlu1 %v11386_v51 }
 0x4ce   : > { %6410 = vmax.xlane.f32.xlu1 %v11377_v58 }
 0x4ff   : > { %v6353_v8 = vpop.xlane.xlu0 %6352 }
 0x500   : > { %v11398_v55 = vsub.f32 %v11206_v19, %v6353_v8 }
 0x502   : > { %v6448_v26 = vmul.f32 1.442695, %v11398_v55 }
 0x503   : > { %v6349_v25 = vpop.xlane.xlu0 %6348 }
 0x504   : > { %8935 = vpow2.f32 %v6448_v26  ;;  %v11402_v32 = vsub.f32 %v11213_v41, %v6349_v25 }
 0x505   : > { %v6351_v30 = vpop.xlane.xlu1 %6350 }
 0x506   : > { %v6444_v22 = vmul.f32 1.442695, %v11402_v32  ;;  %v11406_v43 = vsub.f32 %v11218_v56, %v6351_v30 }
 0x507   : > { %v6355_v20 = vpop.xlane.xlu0 %6354 }
 0x508   : > { %8937 = vpow2.f32 %v6444_v22  ;;  %v11409_v44 = vsub.f32 %v11224_v45, %v6355_v20  ;;  %v6446_v40 = vmul.f32 1.442695, %v11406_v43 }
 0x50a   : > { %v6450_v19 = vmul.f32 1.442695, %v11409_v44 }
 0x50b   : > { %v6361_v7 = vpop.xlane.xlu0 %6360 }
 0x50c   : > { %8939 = vpow2.f32 %v6450_v19  ;;  %v11414_v41 = vsub.f32 %v11230_v35, %v6361_v7 }
 0x50d   : > { %8941 = vpow2.f32 %v6446_v40 }
 0x50e   : > { %v6456_v9 = vmul.f32 1.442695, %v11414_v41 }
 0x50f   : > { %v6357_v61 = vpop.xlane.xlu0 %6356 }
 0x510   : > { %v11418_v36 = vsub.f32 %v11236_v50, %v6357_v61  ;;  %8943 = vpow2.f32 %v6456_v9 }
 0x511   : > { %v8936_v56 = vpop.eup %8935 }
 0x512   : > { %6512 = vadd.xlane.f32.xlu0 %v8936_v56  ;;  %v6452_v2 = vmul.f32 1.442695, %v11418_v36 }
 0x513   : > { %v6363_v45 = vpop.xlane.xlu0 %6362 }
 0x514   : > { %v11422_v21 = vsub.f32 %v11242_v27, %v6363_v45  ;;  %8945 = vpow2.f32 %v6452_v2 }
 0x515   : > { %v8938_v23 = vpop.eup %8937 }
 0x516   : > { %6508 = vadd.xlane.f32.xlu0 %v8938_v23  ;;  %v6458_v42 = vmul.f32 1.442695, %v11422_v21 }
 0x517   : > { %v6359_v35 = vpop.xlane.xlu0 %6358 }
 0x518   : > { %v11426_v5 = vsub.f32 %v11249_v54, %v6359_v35  ;;  %8947 = vpow2.f32 %v6458_v42 }
 0x519   : > { %v8940_v50 = vpop.eup %8939 }
 0x51a   : > { %6514 = vadd.xlane.f32.xlu0 %v8940_v50  ;;  %v6454_v17 = vmul.f32 1.442695, %v11426_v5  ;;  %v8942_v0 = vpop.eup %8941 }
 0x51c   : > { %8949 = vpow2.f32 %v6454_v17 }
 0x51d   : > { %v8944_v33 = vpop.eup %8943 }
 0x51e   : > { %6510 = vadd.xlane.f32.xlu0 %v8942_v0 }
 0x51f   : > { %v6385_v28 = vpop.xlane.xlu1 %6384 }
 0x520   : > { %v11430_v27 = vsub.f32 %v11261_v31, %v6385_v28 }
 0x521   : > { %v6381_v16 = vpop.xlane.xlu0 %6380  ;;  %v8946_v29 = vpop.eup %8945 }
 0x522   : > { %v6480_v38 = vmul.f32 1.442695, %v11430_v27  ;;  %v11434_v59 = vsub.f32 %v11268_v52, %v6381_v16  ;;  %6520 = vadd.xlane.f32.xlu0 %v8944_v33 }
 0x523   : > { %v6387_v54 = vpop.xlane.xlu1 %6386 }
 0x524   : > { %8951 = vpow2.f32 %v6480_v38  ;;  %v6476_v37 = vmul.f32 1.442695, %v11434_v59  ;;  %v11438_v53 = vsub.f32 %v11274_v15, %v6387_v54 }
 0x525   : > { %v6365_v39 = vpop.xlane.xlu0 %6364  ;;  %v8948_v52 = vpop.eup %8947 }
 0x526   : > { %6516 = vadd.xlane.f32.xlu0 %v8946_v29  ;;  %8953 = vpow2.f32 %v6476_v37  ;;  %v6482_v47 = vmul.f32 1.442695, %v11438_v53  ;;  %v11449_v19 = vsub.f32 %v11280_v14, %v6365_v39 }
 0x527   : > { %v6383_v31 = vpop.xlane.xlu1 %6382 }
 0x528   : > { %v11442_v8 = vsub.f32 %v11286_v57, %v6383_v31  ;;  %8955 = vpow2.f32 %v6482_v47  ;;  %v6460_v45 = vmul.f32 1.442695, %v11449_v19 }
 0x529   : > { %v6367_v26 = vpop.xlane.xlu0 %6366  ;;  %v8950_v22 = vpop.eup %8949 }
 0x52a   : > { %6522 = vadd.xlane.f32.xlu0 %v8948_v52  ;;  %v6478_v30 = vmul.f32 1.442695, %v11442_v8 }
 0x52b   : > { %v6393_v25 = vpop.xlane.xlu1 %6392 }
 0x52c   : > { %v11446_v15 = vsub.f32 %v11298_v24, %v6393_v25  ;;  %8957 = vpow2.f32 %v6478_v30 }
 0x52d   : > { %v6369_v20 = vpop.xlane.xlu0 %6368 }
 0x52e   : > { %v11452_v7 = vsub.f32 %v11304_v46, %v6369_v20  ;;  %6518 = vadd.xlane.f32.xlu0 %v8950_v22  ;;  %v6488_v40 = vmul.f32 1.442695, %v11446_v15 }
 0x52f   : > { %v6389_v57 = vpop.xlane.xlu1 %6388 }
 0x530   : > { %v6464_v61 = vmul.f32 1.442695, %v11452_v7  ;;  %v11457_v9 = vsub.f32 %v11311_v18, %v6389_v57  ;;  %v11468_v18 = vsub.f32 %v11292_v48, %v6367_v26 }
 0x531   : > { %v8952_v24 = vpop.eup %8951  ;;  %v6371_v56 = vpop.xlane.xlu0 %6370 }
 0x532   : > { %8959 = vpow2.f32 %v6464_v61  ;;  %v11461_v14 = vsub.f32 %v11318_v13, %v6371_v56  ;;  %6544 = vadd.xlane.f32.xlu1 %v8952_v24  ;;  %v6484_v2 = vmul.f32 1.442695, %v11457_v9 }
 0x533   : > { %v6395_v46 = vpop.xlane.xlu1 %6394  ;;  %8961 = vpow2.f32 %v6488_v40  ;;  %v8954_v35 = vpop.eup %8953 }
 0x534   : > { %v11465_v23 = vsub.f32 %v11329_v49, %v6395_v46  ;;  %8963 = vpow2.f32 %v6460_v45  ;;  %v6466_v50 = vmul.f32 1.442695, %v11461_v14  ;;  %v6462_v49 = vmul.f32 1.442695, %v11468_v18 }
 0x535   : > { %v6373_v42 = vpop.xlane.xlu0 %6372  ;;  %8965 = vpow2.f32 %v6484_v2  ;;  %v8956_v28 = vpop.eup %8955 }
 0x536   : > { %6540 = vadd.xlane.f32.xlu1 %v8954_v35  ;;  %v6490_v13 = vmul.f32 1.442695, %v11465_v23  ;;  %8967 = vpow2.f32 %v6466_v50  ;;  %v11481_v29 = vsub.f32 %v11340_v4, %v6373_v42 }
 0x537   : > { %v6391_v17 = vpop.xlane.xlu1 %6390 }
 0x538   : > { %v11473_v0 = vsub.f32 %v11351_v63, %v6391_v17  ;;  %8969 = vpow2.f32 %v6490_v13  ;;  %v6468_v4 = vmul.f32 1.442695, %v11481_v29 }
 0x539   : > { %v6375_v33 = vpop.xlane.xlu0 %6374  ;;  %v8958_v54 = vpop.eup %8957  ;;  %8971 = vpow2.f32 %v6462_v49 }
 0x53a   : > { %6546 = vadd.xlane.f32.xlu1 %v8956_v28  ;;  %v6486_v48 = vmul.f32 1.442695, %v11473_v0  ;;  %v11500_v40 = vsub.f32 %v11363_v12, %v6375_v33 }
 0x53b   : > { %v6401_v16 = vpop.xlane.xlu1 %6400 }
 0x53c   : > { %v11478_v38 = vsub.f32 %v11373_v34, %v6401_v16  ;;  %8973 = vpow2.f32 %v6486_v48  ;;  %v6470_v46 = vmul.f32 1.442695, %v11500_v40 }
 0x53d   : > { %v6377_v37 = vpop.xlane.xlu0 %6376 }
 0x53e   : > { %v11484_v63 = vsub.f32 %v11382_v1, %v6377_v37  ;;  %6542 = vadd.xlane.f32.xlu1 %v8958_v54  ;;  %v6496_v47 = vmul.f32 1.442695, %v11478_v38 }
 0x53f   : > { %v8960_v39 = vpop.eup %8959  ;;  %v6397_v31 = vpop.xlane.xlu1 %6396 }
 0x540   : > { %v6472_v52 = vmul.f32 1.442695, %v11484_v63  ;;  %v11489_v34 = vsub.f32 %v11322_v11, %v6397_v31  ;;  %6528 = vadd.xlane.f32.xlu0 %v8960_v39  ;;  %v8962_v26 = vpop.eup %8961 }
 0x541   : > { %v6379_v25 = vpop.xlane.xlu0 %6378  ;;  %v8964_v30 = vpop.eup %8963 }
 0x542   : > { %8975 = vpow2.f32 %v6472_v52  ;;  %v11493_v1 = vsub.f32 %v11255_v10, %v6379_v25  ;;  %6552 = vadd.xlane.f32.xlu1 %v8962_v26  ;;  %v6492_v20 = vmul.f32 1.442695, %v11489_v34  ;;  %v8966_v11 = vpop.eup %8965 }
 0x543   : > { %v6403_v22 = vpop.xlane.xlu1 %6402  ;;  %8977 = vpow2.f32 %v6496_v47  ;;  %v8968_v10 = vpop.eup %8967 }
 0x544   : > { %v11497_v57 = vsub.f32 %v11333_v3, %v6403_v22  ;;  %6524 = vadd.xlane.f32.xlu0 %v8964_v30  ;;  %8979 = vpow2.f32 %v6468_v4  ;;  %v6474_v61 = vmul.f32 1.442695, %v11493_v1 }
 0x545   : > { %8981 = vpow2.f32 %v6492_v20  ;;  %v8970_v3 = vpop.eup %8969 }
 0x546   : > { %6548 = vadd.xlane.f32.xlu1 %v8966_v11  ;;  %v6498_v56 = vmul.f32 1.442695, %v11497_v57  ;;  %8983 = vpow2.f32 %v6474_v61  ;;  %v8972_v2 = vpop.eup %8971 }
 0x547   : > { %v6399_v24 = vpop.xlane.xlu1 %6398 }
 0x548   : > { %v11505_v45 = vsub.f32 %v11344_v62, %v6399_v24  ;;  %6530 = vadd.xlane.f32.xlu0 %v8968_v10  ;;  %8985 = vpow2.f32 %v6498_v56 }
 0x549   : > { %v8974_v50 = vpop.eup %8973  ;;  %8987 = vpow2.f32 %v6470_v46 }
 0x54a   : > { %6554 = vadd.xlane.f32.xlu1 %v8970_v3  ;;  %v6494_v35 = vmul.f32 1.442695, %v11505_v45 }
 0x54b   : > { %v6409_v12 = vpop.xlane.xlu1 %6408 }
 0x54c   : > { %v11510_v42 = vsub.f32 %v11355_v6, %v6409_v12  ;;  %6526 = vadd.xlane.f32.xlu0 %v8972_v2  ;;  %8989 = vpow2.f32 %v6494_v35 }
 0x54e   : > { %6550 = vadd.xlane.f32.xlu1 %v8974_v50  ;;  %v6504_v13 = vmul.f32 1.442695, %v11510_v42 }
 0x54f   : > { %v8976_v62 = vpop.eup %8975  ;;  %v6405_v17 = vpop.xlane.xlu1 %6404 }
 0x550   : > { %v11514_v28 = vsub.f32 %v11367_v60, %v6405_v17  ;;  %6536 = vadd.xlane.f32.xlu0 %v8976_v62  ;;  %v8978_v33 = vpop.eup %8977  ;;  %8991 = vpow2.f32 %v6504_v13 }
 0x551   : > { %v8980_v49 = vpop.eup %8979 }
 0x552   : > { %6560 = vadd.xlane.f32.xlu1 %v8978_v33  ;;  %v6500_v6 = vmul.f32 1.442695, %v11514_v28  ;;  %v8982_v48 = vpop.eup %8981 }
 0x553   : > { %v6407_v16 = vpop.xlane.xlu1 %6406  ;;  %v8984_v54 = vpop.eup %8983 }
 0x554   : > { %6532 = vadd.xlane.f32.xlu0 %v8980_v49  ;;  %8993 = vpow2.f32 %v6500_v6  ;;  %v11518_v39 = vsub.f32 %v11386_v51, %v6407_v16 }
 0x555   : > { %v8986_v31 = vpop.eup %8985 }
 0x556   : > { %6556 = vadd.xlane.f32.xlu1 %v8982_v48  ;;  %v8988_v52 = vpop.eup %8987  ;;  %v6502_v26 = vmul.f32 1.442695, %v11518_v39 }
 0x557   : > { %v6411_v37 = vpop.xlane.xlu1 %6410 }
 0x558   : > { %v11521_v60 = vsub.f32 %v11377_v58, %v6411_v37  ;;  %6538 = vadd.xlane.f32.xlu0 %v8984_v54 }
 0x559   : > { %v8990_v25 = vpop.eup %8989 }
 0x55a   : > { %v6506_v47 = vmul.f32 1.442695, %v11521_v60  ;;  %6562 = vadd.xlane.f32.xlu1 %v8986_v31 }
 0x55c   : > { %8995 = vpow2.f32 %v6506_v47  ;;  %6534 = vadd.xlane.f32.xlu0 %v8988_v52 }
 0x55d   : > { %8997 = vpow2.f32 %v6502_v26  ;;  %v8992_v4 = vpop.eup %8991 }
 0x55e   : > { %6558 = vadd.xlane.f32.xlu1 %v8990_v25 }
 0x561   : > { %v8994_v51 = vpop.eup %8993 }
 0x562   : > { %6568 = vadd.xlane.f32.xlu1 %v8992_v4 }
 0x566   : > { %6564 = vadd.xlane.f32.xlu1 %v8994_v51 }
 0x569   : > { %v8996_v30 = vpop.eup %8995 }
 0x56a   : > { %6570 = vadd.xlane.f32.xlu1 %v8996_v30  ;;  %v8998_v58 = vpop.eup %8997 }
 0x56e   : > { %6566 = vadd.xlane.f32.xlu1 %v8998_v58 }
 0x59b   : > { %v6513_v22 = vpop.xlane.xlu0 %6512 }
 0x59f   : > { %v6509_v20 = vpop.xlane.xlu0 %6508 }
 0x5a0   : > { %8999 = vlog2.f32 %v6509_v20 }
 0x5a1   : > { %9001 = vlog2.f32 %v6513_v22 }
 0x5a3   : > { %v6515_v11 = vpop.xlane.xlu0 %6514 }
 0x5a7   : > { %v6511_v61 = vpop.xlane.xlu0 %6510 }
 0x5a8   : > { %9003 = vlog2.f32 %v6511_v61 }
 0x5a9   : > { %9005 = vlog2.f32 %v6515_v11 }
 0x5ab   : > { %v6521_v10 = vpop.xlane.xlu0 %6520 }
 0x5ad   : > { %v9000_v24 = vpop.eup %8999 }
 0x5ae   : > { %v6573_v56 = vmul.f32 0.6931472, %v9000_v24  ;;  %v9002_v12 = vpop.eup %9001 }
 0x5af   : > { %v6517_v3 = vpop.xlane.xlu0 %6516  ;;  %v6577_v17 = vmul.f32 0.6931472, %v9002_v12 }
 0x5b0   : > { %9007 = vlog2.f32 %v6517_v3  ;;  %v6636_v46 = vsub.f32 %v11402_v32, %v6573_v56 }
 0x5b1   : > { %9009 = vlog2.f32 %v6521_v10  ;;  %v6638_v6 = vsub.f32 %v11398_v55, %v6577_v17 }
 0x5b2   : > { %6668 = vxpose.xlu0.b32.start [1/16] (narrow) %v6636_v46, 24 }
 0x5b3   : > { %v6523_v2 = vpop.xlane.xlu0 %6522 }
 0x5b5   : > { %v9004_v35 = vpop.eup %9003 }
 0x5b6   : > { %v6575_v50 = vmul.f32 0.6931472, %v9004_v35  ;;  %v9006_v33 = vpop.eup %9005 }
 0x5b7   : > { %v6519_v62 = vpop.xlane.xlu0 %6518  ;;  %v6579_v16 = vmul.f32 0.6931472, %v9006_v33 }
 0x5b8   : > { %9011 = vlog2.f32 %v6519_v62  ;;  %v6637_v13 = vsub.f32 %v11406_v43, %v6575_v50 }
 0x5b9   : > { %9013 = vlog2.f32 %v6523_v2  ;;  %v6639_v37 = vsub.f32 %v11409_v44, %v6579_v16 }
 0x5ba   : > { %6669 = vxpose.xlu0.b32.cont [2/16] (narrow) %v6637_v13, 24 }
 0x5bb   : > { %v6545_v49 = vpop.xlane.xlu1 %6544 }
 0x5bd   : > { %v9008_v48 = vpop.eup %9007 }
 0x5be   : > { %6670 = vxpose.xlu0.b32.cont [3/16] (narrow) %v6638_v6, 24  ;;  %v6581_v54 = vmul.f32 0.6931472, %v9008_v48  ;;  %v9010_v47 = vpop.eup %9009 }
 0x5bf   : > { %v6541_v32 = vpop.xlane.xlu1 %6540  ;;  %v6585_v4 = vmul.f32 0.6931472, %v9010_v47 }
 0x5c0   : > { %9015 = vlog2.f32 %v6541_v32  ;;  %v6640_v52 = vsub.f32 %v11418_v36, %v6581_v54 }
 0x5c1   : > { %9017 = vlog2.f32 %v6545_v49  ;;  %v6642_v44 = vsub.f32 %v11414_v41, %v6585_v4 }
 0x5c2   : > { %6671 = vxpose.xlu0.b32.cont [4/16] (narrow) %v6639_v37, 24 }
 0x5c3   : > { %v6547_v31 = vpop.xlane.xlu1 %6546 }
 0x5c5   : > { %v9012_v43 = vpop.eup %9011 }
 0x5c6   : > { %v6583_v26 = vmul.f32 0.6931472, %v9012_v43  ;;  %6672 = vxpose.xlu0.b32.cont [5/16] (narrow) %v6640_v52, 24  ;;  %v9014_v51 = vpop.eup %9013 }
 0x5c7   : > { %v6543_v25 = vpop.xlane.xlu1 %6542  ;;  %v6587_v22 = vmul.f32 0.6931472, %v9014_v51 }
 0x5c8   : > { %9019 = vlog2.f32 %v6543_v25  ;;  %v6641_v55 = vsub.f32 %v11426_v5, %v6583_v26 }
 0x5c9   : > { %v6529_v30 = vpop.xlane.xlu0 %6528  ;;  %9021 = vlog2.f32 %v6547_v31  ;;  %v6643_v24 = vsub.f32 %v11422_v21, %v6587_v22 }
 0x5ca   : > { %6673 = vxpose.xlu0.b32.cont [6/16] (narrow) %v6641_v55, 24 }
 0x5cb   : > { %v6553_v58 = vpop.xlane.xlu1 %6552 }
 0x5cd   : > { %v9016_v20 = vpop.eup %9015  ;;  %v6525_v11 = vpop.xlane.xlu0 %6524 }
 0x5ce   : > { %9023 = vlog2.f32 %v6525_v11  ;;  %6674 = vxpose.xlu0.b32.cont [7/16] (narrow) %v6642_v44, 24  ;;  %v6605_v36 = vmul.f32 0.6931472, %v9016_v20  ;;  %v9018_v3 = vpop.eup %9017 }
 0x5cf   : > { %v6549_v61 = vpop.xlane.xlu1 %6548  ;;  %v6609_v35 = vmul.f32 0.6931472, %v9018_v3 }
 0x5d0   : > { %9025 = vlog2.f32 %v6549_v61  ;;  %v6652_v10 = vsub.f32 %v11434_v59, %v6605_v36 }
 0x5d1   : > { %v6531_v5 = vpop.xlane.xlu0 %6530  ;;  %9027 = vlog2.f32 %v6529_v30  ;;  %v6654_v49 = vsub.f32 %v11430_v27, %v6609_v35 }
 0x5d2   : > { %6700 = vxpose.xlu1.b32.start [1/16] (narrow) %v6652_v10, 24  ;;  %6675 = vxpose.xlu0.b32.cont [8/16] (narrow) %v6643_v24, 24 }
 0x5d3   : > { %v6555_v56 = vpop.xlane.xlu1 %6554 }
 0x5d5   : > { %v9020_v46 = vpop.eup %9019  ;;  %v6527_v2 = vpop.xlane.xlu0 %6526 }
 0x5d6   : > { %v6607_v41 = vmul.f32 0.6931472, %v9020_v46  ;;  %9029 = vlog2.f32 %v6527_v2  ;;  %v9022_v62 = vpop.eup %9021 }
 0x5d7   : > { %9031 = vlog2.f32 %v6553_v58  ;;  %v6551_v12 = vpop.xlane.xlu1 %6550  ;;  %v6611_v13 = vmul.f32 0.6931472, %v9022_v62 }
 0x5d8   : > { %9033 = vlog2.f32 %v6551_v12  ;;  %v6653_v50 = vsub.f32 %v11442_v8, %v6607_v41 }
 0x5d9   : > { %v6537_v59 = vpop.xlane.xlu0 %6536  ;;  %9035 = vlog2.f32 %v6531_v5  ;;  %v6655_v8 = vsub.f32 %v11438_v53, %v6611_v13 }
 0x5da   : > { %6701 = vxpose.xlu1.b32.cont [2/16] (narrow) %v6653_v50, 24  ;;  %9037 = vlog2.f32 %v6555_v56 }
 0x5db   : > { %v9024_v21 = vpop.eup %9023  ;;  %v6561_v17 = vpop.xlane.xlu1 %6560 }
 0x5dc   : > { %v6589_v33 = vmul.f32 0.6931472, %v9024_v21 }
 0x5dd   : > { %v9026_v16 = vpop.eup %9025  ;;  %v6533_v6 = vpop.xlane.xlu0 %6532 }
 0x5de   : > { %9039 = vlog2.f32 %v6533_v6  ;;  %6702 = vxpose.xlu1.b32.cont [3/16] (narrow) %v6654_v49, 24  ;;  %v6644_v48 = vsub.f32 %v11449_v19, %v6589_v33  ;;  %v6613_v54 = vmul.f32 0.6931472, %v9026_v16  ;;  %v9028_v31 = vpop.eup %9027 }
 0x5df   : > { %v6557_v32 = vpop.xlane.xlu1 %6556  ;;  %v6593_v55 = vmul.f32 0.6931472, %v9028_v31 }
 0x5e0   : > { %9041 = vlog2.f32 %v6557_v32  ;;  %6676 = vxpose.xlu0.b32.cont [9/16] (narrow) %v6644_v48, 24  ;;  %v6656_v27 = vsub.f32 %v11457_v9, %v6613_v54 }
 0x5e1   : > { %v6539_v37 = vpop.xlane.xlu0 %6538  ;;  %9043 = vlog2.f32 %v6537_v59  ;;  %v6646_v9 = vsub.f32 %v11452_v7, %v6593_v55 }
 0x5e2   : > { %6703 = vxpose.xlu1.b32.cont [4/16] (narrow) %v6655_v8, 24 }
 0x5e3   : > { %v9030_v47 = vpop.eup %9029  ;;  %v6563_v52 = vpop.xlane.xlu1 %6562 }
 0x5e4   : > { %v9032_v43 = vpop.eup %9031  ;;  %v6591_v26 = vmul.f32 0.6931472, %v9030_v47 }
 0x5e5   : > { %v9034_v25 = vpop.eup %9033  ;;  %v6535_v4 = vpop.xlane.xlu0 %6534  ;;  %v6617_v58 = vmul.f32 0.6931472, %v9032_v43 }
 0x5e6   : > { %v6615_v19 = vmul.f32 0.6931472, %v9034_v25  ;;  %9045 = vlog2.f32 %v6535_v4  ;;  %6704 = vxpose.xlu1.b32.cont [5/16] (narrow) %v6656_v27, 24  ;;  %v6645_v51 = vsub.f32 %v11468_v18, %v6591_v26  ;;  %v9036_v30 = vpop.eup %9035 }
 0x5e7   : > { %9047 = vlog2.f32 %v6561_v17  ;;  %v6559_v53 = vpop.xlane.xlu1 %6558  ;;  %v9038_v44 = vpop.eup %9037  ;;  %v6595_v20 = vmul.f32 0.6931472, %v9036_v30  ;;  %v6658_v18 = vsub.f32 %v11446_v15, %v6617_v58 }
 0x5e8   : > { %9049 = vlog2.f32 %v6559_v53  ;;  %6677 = vxpose.xlu0.b32.cont [10/16] (narrow) %v6645_v51, 24  ;;  %v6657_v22 = vsub.f32 %v11473_v0, %v6615_v19  ;;  %v6619_v61 = vmul.f32 0.6931472, %v9038_v44 }
 0x5e9   : > { %9051 = vlog2.f32 %v6539_v37  ;;  %v6647_v5 = vsub.f32 %v11461_v14, %v6595_v20 }
 0x5ea   : > { %6705 = vxpose.xlu1.b32.cont [6/16] (narrow) %v6657_v22, 24  ;;  %9053 = vlog2.f32 %v6563_v52  ;;  %v6659_v3 = vsub.f32 %v11465_v23, %v6619_v61 }
 0x5eb   : > { %v9040_v11 = vpop.eup %9039  ;;  %v6569_v36 = vpop.xlane.xlu1 %6568 }
 0x5ec   : > { %6678 = vxpose.xlu0.b32.cont [11/16] (narrow) %v6646_v9, 24  ;;  %v6597_v24 = vmul.f32 0.6931472, %v9040_v11 }
 0x5ed   : > { %v9042_v10 = vpop.eup %9041 }
 0x5ee   : > { %6706 = vxpose.xlu1.b32.cont [7/16] (narrow) %v6658_v18, 24  ;;  %v6621_v0 = vmul.f32 0.6931472, %v9042_v10  ;;  %v9044_v46 = vpop.eup %9043  ;;  %v6648_v7 = vsub.f32 %v11481_v29, %v6597_v24 }
 0x5ef   : > { %v6565_v56 = vpop.xlane.xlu1 %6564  ;;  %v6601_v62 = vmul.f32 0.6931472, %v9044_v46 }
 0x5f0   : > { %9055 = vlog2.f32 %v6565_v56  ;;  %6679 = vxpose.xlu0.b32.cont [12/16] (narrow) %v6647_v5, 24  ;;  %v6660_v15 = vsub.f32 %v11489_v34, %v6621_v0 }
 0x5f1   : > { %9057 = vlog2.f32 %v6569_v36  ;;  %v6650_v49 = vsub.f32 %v11484_v63, %v6601_v62 }
 0x5f2   : > { %6707 = vxpose.xlu1.b32.cont [8/16] (narrow) %v6659_v3, 24 }
 0x5f3   : > { %v9046_v2 = vpop.eup %9045  ;;  %v6571_v41 = vpop.xlane.xlu1 %6570 }
 0x5f4   : > { %v9048_v12 = vpop.eup %9047  ;;  %v6599_v35 = vmul.f32 0.6931472, %v9046_v2  ;;  %6680 = vxpose.xlu0.b32.cont [13/16] (narrow) %v6648_v7, 24 }
 0x5f5   : > { %v9050_v50 = vpop.eup %9049  ;;  %v6625_v17 = vmul.f32 0.6931472, %v9048_v12 }
 0x5f6   : > { %v6623_v14 = vmul.f32 0.6931472, %v9050_v50  ;;  %6708 = vxpose.xlu1.b32.cont [9/16] (narrow) %v6660_v15, 24  ;;  %v6649_v59 = vsub.f32 %v11500_v40, %v6599_v35  ;;  %v9052_v21 = vpop.eup %9051 }
 0x5f7   : > { %v6567_v23 = vpop.xlane.xlu1 %6566  ;;  %v9054_v13 = vpop.eup %9053  ;;  %v6603_v33 = vmul.f32 0.6931472, %v9052_v21  ;;  %v6662_v16 = vsub.f32 %v11478_v38, %v6625_v17 }
 0x5f8   : > { %9059 = vlog2.f32 %v6567_v23  ;;  %6681 = vxpose.xlu0.b32.cont [14/16] (narrow) %v6649_v59, 24  ;;  %v6661_v29 = vsub.f32 %v11505_v45, %v6623_v14  ;;  %v6627_v34 = vmul.f32 0.6931472, %v9054_v13 }
 0x5f9   : > { %9061 = vlog2.f32 %v6571_v41  ;;  %v6651_v40 = vsub.f32 %v11493_v1, %v6603_v33 }
 0x5fa   : > { %6709 = vxpose.xlu1.b32.cont [10/16] (narrow) %v6661_v29, 24  ;;  %v6663_v32 = vsub.f32 %v11497_v57, %v6627_v34 }
 0x5fc   : > { %6682 = vxpose.xlu0.b32.cont [15/16] (narrow) %v6650_v49, 24 }
 0x5fd   : > { %v9056_v6 = vpop.eup %9055 }
 0x5fe   : > { %6710 = vxpose.xlu1.b32.cont [11/16] (narrow) %v6662_v16, 24  ;;  %v6629_v48 = vmul.f32 0.6931472, %v9056_v6  ;;  %v9058_v45 = vpop.eup %9057 }
 0x5ff   : > { %v6633_v37 = vmul.f32 0.6931472, %v9058_v45 }
 0x600   : > { %6683 = vxpose.xlu0.b32.end [16/16] (narrow) %v6651_v40, 24  ;;  %v6664_v54 = vsub.f32 %v11514_v28, %v6629_v48 }
 0x601   : > { %v6666_v1 = vsub.f32 %v11510_v42, %v6633_v37 }
 0x602   : > { %6711 = vxpose.xlu1.b32.cont [12/16] (narrow) %v6663_v32, 24 }
 0x605   : > { %v9060_v8 = vpop.eup %9059 }
 0x606   : > { %v6631_v63 = vmul.f32 0.6931472, %v9060_v8  ;;  %6712 = vxpose.xlu1.b32.cont [13/16] (narrow) %v6664_v54, 24  ;;  %v9062_v38 = vpop.eup %9061 }
 0x607   : > { %v6635_v47 = vmul.f32 0.6931472, %v9062_v38 }
 0x608   : > { %v6665_v31 = vsub.f32 %v11518_v39, %v6631_v63 }
 0x609   : > { %v6667_v52 = vsub.f32 %v11521_v60, %v6635_v47 }
 0x60a   : > { %6713 = vxpose.xlu1.b32.cont [14/16] (narrow) %v6665_v31, 24 }
 0x60e   : > { %6714 = vxpose.xlu1.b32.cont [15/16] (narrow) %v6666_v1, 24 }
 0x612   : > { %6715 = vxpose.xlu1.b32.end [16/16] (narrow) %v6667_v52, 24 }
 0x640   : > { %v6684_v57 = vpop.trf.xlu0 }
 0x641   : > { %6732 = vst [vmem:[%s278_s19] sm:$0xff] %v6684_v57 }
 0x644   : > { %v6685_v28 = vpop.trf.xlu0 }
 0x645   : > { %6734 = vst [vmem:[%s278_s19 + $0x10] sm:$0xff] %v6685_v28 }
 0x648   : > { %v6686_v43 = vpop.trf.xlu0 }
 0x649   : > { %6736 = vst [vmem:[%s278_s19 + $0x20] sm:$0xff] %v6686_v43 }
 0x652   : > { %v6716_v39 = vpop.trf.xlu1 }
 0x653   : > { %6733 = vst [vmem:[%s278_s19 + $0x8] sm:$0xff] %v6716_v39 }
 0x656   : > { %v6717_v26 = vpop.trf.xlu1 }
 0x657   : > { %6735 = vst [vmem:[%s278_s19 + $0x18] sm:$0xff] %v6717_v26 }
 0x65a   : > { %v6718_v42 = vpop.trf.xlu1 }
 0x65b   : > { %6737 = vst [vmem:[%s278_s19 + $0x28] sm:$0xff] %v6718_v42 }
 0x65c PF: > { %s17_s24 = sadd.s32 1, %s9079_s24  }
 0x65d   : > { %p14_p4 = scmp.ge.s32.totalorder %s17_s24, 4  }
 0x65f   :  { %16 = sbr.rel (!%p14_p4) target bundleno = 1 (0x1), region = 97 }

</bundles_post_ra>
